<compile_context>
chip_gen: v7x
topology: tpu7x:2x2x1
jax: 0.10.0
libtpu: 0.0.40
codegen_flags: <defaults>
</compile_context>

<pallas_src>
import functools

import jax
import jax.numpy as jnp
from jax.experimental import pallas as pl
from jax.experimental.pallas import tpu as pltpu


_VMEM_LIMIT = 48 * 1024 * 1024   # leaves headroom on v7x's 64 MiB VMEM per TC
_EPS = 1e-5


def _round_up(x, m):
    return (x + m - 1) // m * m


def _pick_tile(n, want):
    t = min(want, n)
    while n % t:
        t -= 1
    return t


# ----------------------------------------------------------------------------
# Kernel 1: depthwise taps (VPU) + pointwise 1x1 (MXU) + BN running statistics.
# ----------------------------------------------------------------------------
def _conv_stats_kernel(x_ref, wdw_ref, wpw_ref, raw_ref, stats_ref, *,
                       KH, KW, stride, dilation, tile_h, Wo, Hs, Cin, Cout):
    # x_ref:     (stride**2 * Hs, Ws, Cin)  phase-stacked padded input for one
    #            batch element; phase (p, q) = x[p::stride, q::stride] occupies
    #            rows [(p*stride + q) * Hs, ...).  Strided selection was done
    #            HBM-side, so every load below is unit-stride.
    # wdw_ref:   (KH*KW, 1, Cin)   depthwise taps, channels on lanes.
    # wpw_ref:   (Cin, Cout)       pointwise (1x1) weights, Cin/Cout padded >=128.
    # raw_ref:   (tile_h, Wo, Cout)  pre-BN conv output tile (lane-dense).
    # stats_ref: (2, Cout) f32     per-batch running [sum; sum-of-squares],
    #                              accumulated across the row-tile grid axis.
    t = pl.program_id(1)
    t_off = pl.multiple_of(t * tile_h, tile_h)

    w_taps = wdw_ref[...]                          # loaded once, (KH*KW, 1, Cin)

    # Depthwise conv: per-tap VPU FMA with f32 accumulation.
    mid = jnp.zeros((tile_h, Wo, Cin), jnp.float32)
    for kh in range(KH):
        for kw in range(KW):
            a = kh * dilation
            b = kw * dilation
            phase = (a % stride) * stride + (b % stride)
            row0 = phase * Hs + (a // stride) + t_off
            patch = x_ref[pl.ds(row0, tile_h), pl.ds(b // stride, Wo), :]
            mid = mid + patch * w_taps[kh * KW + kw]

    # Pointwise 1x1: one MXU matmul, contraction K = padded channels (>=128).
    lhs = mid.astype(wpw_ref.dtype).reshape(tile_h * Wo, Cin)
    out = jnp.dot(lhs, wpw_ref[...], preferred_element_type=jnp.float32)

    raw_ref[...] = out.reshape(tile_h, Wo, Cout).astype(raw_ref.dtype)

    # Training-mode BatchNorm statistics (two-pass BN): running per-channel
    # sum / sum-of-squares, initialized on the first row tile of each image.
    @pl.when(t == 0)
    def _init():
        stats_ref[...] = jnp.zeros((2, Cout), jnp.float32)

    stats_ref[0:1, :] = stats_ref[0:1, :] + jnp.sum(out, axis=0, keepdims=True)
    stats_ref[1:2, :] = stats_ref[1:2, :] + jnp.sum(out * out, axis=0,
                                                    keepdims=True)


# ----------------------------------------------------------------------------
# Kernel 2: folded BN affine (+ optional residual with its own affine) + ReLU.
# ----------------------------------------------------------------------------
def _bn_act_kernel(raw_ref, scale_ref, shift_ref, o_ref, *, act):
    y = raw_ref[...] * scale_ref[...] + shift_ref[...]
    if act:
        y = jnp.maximum(y, 0.0)
    o_ref[...] = y.astype(o_ref.dtype)


def _bn_add_act_kernel(raw_ref, scale_ref, shift_ref,
                       res_ref, rscale_ref, rshift_ref, o_ref, *, act):
    y = raw_ref[...] * scale_ref[...] + shift_ref[...]
    y = y + (res_ref[...] * rscale_ref[...] + rshift_ref[...])
    if act:
        y = jnp.maximum(y, 0.0)
    o_ref[...] = y.astype(o_ref.dtype)


# ----------------------------------------------------------------------------
# Wrappers
# ----------------------------------------------------------------------------
def _conv_bn_stats(x, w_dw, w_pw, gamma, beta, *, KH, KW, stride, dilation,
                   padding, eps=_EPS, tile_h_want=8, out_dtype=None):
    """Depthwise-taps + pointwise conv with training-mode BN statistics.

    Returns (raw, scale, shift) such that BN(conv(x)) == raw * scale + shift.
    Conv bias is omitted on purpose: it is cancelled exactly by the BN mean
    subtraction (train-mode batch statistics).
    """
    N, H, W, Cin = x.shape
    Cout = w_pw.shape[1]
    Ho = (H + 2 * padding - dilation * (KH - 1) - 1) // stride + 1
    Wo = (W + 2 * padding - dilation * (KW - 1) - 1) // stride + 1
    if padding:
        x = jnp.pad(x, ((0, 0), (padding, padding), (padding, padding), (0, 0)))
    Hp, Wp = x.shape[1], x.shape[2]

    # Phase-stack stride>1 inputs on the HBM side so in-kernel loads stay
    # unit-stride: phase (p, q) holds x[:, p::stride, q::stride, :].
    if stride == 1:
        xp, Hs, Ws = x, Hp, Wp
    else:
        s = stride
        Hs, Ws = -(-Hp // s), -(-Wp // s)
        xq = jnp.pad(x, ((0, 0), (0, Hs * s - Hp), (0, Ws * s - Wp), (0, 0)))
        xq = xq.reshape(N, Hs, s, Ws, s, Cin)
        xq = jnp.transpose(xq, (0, 2, 4, 1, 3, 5))
        xp = xq.reshape(N, s * s * Hs, Ws, Cin)

    tile_h = _pick_tile(Ho, tile_h_want)
    grid = (N, Ho // tile_h)
    out_dtype = out_dtype or x.dtype
    rows_p = xp.shape[1]

    kern = functools.partial(
        _conv_stats_kernel, KH=KH, KW=KW, stride=stride, dilation=dilation,
        tile_h=tile_h, Wo=Wo, Hs=Hs, Cin=Cin, Cout=Cout)

    raw, stats = pl.pallas_call(
        kern,
        grid=grid,
        in_specs=[
            # Full (phase-stacked) image per batch element; the block index
            # ignores the row-tile axis, so it is DMA'd once per image and
            # revisited across row tiles.
            pl.BlockSpec((None, rows_p, Ws, Cin), lambda n, t: (n, 0, 0, 0)),
            pl.BlockSpec((KH * KW, 1, Cin), lambda n, t: (0, 0, 0)),
            pl.BlockSpec((Cin, Cout), lambda n, t: (0, 0)),
        ],
        out_specs=[
            pl.BlockSpec((None, tile_h, Wo, Cout), lambda n, t: (n, t, 0, 0)),
            pl.BlockSpec((None, 2, Cout), lambda n, t: (n, 0, 0)),
        ],
        out_shape=[
            jax.ShapeDtypeStruct((N, Ho, Wo, Cout), out_dtype),
            jax.ShapeDtypeStruct((N, 2, Cout), jnp.float32),
        ],
        compiler_params=pltpu.CompilerParams(
            dimension_semantics=("parallel", "arbitrary"),
            vmem_limit_bytes=_VMEM_LIMIT),
    )(xp, w_dw, w_pw)

    # Fold training-mode BN into a per-channel scale/shift (tiny vectors).
    count = N * Ho * Wo
    s_ = jnp.sum(stats[:, 0, :], axis=0)
    ss = jnp.sum(stats[:, 1, :], axis=0)
    mean = s_ / count
    var = jnp.maximum(ss / count - mean * mean, 0.0)
    scale = (gamma * jax.lax.rsqrt(var + eps)).astype(jnp.float32)
    shift = (beta - mean * scale).astype(jnp.float32)
    return raw, scale.reshape(1, Cout), shift.reshape(1, Cout)


def _bn_act(raw, scale, shift, *, act, residual=None, rscale=None, rshift=None,
            tile_h_want=8):
    """y = raw*scale + shift (+ residual*rscale + rshift) (+ ReLU), tiled."""
    N, Ho, Wo, C = raw.shape
    tile_h = _pick_tile(Ho, tile_h_want)
    grid = (N, Ho // tile_h)
    blk = pl.BlockSpec((None, tile_h, Wo, C), lambda n, t: (n, t, 0, 0))
    vec = pl.BlockSpec((1, C), lambda n, t: (0, 0))
    cparams = pltpu.CompilerParams(
        dimension_semantics=("parallel", "parallel"),
        vmem_limit_bytes=_VMEM_LIMIT)
    out_shape = jax.ShapeDtypeStruct(raw.shape, raw.dtype)
    if residual is None:
        return pl.pallas_call(
            functools.partial(_bn_act_kernel, act=act),
            grid=grid, in_specs=[blk, vec, vec], out_specs=blk,
            out_shape=out_shape, compiler_params=cparams,
        )(raw, scale, shift)
    return pl.pallas_call(
        functools.partial(_bn_add_act_kernel, act=act),
        grid=grid, in_specs=[blk, vec, vec, blk, vec, vec], out_specs=blk,
        out_shape=out_shape, compiler_params=cparams,
    )(raw, scale, shift, residual, rscale, rshift)


def separable_conv(x, w_dw, w_pw, gamma, beta, *, stride, dilation, act,
                   apply_bn=True):
    raw, scale, shift = _conv_bn_stats(
        x, w_dw, w_pw, gamma, beta, KH=3, KW=3, stride=stride,
        dilation=dilation, padding=dilation)
    if apply_bn:
        return _bn_act(raw, scale, shift, act=act)
    return raw, scale, shift


def shortcut_conv(x, w_pw, gamma, beta, *, stride=2):
    # 1x1 stride-s conv == 1x1 stride-1 conv on an HBM-side subsampled input.
    xs = x[:, ::stride, ::stride, :]
    cin = xs.shape[-1]
    dw_identity = jnp.ones((1, 1, cin), w_pw.dtype)
    return _conv_bn_stats(xs, dw_identity, w_pw, gamma, beta,
                          KH=1, KW=1, stride=1, dilation=1, padding=0)


# ----------------------------------------------------------------------------
# Parameter packing (PyTorch layouts -> padded, lane-dense kernel layouts).
# ----------------------------------------------------------------------------
def _pack_depthwise(w_dw_oihw, c_pad):
    # (C, 1, KH, KW) depthwise weight -> (KH*KW, 1, c_pad), channels on lanes.
    C, _, KH, KW = w_dw_oihw.shape
    w = jnp.transpose(w_dw_oihw[:, 0], (1, 2, 0)).reshape(KH * KW, 1, C)
    return jnp.pad(w, ((0, 0), (0, 0), (0, c_pad - C)))


def _pack_pointwise(w_oihw, cin_pad, cout_pad):
    # (Cout, Cin, 1, 1) -> (cin_pad, cout_pad).
    Cout, Cin = w_oihw.shape[:2]
    w = jnp.transpose(w_oihw[:, :, 0, 0], (1, 0))
    return jnp.pad(w, ((0, cin_pad - Cin), (0, cout_pad - Cout)))


def _pack_vec(v, c_pad):
    return jnp.pad(v.astype(jnp.float32), (0, c_pad - v.shape[0]))


# ----------------------------------------------------------------------------
# XceptionBlock forward (training-mode BatchNorm), NCHW in / NCHW out.
# ----------------------------------------------------------------------------
def xception_block(x_nchw, params, *, stride=1, dilation=1):
    N, Cin, H, W = x_nchw.shape
    Cout = params["pw1"].shape[0]
    cin_p = _round_up(Cin, 128)
    cout_p = _round_up(Cout, 128)

    # NCHW -> NHWC once; pad channels to a lane-dense multiple of 128 and stay
    # padded through the whole block (padded lanes remain exactly zero).
    x = jnp.transpose(x_nchw, (0, 2, 3, 1))
    x = jnp.pad(x, ((0, 0), (0, 0), (0, 0), (0, cin_p - Cin)))

    # Conv biases intentionally dropped: every conv is followed by training-
    # mode BatchNorm, which cancels per-channel constants exactly.
    dw1 = _pack_depthwise(params["dw1"], cin_p)
    pw1 = _pack_pointwise(params["pw1"], cin_p, cout_p)
    dw2 = _pack_depthwise(params["dw2"], cout_p)
    pw2 = _pack_pointwise(params["pw2"], cout_p, cout_p)
    dw3 = _pack_depthwise(params["dw3"], cout_p)
    pw3 = _pack_pointwise(params["pw3"], cout_p, cout_p)
    g1, b1 = _pack_vec(params["g1"], cout_p), _pack_vec(params["b1"], cout_p)
    g2, b2 = _pack_vec(params["g2"], cout_p), _pack_vec(params["b2"], cout_p)
    g3, b3 = _pack_vec(params["g3"], cout_p), _pack_vec(params["b3"], cout_p)

    y = separable_conv(x, dw1, pw1, g1, b1, stride=1, dilation=dilation, act=True)
    y = separable_conv(y, dw2, pw2, g2, b2, stride=1, dilation=dilation, act=True)
    # Third SeparableConv has act=False; its BN apply is fused with the
    # residual add + final ReLU in a single elementwise pass.
    raw3, s3, sh3 = separable_conv(y, dw3, pw3, g3, b3, stride=stride,
                                   dilation=dilation, act=False, apply_bn=False)

    if Cin != Cout:
        # short_conv = ConvBnRelu(Cin, Cout, 1, stride=2, act=False)
        pw_sc = _pack_pointwise(params["pw_sc"], cin_p, cout_p)
        g_sc = _pack_vec(params["g_sc"], cout_p)
        b_sc = _pack_vec(params["b_sc"], cout_p)
        raw_sc, s_sc, sh_sc = shortcut_conv(x, pw_sc, g_sc, b_sc, stride=2)
        out = _bn_act(raw3, s3, sh3, act=True,
                      residual=raw_sc, rscale=s_sc, rshift=sh_sc)
    else:
        ident_s = jnp.ones((1, cout_p), jnp.float32)
        ident_b = jnp.zeros((1, cout_p), jnp.float32)
        out = _bn_act(raw3, s3, sh3, act=True,
                      residual=x, rscale=ident_s, rshift=ident_b)

    out = out[..., :Cout]
    return jnp.transpose(out, (0, 3, 1, 2))


# ----------------------------------------------------------------------------
# Pure-JAX reference (mirrors the PyTorch module, biases included).
# ----------------------------------------------------------------------------
def _ref_conv(x, w, b, stride, padding, dilation, groups):
    y = jax.lax.conv_general_dilated(
        x, w, window_strides=(stride, stride),
        padding=((padding, padding), (padding, padding)),
        rhs_dilation=(dilation, dilation),
        dimension_numbers=("NCHW", "OIHW", "NCHW"),
        feature_group_count=groups,
        precision=jax.lax.Precision.HIGHEST)
    return y + b.reshape(1, -1, 1, 1)


def _ref_bn(x, gamma, beta, eps=_EPS):
    mean = jnp.mean(x, axis=(0, 2, 3), keepdims=True)
    var = jnp.mean((x - mean) ** 2, axis=(0, 2, 3), keepdims=True)
    y = (x - mean) * jax.lax.rsqrt(var + eps)
    return y * gamma.reshape(1, -1, 1, 1) + beta.reshape(1, -1, 1, 1)


def _ref_separable(x, w_dw, b_dw, w_pw, b_pw, gamma, beta, stride, dilation, act):
    groups = x.shape[1]
    y = _ref_conv(x, w_dw, b_dw, stride, dilation, dilation, groups)
    y = _ref_conv(y, w_pw, b_pw, 1, 0, 1, 1)
    y = _ref_bn(y, gamma, beta)
    if act:
        y = jnp.maximum(y, 0.0)
    return y


def _ref_xception_block(x, p, *, stride, dilation):
    out = _ref_separable(x, p["dw1"], p["bdw1"], p["pw1"], p["bpw1"],
                         p["g1"], p["b1"], 1, dilation, True)
    out = _ref_separable(out, p["dw2"], p["bdw2"], p["pw2"], p["bpw2"],
                         p["g2"], p["b2"], 1, dilation, True)
    out = _ref_separable(out, p["dw3"], p["bdw3"], p["pw3"], p["bpw3"],
                         p["g3"], p["b3"], stride, dilation, False)
    if x.shape[1] != out.shape[1]:
        sc = _ref_conv(x, p["pw_sc"], p["b_sc_conv"], 2, 0, 1, 1)
        sc = _ref_bn(sc, p["g_sc"], p["b_sc"])
    else:
        sc = x
    return jnp.maximum(out + sc, 0.0)


if __name__ == "__main__":
    # XceptionBlock(in_channels=4, out_channels=8, stride=2, dilation=1)
    N, Cin, H, W = 2, 4, 16, 16
    Cout = 8
    stride, dilation = 2, 1

    key = jax.random.PRNGKey(0)
    ks = jax.random.split(key, 24)

    def nrm(k, shape, s=0.3):
        return s * jax.random.normal(k, shape, dtype=jnp.float32)

    x = jax.random.normal(ks[0], (N, Cin, H, W), dtype=jnp.float32)

    params = {
        # SeparableConv 1
        "dw1": nrm(ks[1], (Cin, 1, 3, 3)), "bdw1": nrm(ks[2], (Cin,), 0.1),
        "pw1": nrm(ks[3], (Cout, Cin, 1, 1)), "bpw1": nrm(ks[4], (Cout,), 0.1),
        "g1": 1.0 + nrm(ks[5], (Cout,), 0.1), "b1": nrm(ks[6], (Cout,), 0.1),
        # SeparableConv 2
        "dw2": nrm(ks[7], (Cout, 1, 3, 3)), "bdw2": nrm(ks[8], (Cout,), 0.1),
        "pw2": nrm(ks[9], (Cout, Cout, 1, 1)), "bpw2": nrm(ks[10], (Cout,), 0.1),
        "g2": 1.0 + nrm(ks[11], (Cout,), 0.1), "b2": nrm(ks[12], (Cout,), 0.1),
        # SeparableConv 3 (stride, act=False)
        "dw3": nrm(ks[13], (Cout, 1, 3, 3)), "bdw3": nrm(ks[14], (Cout,), 0.1),
        "pw3": nrm(ks[15], (Cout, Cout, 1, 1)), "bpw3": nrm(ks[16], (Cout,), 0.1),
        "g3": 1.0 + nrm(ks[17], (Cout,), 0.1), "b3": nrm(ks[18], (Cout,), 0.1),
        # shortcut ConvBnRelu(Cin, Cout, 1, stride=2, act=False)
        "pw_sc": nrm(ks[19], (Cout, Cin, 1, 1)),
        "b_sc_conv": nrm(ks[20], (Cout,), 0.1),
        "g_sc": 1.0 + nrm(ks[21], (Cout,), 0.1),
        "b_sc": nrm(ks[22], (Cout,), 0.1),
    }

    fwd = jax.jit(functools.partial(xception_block, stride=stride,
                                    dilation=dilation))
    out = fwd(x, params)
    out = jax.block_until_ready(out)

    ref = _ref_xception_block(x, params, stride=stride, dilation=dilation)

    assert out.shape == (N, Cout, H // stride, W // stride), out.shape
    err = float(jnp.max(jnp.abs(out - ref)))
    assert jnp.allclose(out, ref, atol=2e-3, rtol=2e-3), err

    print("KERNEL_OK")
</pallas_src>

<mosaic_0001>
module attributes {stable_mosaic.version = 11 : i64} {
  func.func @_conv_stats_kernel(%arg0: i32, %arg1: i32, %arg2: memref<1x8x8x128xf32, #tpu.memory_space<vmem>>, %arg3: memref<1x1x128xf32, #tpu.memory_space<vmem>>, %arg4: memref<128x128xf32, #tpu.memory_space<vmem>>, %arg5: memref<1x8x8x128xf32, #tpu.memory_space<vmem>>, %arg6: memref<1x2x128xf32, #tpu.memory_space<vmem>>) attributes {dimension_semantics = [#tpu.dimension_semantics<parallel>, #tpu.dimension_semantics<arbitrary>], iteration_bounds = array<i64: 2, 1>, scalar_prefetch = 0 : i64, scratch_operands = 0 : i64, tpu.core_type = #tpu.core_type<tc>, window_params = [{transform_indices = @transform_0, window_bounds = array<i64: 1, 8, 8, 128>}, {pipeline_mode = #tpu.pipeline_mode<synchronous>, transform_indices = @transform_1, window_bounds = array<i64: 1, 1, 128>}, {pipeline_mode = #tpu.pipeline_mode<synchronous>, transform_indices = @transform_2, window_bounds = array<i64: 128, 128>}, {transform_indices = @transform_3, window_bounds = array<i64: 1, 8, 8, 128>}, {transform_indices = @transform_4, window_bounds = array<i64: 1, 2, 128>}]} {
    %c8_i32 = arith.constant 8 : i32
    %0 = arith.muli %arg1, %c8_i32 : i32
    %1 = tpu.assume_multiple %0, 8 : i32
    %c0 = arith.constant 0 : index
    %c0_0 = arith.constant 0 : index
    %c0_1 = arith.constant 0 : index
    %2 = vector.load %arg3[%c0, %c0_0, %c0_1] : memref<1x1x128xf32, #tpu.memory_space<vmem>>, vector<1x1x128xf32>
    %cst = arith.constant 0.000000e+00 : f32
    %3 = vector.broadcast %cst : f32 to vector<8x8x128xf32>
    %c0_i32 = arith.constant 0 : i32
    %4 = arith.addi %c0_i32, %1 : i32
    %c0_2 = arith.constant 0 : index
    %5 = arith.index_cast %4 : i32 to index
    %c0_3 = arith.constant 0 : index
    %c0_4 = arith.constant 0 : index
    %6 = vector.load %arg2[%c0_2, %5, %c0_3, %c0_4] : memref<1x8x8x128xf32, #tpu.memory_space<vmem>>, vector<1x8x8x128xf32>
    %7 = vector.shape_cast %6 : vector<1x8x8x128xf32> to vector<8x8x128xf32>
    %8 = vector.shape_cast %2 : vector<1x1x128xf32> to vector<1x128xf32>
    %9 = vector.shape_cast %8 : vector<1x128xf32> to vector<1x1x128xf32>
    %10 = vector.broadcast %9 : vector<1x1x128xf32> to vector<8x8x128xf32>
    %11 = arith.mulf %7, %10 : vector<8x8x128xf32>
    %12 = arith.addf %3, %11 : vector<8x8x128xf32>
    %13 = vector.shape_cast %12 : vector<8x8x128xf32> to vector<64x128xf32>
    %c0_5 = arith.constant 0 : index
    %c0_6 = arith.constant 0 : index
    %14 = vector.load %arg4[%c0_5, %c0_6] : memref<128x128xf32, #tpu.memory_space<vmem>>, vector<128x128xf32>
    %cst_7 = arith.constant dense<0.000000e+00> : vector<64x128xf32>
    %15 = tpu.matmul %13, %14, %cst_7 {dimension_numbers = #tpu.dot_dimension_numbers<[1], [0], [0], [1], [0, 0, 1, 1], [], []>} : vector<64x128xf32>, vector<128x128xf32>, vector<64x128xf32> -> vector<64x128xf32>
    %16 = vector.shape_cast %15 : vector<64x128xf32> to vector<8x8x128xf32>
    %c0_8 = arith.constant 0 : index
    %c0_9 = arith.constant 0 : index
    %c0_10 = arith.constant 0 : index
    %c0_11 = arith.constant 0 : index
    %17 = vector.load %arg5[%c0_8, %c0_9, %c0_10, %c0_11] : memref<1x8x8x128xf32, #tpu.memory_space<vmem>>, vector<1x8x8x128xf32>
    %18 = vector.shape_cast %17 : vector<1x8x8x128xf32> to vector<8x8x128xf32>
    %19 = vector.shape_cast %16 : vector<8x8x128xf32> to vector<1x8x8x128xf32>
    tpu.vector_store %arg5[%c0_8, %c0_9, %c0_10, %c0_11], %19 {strides = array<i32>} : memref<1x8x8x128xf32, #tpu.memory_space<vmem>>, vector<1x8x8x128xf32>,
    %c0_i32_12 = arith.constant 0 : i32
    %20 = arith.cmpi eq, %arg1, %c0_i32_12 : i32
    %21 = arith.extui %20 : i1 to i32
    %c0_i32_13 = arith.constant 0 : i32
    %22 = arith.cmpi ne, %21, %c0_i32_13 : i32
    scf.if %22 {
      %cst_27 = arith.constant 0.000000e+00 : f32
      %40 = vector.broadcast %cst_27 : f32 to vector<2x128xf32>
      %c0_28 = arith.constant 0 : index
      %c0_29 = arith.constant 0 : index
      %c0_30 = arith.constant 0 : index
      %41 = vector.load %arg6[%c0_28, %c0_29, %c0_30] : memref<1x2x128xf32, #tpu.memory_space<vmem>>, vector<1x2x128xf32>
      %42 = vector.shape_cast %41 : vector<1x2x128xf32> to vector<2x128xf32>
      %43 = vector.shape_cast %40 : vector<2x128xf32> to vector<1x2x128xf32>
      tpu.vector_store %arg6[%c0_28, %c0_29, %c0_30], %43 {strides = array<i32>} : memref<1x2x128xf32, #tpu.memory_space<vmem>>, vector<1x2x128xf32>,
    } else {
    }
    %c0_14 = arith.constant 0 : index
    %c0_15 = arith.constant 0 : index
    %c0_16 = arith.constant 0 : index
    %23 = vector.load %arg6[%c0_14, %c0_15, %c0_16] : memref<1x2x128xf32, #tpu.memory_space<vmem>>, vector<1x1x128xf32>
    %24 = vector.shape_cast %23 : vector<1x1x128xf32> to vector<1x128xf32>
    %cst_17 = arith.constant dense<0.000000e+00> : vector<128xf32>
    %25 = vector.multi_reduction <add>, %15, %cst_17 [0] : vector<64x128xf32> to vector<128xf32>
    %26 = vector.shape_cast %25 : vector<128xf32> to vector<1x128xf32>
    %27 = arith.addf %24, %26 : vector<1x128xf32>
    %c0_18 = arith.constant 0 : index
    %c0_19 = arith.constant 0 : index
    %c0_20 = arith.constant 0 : index
    %28 = vector.load %arg6[%c0_18, %c0_19, %c0_20] : memref<1x2x128xf32, #tpu.memory_space<vmem>>, vector<1x1x128xf32>
    %29 = vector.shape_cast %28 : vector<1x1x128xf32> to vector<1x128xf32>
    %30 = vector.shape_cast %27 : vector<1x128xf32> to vector<1x1x128xf32>
    tpu.vector_store %arg6[%c0_18, %c0_19, %c0_20], %30 {strides = array<i32>} : memref<1x2x128xf32, #tpu.memory_space<vmem>>, vector<1x1x128xf32>,
    %c0_21 = arith.constant 0 : index
    %c1 = arith.constant 1 : index
    %c0_22 = arith.constant 0 : index
    %31 = vector.load %arg6[%c0_21, %c1, %c0_22] : memref<1x2x128xf32, #tpu.memory_space<vmem>>, vector<1x1x128xf32>
    %32 = vector.shape_cast %31 : vector<1x1x128xf32> to vector<1x128xf32>
    %33 = arith.mulf %15, %15 : vector<64x128xf32>
    %cst_23 = arith.constant dense<0.000000e+00> : vector<128xf32>
    %34 = vector.multi_reduction <add>, %33, %cst_23 [0] : vector<64x128xf32> to vector<128xf32>
    %35 = vector.shape_cast %34 : vector<128xf32> to vector<1x128xf32>
    %36 = arith.addf %32, %35 : vector<1x128xf32>
    %c0_24 = arith.constant 0 : index
    %c1_25 = arith.constant 1 : index
    %c0_26 = arith.constant 0 : index
    %37 = vector.load %arg6[%c0_24, %c1_25, %c0_26] : memref<1x2x128xf32, #tpu.memory_space<vmem>>, vector<1x1x128xf32>
    %38 = vector.shape_cast %37 : vector<1x1x128xf32> to vector<1x128xf32>
    %39 = vector.shape_cast %36 : vector<1x128xf32> to vector<1x1x128xf32>
    tpu.vector_store %arg6[%c0_24, %c1_25, %c0_26], %39 {strides = array<i32>} : memref<1x2x128xf32, #tpu.memory_space<vmem>>, vector<1x1x128xf32>,
    return
  }
  func.func @transform_0(%arg0: i32, %arg1: i32) -> (i32, i32, i32, i32) {
    %c0_i32 = arith.constant 0 : i32
    %c0_i32_0 = arith.constant 0 : i32
    %c0_i32_1 = arith.constant 0 : i32
    %c0_i32_2 = arith.constant 0 : i32
    return %arg0, %c0_i32, %c0_i32_0, %c0_i32_1 : i32, i32, i32, i32
  }
  func.func @transform_1(%arg0: i32, %arg1: i32) -> (i32, i32, i32) {
    %c0_i32 = arith.constant 0 : i32
    %c0_i32_0 = arith.constant 0 : i32
    %c0_i32_1 = arith.constant 0 : i32
    %c0_i32_2 = arith.constant 0 : i32
    return %c0_i32, %c0_i32_0, %c0_i32_1 : i32, i32, i32
  }
  func.func @transform_2(%arg0: i32, %arg1: i32) -> (i32, i32) {
    %c0_i32 = arith.constant 0 : i32
    %c0_i32_0 = arith.constant 0 : i32
    %c0_i32_1 = arith.constant 0 : i32
    return %c0_i32, %c0_i32_0 : i32, i32
  }
  func.func @transform_3(%arg0: i32, %arg1: i32) -> (i32, i32, i32, i32) {
    %c0_i32 = arith.constant 0 : i32
    %c0_i32_0 = arith.constant 0 : i32
    %c0_i32_1 = arith.constant 0 : i32
    return %arg0, %arg1, %c0_i32, %c0_i32_0 : i32, i32, i32, i32
  }
  func.func @transform_4(%arg0: i32, %arg1: i32) -> (i32, i32, i32) {
    %c0_i32 = arith.constant 0 : i32
    %c0_i32_0 = arith.constant 0 : i32
    %c0_i32_1 = arith.constant 0 : i32
    return %arg0, %c0_i32, %c0_i32_0 : i32, i32, i32
  }
}

module attributes {stable_mosaic.version = 11 : i64} {
  func.func @_bn_act_kernel(%arg0: i32, %arg1: i32, %arg2: memref<1x8x16x128xf32, #tpu.memory_space<vmem>>, %arg3: memref<1x128xf32, #tpu.memory_space<vmem>>, %arg4: memref<1x128xf32, #tpu.memory_space<vmem>>, %arg5: memref<1x8x16x128xf32, #tpu.memory_space<vmem>>) attributes {dimension_semantics = [#tpu.dimension_semantics<parallel>, #tpu.dimension_semantics<parallel>], iteration_bounds = array<i64: 2, 2>, scalar_prefetch = 0 : i64, scratch_operands = 0 : i64, tpu.core_type = #tpu.core_type<tc>, window_params = [{transform_indices = @transform_0, window_bounds = array<i64: 1, 8, 16, 128>}, {pipeline_mode = #tpu.pipeline_mode<synchronous>, transform_indices = @transform_1, window_bounds = array<i64: 1, 128>}, {pipeline_mode = #tpu.pipeline_mode<synchronous>, transform_indices = @transform_2, window_bounds = array<i64: 1, 128>}, {transform_indices = @transform_3, window_bounds = array<i64: 1, 8, 16, 128>}]} {
    %c0 = arith.constant 0 : index
    %c0_0 = arith.constant 0 : index
    %c0_1 = arith.constant 0 : index
    %c0_2 = arith.constant 0 : index
    %0 = vector.load %arg2[%c0, %c0_0, %c0_1, %c0_2] : memref<1x8x16x128xf32, #tpu.memory_space<vmem>>, vector<1x8x16x128xf32>
    %1 = vector.shape_cast %0 : vector<1x8x16x128xf32> to vector<8x16x128xf32>
    %c0_3 = arith.constant 0 : index
    %c0_4 = arith.constant 0 : index
    %2 = vector.load %arg3[%c0_3, %c0_4] : memref<1x128xf32, #tpu.memory_space<vmem>>, vector<1x128xf32>
    %3 = vector.shape_cast %2 : vector<1x128xf32> to vector<1x1x128xf32>
    %4 = vector.broadcast %3 : vector<1x1x128xf32> to vector<8x16x128xf32>
    %5 = arith.mulf %1, %4 : vector<8x16x128xf32>
    %c0_5 = arith.constant 0 : index
    %c0_6 = arith.constant 0 : index
    %6 = vector.load %arg4[%c0_5, %c0_6] : memref<1x128xf32, #tpu.memory_space<vmem>>, vector<1x128xf32>
    %7 = vector.shape_cast %6 : vector<1x128xf32> to vector<1x1x128xf32>
    %8 = vector.broadcast %7 : vector<1x1x128xf32> to vector<8x16x128xf32>
    %9 = arith.addf %5, %8 : vector<8x16x128xf32>
    %cst = arith.constant 0.000000e+00 : f32
    %10 = vector.broadcast %cst : f32 to vector<8x16x128xf32>
    %11 = arith.maximumf %9, %10 : vector<8x16x128xf32>
    %c0_7 = arith.constant 0 : index
    %c0_8 = arith.constant 0 : index
    %c0_9 = arith.constant 0 : index
    %c0_10 = arith.constant 0 : index
    %12 = vector.load %arg5[%c0_7, %c0_8, %c0_9, %c0_10] : memref<1x8x16x128xf32, #tpu.memory_space<vmem>>, vector<1x8x16x128xf32>
    %13 = vector.shape_cast %12 : vector<1x8x16x128xf32> to vector<8x16x128xf32>
    %14 = vector.shape_cast %11 : vector<8x16x128xf32> to vector<1x8x16x128xf32>
    tpu.vector_store %arg5[%c0_7, %c0_8, %c0_9, %c0_10], %14 {strides = array<i32>} : memref<1x8x16x128xf32, #tpu.memory_space<vmem>>, vector<1x8x16x128xf32>,
    return
  }
  func.func @transform_0(%arg0: i32, %arg1: i32) -> (i32, i32, i32, i32) {
    %c0_i32 = arith.constant 0 : i32
    %c0_i32_0 = arith.constant 0 : i32
    %c0_i32_1 = arith.constant 0 : i32
    return %arg0, %arg1, %c0_i32, %c0_i32_0 : i32, i32, i32, i32
  }
  func.func @transform_1(%arg0: i32, %arg1: i32) -> (i32, i32) {
    %c0_i32 = arith.constant 0 : i32
    %c0_i32_0 = arith.constant 0 : i32
    %c0_i32_1 = arith.constant 0 : i32
    return %c0_i32, %c0_i32_0 : i32, i32
  }
  func.func @transform_2(%arg0: i32, %arg1: i32) -> (i32, i32) {
    %c0_i32 = arith.constant 0 : i32
    %c0_i32_0 = arith.constant 0 : i32
    %c0_i32_1 = arith.constant 0 : i32
    return %c0_i32, %c0_i32_0 : i32, i32
  }
  func.func @transform_3(%arg0: i32, %arg1: i32) -> (i32, i32, i32, i32) {
    %c0_i32 = arith.constant 0 : i32
    %c0_i32_0 = arith.constant 0 : i32
    %c0_i32_1 = arith.constant 0 : i32
    return %arg0, %arg1, %c0_i32, %c0_i32_0 : i32, i32, i32, i32
  }
}

module attributes {stable_mosaic.version = 11 : i64} {
  func.func @_conv_stats_kernel(%arg0: i32, %arg1: i32, %arg2: memref<1x18x18x128xf32, #tpu.memory_space<vmem>>, %arg3: memref<9x1x128xf32, #tpu.memory_space<vmem>>, %arg4: memref<128x128xf32, #tpu.memory_space<vmem>>, %arg5: memref<1x8x16x128xf32, #tpu.memory_space<vmem>>, %arg6: memref<1x2x128xf32, #tpu.memory_space<vmem>>) attributes {dimension_semantics = [#tpu.dimension_semantics<parallel>, #tpu.dimension_semantics<arbitrary>], iteration_bounds = array<i64: 2, 2>, scalar_prefetch = 0 : i64, scratch_operands = 0 : i64, tpu.core_type = #tpu.core_type<tc>, window_params = [{transform_indices = @transform_0, window_bounds = array<i64: 1, 18, 18, 128>}, {pipeline_mode = #tpu.pipeline_mode<synchronous>, transform_indices = @transform_1, window_bounds = array<i64: 9, 1, 128>}, {pipeline_mode = #tpu.pipeline_mode<synchronous>, transform_indices = @transform_2, window_bounds = array<i64: 128, 128>}, {transform_indices = @transform_3, window_bounds = array<i64: 1, 8, 16, 128>}, {transform_indices = @transform_4, window_bounds = array<i64: 1, 2, 128>}]} {
    %c8_i32 = arith.constant 8 : i32
    %0 = arith.muli %arg1, %c8_i32 : i32
    %1 = tpu.assume_multiple %0, 8 : i32
    %c0 = arith.constant 0 : index
    %c0_0 = arith.constant 0 : index
    %c0_1 = arith.constant 0 : index
    %2 = vector.load %arg3[%c0, %c0_0, %c0_1] : memref<9x1x128xf32, #tpu.memory_space<vmem>>, vector<9x1x128xf32>
    %cst = arith.constant 0.000000e+00 : f32
    %3 = vector.broadcast %cst : f32 to vector<8x16x128xf32>
    %c0_i32 = arith.constant 0 : i32
    %4 = arith.addi %c0_i32, %1 : i32
    %c0_2 = arith.constant 0 : index
    %5 = arith.index_cast %4 : i32 to index
    %c0_3 = arith.constant 0 : index
    %c0_4 = arith.constant 0 : index
    %6 = vector.load %arg2[%c0_2, %5, %c0_3, %c0_4] : memref<1x18x18x128xf32, #tpu.memory_space<vmem>>, vector<1x8x16x128xf32>
    %7 = vector.shape_cast %6 : vector<1x8x16x128xf32> to vector<8x16x128xf32>
    %8 = vector.extract_strided_slice %2 {offsets = [0, 0, 0], sizes = [1, 1, 128], strides = [1, 1, 1]} : vector<9x1x128xf32> to vector<1x1x128xf32>
    %9 = vector.shape_cast %8 : vector<1x1x128xf32> to vector<1x128xf32>
    %10 = vector.shape_cast %9 : vector<1x128xf32> to vector<1x1x128xf32>
    %11 = vector.broadcast %10 : vector<1x1x128xf32> to vector<8x16x128xf32>
    %12 = arith.mulf %7, %11 : vector<8x16x128xf32>
    %13 = arith.addf %3, %12 : vector<8x16x128xf32>
    %c0_i32_5 = arith.constant 0 : i32
    %14 = arith.addi %c0_i32_5, %1 : i32
    %c0_6 = arith.constant 0 : index
    %15 = arith.index_cast %14 : i32 to index
    %c1 = arith.constant 1 : index
    %c0_7 = arith.constant 0 : index
    %16 = vector.load %arg2[%c0_6, %15, %c1, %c0_7] : memref<1x18x18x128xf32, #tpu.memory_space<vmem>>, vector<1x8x16x128xf32>
    %17 = vector.shape_cast %16 : vector<1x8x16x128xf32> to vector<8x16x128xf32>
    %18 = vector.extract_strided_slice %2 {offsets = [1, 0, 0], sizes = [1, 1, 128], strides = [1, 1, 1]} : vector<9x1x128xf32> to vector<1x1x128xf32>
    %19 = vector.shape_cast %18 : vector<1x1x128xf32> to vector<1x128xf32>
    %20 = vector.shape_cast %19 : vector<1x128xf32> to vector<1x1x128xf32>
    %21 = vector.broadcast %20 : vector<1x1x128xf32> to vector<8x16x128xf32>
    %22 = arith.mulf %17, %21 : vector<8x16x128xf32>
    %23 = arith.addf %13, %22 : vector<8x16x128xf32>
    %c0_i32_8 = arith.constant 0 : i32
    %24 = arith.addi %c0_i32_8, %1 : i32
    %c0_9 = arith.constant 0 : index
    %25 = arith.index_cast %24 : i32 to index
    %c2 = arith.constant 2 : index
    %c0_10 = arith.constant 0 : index
    %26 = vector.load %arg2[%c0_9, %25, %c2, %c0_10] : memref<1x18x18x128xf32, #tpu.memory_space<vmem>>, vector<1x8x16x128xf32>
    %27 = vector.shape_cast %26 : vector<1x8x16x128xf32> to vector<8x16x128xf32>
    %28 = vector.extract_strided_slice %2 {offsets = [2, 0, 0], sizes = [1, 1, 128], strides = [1, 1, 1]} : vector<9x1x128xf32> to vector<1x1x128xf32>
    %29 = vector.shape_cast %28 : vector<1x1x128xf32> to vector<1x128xf32>
    %30 = vector.shape_cast %29 : vector<1x128xf32> to vector<1x1x128xf32>
    %31 = vector.broadcast %30 : vector<1x1x128xf32> to vector<8x16x128xf32>
    %32 = arith.mulf %27, %31 : vector<8x16x128xf32>
    %33 = arith.addf %23, %32 : vector<8x16x128xf32>
    %c1_i32 = arith.constant 1 : i32
    %34 = arith.addi %c1_i32, %1 : i32
    %c0_11 = arith.constant 0 : index
    %35 = arith.index_cast %34 : i32 to index
    %c0_12 = arith.constant 0 : index
    %c0_13 = arith.constant 0 : index
    %36 = vector.load %arg2[%c0_11, %35, %c0_12, %c0_13] : memref<1x18x18x128xf32, #tpu.memory_space<vmem>>, vector<1x8x16x128xf32>
    %37 = vector.shape_cast %36 : vector<1x8x16x128xf32> to vector<8x16x128xf32>
    %38 = vector.extract_strided_slice %2 {offsets = [3, 0, 0], sizes = [1, 1, 128], strides = [1, 1, 1]} : vector<9x1x128xf32> to vector<1x1x128xf32>
    %39 = vector.shape_cast %38 : vector<1x1x128xf32> to vector<1x128xf32>
    %40 = vector.shape_cast %39 : vector<1x128xf32> to vector<1x1x128xf32>
    %41 = vector.broadcast %40 : vector<1x1x128xf32> to vector<8x16x128xf32>
    %42 = arith.mulf %37, %41 : vector<8x16x128xf32>
    %43 = arith.addf %33, %42 : vector<8x16x128xf32>
    %c1_i32_14 = arith.constant 1 : i32
    %44 = arith.addi %c1_i32_14, %1 : i32
    %c0_15 = arith.constant 0 : index
    %45 = arith.index_cast %44 : i32 to index
    %c1_16 = arith.constant 1 : index
    %c0_17 = arith.constant 0 : index
    %46 = vector.load %arg2[%c0_15, %45, %c1_16, %c0_17] : memref<1x18x18x128xf32, #tpu.memory_space<vmem>>, vector<1x8x16x128xf32>
    %47 = vector.shape_cast %46 : vector<1x8x16x128xf32> to vector<8x16x128xf32>
    %48 = vector.extract_strided_slice %2 {offsets = [4, 0, 0], sizes = [1, 1, 128], strides = [1, 1, 1]} : vector<9x1x128xf32> to vector<1x1x128xf32>
    %49 = vector.shape_cast %48 : vector<1x1x128xf32> to vector<1x128xf32>
    %50 = vector.shape_cast %49 : vector<1x128xf32> to vector<1x1x128xf32>
    %51 = vector.broadcast %50 : vector<1x1x128xf32> to vector<8x16x128xf32>
    %52 = arith.mulf %47, %51 : vector<8x16x128xf32>
    %53 = arith.addf %43, %52 : vector<8x16x128xf32>
    %c1_i32_18 = arith.constant 1 : i32
    %54 = arith.addi %c1_i32_18, %1 : i32
    %c0_19 = arith.constant 0 : index
    %55 = arith.index_cast %54 : i32 to index
    %c2_20 = arith.constant 2 : index
    %c0_21 = arith.constant 0 : index
    %56 = vector.load %arg2[%c0_19, %55, %c2_20, %c0_21] : memref<1x18x18x128xf32, #tpu.memory_space<vmem>>, vector<1x8x16x128xf32>
    %57 = vector.shape_cast %56 : vector<1x8x16x128xf32> to vector<8x16x128xf32>
    %58 = vector.extract_strided_slice %2 {offsets = [5, 0, 0], sizes = [1, 1, 128], strides = [1, 1, 1]} : vector<9x1x128xf32> to vector<1x1x128xf32>
    %59 = vector.shape_cast %58 : vector<1x1x128xf32> to vector<1x128xf32>
    %60 = vector.shape_cast %59 : vector<1x128xf32> to vector<1x1x128xf32>
    %61 = vector.broadcast %60 : vector<1x1x128xf32> to vector<8x16x128xf32>
    %62 = arith.mulf %57, %61 : vector<8x16x128xf32>
    %63 = arith.addf %53, %62 : vector<8x16x128xf32>
    %c2_i32 = arith.constant 2 : i32
    %64 = arith.addi %c2_i32, %1 : i32
    %c0_22 = arith.constant 0 : index
    %65 = arith.index_cast %64 : i32 to index
    %c0_23 = arith.constant 0 : index
    %c0_24 = arith.constant 0 : index
    %66 = vector.load %arg2[%c0_22, %65, %c0_23, %c0_24] : memref<1x18x18x128xf32, #tpu.memory_space<vmem>>, vector<1x8x16x128xf32>
    %67 = vector.shape_cast %66 : vector<1x8x16x128xf32> to vector<8x16x128xf32>
    %68 = vector.extract_strided_slice %2 {offsets = [6, 0, 0], sizes = [1, 1, 128], strides = [1, 1, 1]} : vector<9x1x128xf32> to vector<1x1x128xf32>
    %69 = vector.shape_cast %68 : vector<1x1x128xf32> to vector<1x128xf32>
    %70 = vector.shape_cast %69 : vector<1x128xf32> to vector<1x1x128xf32>
    %71 = vector.broadcast %70 : vector<1x1x128xf32> to vector<8x16x128xf32>
    %72 = arith.mulf %67, %71 : vector<8x16x128xf32>
    %73 = arith.addf %63, %72 : vector<8x16x128xf32>
    %c2_i32_25 = arith.constant 2 : i32
    %74 = arith.addi %c2_i32_25, %1 : i32
    %c0_26 = arith.constant 0 : index
    %75 = arith.index_cast %74 : i32 to index
    %c1_27 = arith.constant 1 : index
    %c0_28 = arith.constant 0 : index
    %76 = vector.load %arg2[%c0_26, %75, %c1_27, %c0_28] : memref<1x18x18x128xf32, #tpu.memory_space<vmem>>, vector<1x8x16x128xf32>
    %77 = vector.shape_cast %76 : vector<1x8x16x128xf32> to vector<8x16x128xf32>
    %78 = vector.extract_strided_slice %2 {offsets = [7, 0, 0], sizes = [1, 1, 128], strides = [1, 1, 1]} : vector<9x1x128xf32> to vector<1x1x128xf32>
    %79 = vector.shape_cast %78 : vector<1x1x128xf32> to vector<1x128xf32>
    %80 = vector.shape_cast %79 : vector<1x128xf32> to vector<1x1x128xf32>
    %81 = vector.broadcast %80 : vector<1x1x128xf32> to vector<8x16x128xf32>
    %82 = arith.mulf %77, %81 : vector<8x16x128xf32>
    %83 = arith.addf %73, %82 : vector<8x16x128xf32>
    %c2_i32_29 = arith.constant 2 : i32
    %84 = arith.addi %c2_i32_29, %1 : i32
    %c0_30 = arith.constant 0 : index
    %85 = arith.index_cast %84 : i32 to index
    %c2_31 = arith.constant 2 : index
    %c0_32 = arith.constant 0 : index
    %86 = vector.load %arg2[%c0_30, %85, %c2_31, %c0_32] : memref<1x18x18x128xf32, #tpu.memory_space<vmem>>, vector<1x8x16x128xf32>
    %87 = vector.shape_cast %86 : vector<1x8x16x128xf32> to vector<8x16x128xf32>
    %88 = vector.extract_strided_slice %2 {offsets = [8, 0, 0], sizes = [1, 1, 128], strides = [1, 1, 1]} : vector<9x1x128xf32> to vector<1x1x128xf32>
    %89 = vector.shape_cast %88 : vector<1x1x128xf32> to vector<1x128xf32>
    %90 = vector.shape_cast %89 : vector<1x128xf32> to vector<1x1x128xf32>
    %91 = vector.broadcast %90 : vector<1x1x128xf32> to vector<8x16x128xf32>
    %92 = arith.mulf %87, %91 : vector<8x16x128xf32>
    %93 = arith.addf %83, %92 : vector<8x16x128xf32>
    %94 = vector.shape_cast %93 : vector<8x16x128xf32> to vector<128x128xf32>
    %c0_33 = arith.constant 0 : index
    %c0_34 = arith.constant 0 : index
    %95 = vector.load %arg4[%c0_33, %c0_34] : memref<128x128xf32, #tpu.memory_space<vmem>>, vector<128x128xf32>
    %cst_35 = arith.constant dense<0.000000e+00> : vector<128x128xf32>
    %96 = tpu.matmul %94, %95, %cst_35 {dimension_numbers = #tpu.dot_dimension_numbers<[1], [0], [0], [1], [0, 0, 1, 1], [], []>} : vector<128x128xf32>, vector<128x128xf32>, vector<128x128xf32> -> vector<128x128xf32>
    %97 = vector.shape_cast %96 : vector<128x128xf32> to vector<8x16x128xf32>
    %c0_36 = arith.constant 0 : index
    %c0_37 = arith.constant 0 : index
    %c0_38 = arith.constant 0 : index
    %c0_39 = arith.constant 0 : index
    %98 = vector.load %arg5[%c0_36, %c0_37, %c0_38, %c0_39] : memref<1x8x16x128xf32, #tpu.memory_space<vmem>>, vector<1x8x16x128xf32>
    %99 = vector.shape_cast %98 : vector<1x8x16x128xf32> to vector<8x16x128xf32>
    %100 = vector.shape_cast %97 : vector<8x16x128xf32> to vector<1x8x16x128xf32>
    tpu.vector_store %arg5[%c0_36, %c0_37, %c0_38, %c0_39], %100 {strides = array<i32>} : memref<1x8x16x128xf32, #tpu.memory_space<vmem>>, vector<1x8x16x128xf32>,
    %c0_i32_40 = arith.constant 0 : i32
    %101 = arith.cmpi eq, %arg1, %c0_i32_40 : i32
    %102 = arith.extui %101 : i1 to i32
    %c0_i32_41 = arith.constant 0 : i32
    %103 = arith.cmpi ne, %102, %c0_i32_41 : i32
    scf.if %103 {
      %cst_56 = arith.constant 0.000000e+00 : f32
      %121 = vector.broadcast %cst_56 : f32 to vector<2x128xf32>
      %c0_57 = arith.constant 0 : index
      %c0_58 = arith.constant 0 : index
      %c0_59 = arith.constant 0 : index
      %122 = vector.load %arg6[%c0_57, %c0_58, %c0_59] : memref<1x2x128xf32, #tpu.memory_space<vmem>>, vector<1x2x128xf32>
      %123 = vector.shape_cast %122 : vector<1x2x128xf32> to vector<2x128xf32>
      %124 = vector.shape_cast %121 : vector<2x128xf32> to vector<1x2x128xf32>
      tpu.vector_store %arg6[%c0_57, %c0_58, %c0_59], %124 {strides = array<i32>} : memref<1x2x128xf32, #tpu.memory_space<vmem>>, vector<1x2x128xf32>,
    } else {
    }
    %c0_42 = arith.constant 0 : index
    %c0_43 = arith.constant 0 : index
    %c0_44 = arith.constant 0 : index
    %104 = vector.load %arg6[%c0_42, %c0_43, %c0_44] : memref<1x2x128xf32, #tpu.memory_space<vmem>>, vector<1x1x128xf32>
    %105 = vector.shape_cast %104 : vector<1x1x128xf32> to vector<1x128xf32>
    %cst_45 = arith.constant dense<0.000000e+00> : vector<128xf32>
    %106 = vector.multi_reduction <add>, %96, %cst_45 [0] : vector<128x128xf32> to vector<128xf32>
    %107 = vector.shape_cast %106 : vector<128xf32> to vector<1x128xf32>
    %108 = arith.addf %105, %107 : vector<1x128xf32>
    %c0_46 = arith.constant 0 : index
    %c0_47 = arith.constant 0 : index
    %c0_48 = arith.constant 0 : index
    %109 = vector.load %arg6[%c0_46, %c0_47, %c0_48] : memref<1x2x128xf32, #tpu.memory_space<vmem>>, vector<1x1x128xf32>
    %110 = vector.shape_cast %109 : vector<1x1x128xf32> to vector<1x128xf32>
    %111 = vector.shape_cast %108 : vector<1x128xf32> to vector<1x1x128xf32>
    tpu.vector_store %arg6[%c0_46, %c0_47, %c0_48], %111 {strides = array<i32>} : memref<1x2x128xf32, #tpu.memory_space<vmem>>, vector<1x1x128xf32>,
    %c0_49 = arith.constant 0 : index
    %c1_50 = arith.constant 1 : index
    %c0_51 = arith.constant 0 : index
    %112 = vector.load %arg6[%c0_49, %c1_50, %c0_51] : memref<1x2x128xf32, #tpu.memory_space<vmem>>, vector<1x1x128xf32>
    %113 = vector.shape_cast %112 : vector<1x1x128xf32> to vector<1x128xf32>
    %114 = arith.mulf %96, %96 : vector<128x128xf32>
    %cst_52 = arith.constant dense<0.000000e+00> : vector<128xf32>
    %115 = vector.multi_reduction <add>, %114, %cst_52 [0] : vector<128x128xf32> to vector<128xf32>
    %116 = vector.shape_cast %115 : vector<128xf32> to vector<1x128xf32>
    %117 = arith.addf %113, %116 : vector<1x128xf32>
    %c0_53 = arith.constant 0 : index
    %c1_54 = arith.constant 1 : index
    %c0_55 = arith.constant 0 : index
    %118 = vector.load %arg6[%c0_53, %c1_54, %c0_55] : memref<1x2x128xf32, #tpu.memory_space<vmem>>, vector<1x1x128xf32>
    %119 = vector.shape_cast %118 : vector<1x1x128xf32> to vector<1x128xf32>
    %120 = vector.shape_cast %117 : vector<1x128xf32> to vector<1x1x128xf32>
    tpu.vector_store %arg6[%c0_53, %c1_54, %c0_55], %120 {strides = array<i32>} : memref<1x2x128xf32, #tpu.memory_space<vmem>>, vector<1x1x128xf32>,
    return
  }
  func.func @transform_0(%arg0: i32, %arg1: i32) -> (i32, i32, i32, i32) {
    %c0_i32 = arith.constant 0 : i32
    %c0_i32_0 = arith.constant 0 : i32
    %c0_i32_1 = arith.constant 0 : i32
    %c0_i32_2 = arith.constant 0 : i32
    return %arg0, %c0_i32, %c0_i32_0, %c0_i32_1 : i32, i32, i32, i32
  }
  func.func @transform_1(%arg0: i32, %arg1: i32) -> (i32, i32, i32) {
    %c0_i32 = arith.constant 0 : i32
    %c0_i32_0 = arith.constant 0 : i32
    %c0_i32_1 = arith.constant 0 : i32
    %c0_i32_2 = arith.constant 0 : i32
    return %c0_i32, %c0_i32_0, %c0_i32_1 : i32, i32, i32
  }
  func.func @transform_2(%arg0: i32, %arg1: i32) -> (i32, i32) {
    %c0_i32 = arith.constant 0 : i32
    %c0_i32_0 = arith.constant 0 : i32
    %c0_i32_1 = arith.constant 0 : i32
    return %c0_i32, %c0_i32_0 : i32, i32
  }
  func.func @transform_3(%arg0: i32, %arg1: i32) -> (i32, i32, i32, i32) {
    %c0_i32 = arith.constant 0 : i32
    %c0_i32_0 = arith.constant 0 : i32
    %c0_i32_1 = arith.constant 0 : i32
    return %arg0, %arg1, %c0_i32, %c0_i32_0 : i32, i32, i32, i32
  }
  func.func @transform_4(%arg0: i32, %arg1: i32) -> (i32, i32, i32) {
    %c0_i32 = arith.constant 0 : i32
    %c0_i32_0 = arith.constant 0 : i32
    %c0_i32_1 = arith.constant 0 : i32
    return %arg0, %c0_i32, %c0_i32_0 : i32, i32, i32
  }
}

module attributes {stable_mosaic.version = 11 : i64} {
  func.func @_conv_stats_kernel(%arg0: i32, %arg1: i32, %arg2: memref<1x36x9x128xf32, #tpu.memory_space<vmem>>, %arg3: memref<9x1x128xf32, #tpu.memory_space<vmem>>, %arg4: memref<128x128xf32, #tpu.memory_space<vmem>>, %arg5: memref<1x8x8x128xf32, #tpu.memory_space<vmem>>, %arg6: memref<1x2x128xf32, #tpu.memory_space<vmem>>) attributes {dimension_semantics = [#tpu.dimension_semantics<parallel>, #tpu.dimension_semantics<arbitrary>], iteration_bounds = array<i64: 2, 1>, scalar_prefetch = 0 : i64, scratch_operands = 0 : i64, tpu.core_type = #tpu.core_type<tc>, window_params = [{transform_indices = @transform_0, window_bounds = array<i64: 1, 36, 9, 128>}, {pipeline_mode = #tpu.pipeline_mode<synchronous>, transform_indices = @transform_1, window_bounds = array<i64: 9, 1, 128>}, {pipeline_mode = #tpu.pipeline_mode<synchronous>, transform_indices = @transform_2, window_bounds = array<i64: 128, 128>}, {transform_indices = @transform_3, window_bounds = array<i64: 1, 8, 8, 128>}, {transform_indices = @transform_4, window_bounds = array<i64: 1, 2, 128>}]} {
    %c8_i32 = arith.constant 8 : i32
    %0 = arith.muli %arg1, %c8_i32 : i32
    %1 = tpu.assume_multiple %0, 8 : i32
    %c0 = arith.constant 0 : index
    %c0_0 = arith.constant 0 : index
    %c0_1 = arith.constant 0 : index
    %2 = vector.load %arg3[%c0, %c0_0, %c0_1] : memref<9x1x128xf32, #tpu.memory_space<vmem>>, vector<9x1x128xf32>
    %cst = arith.constant 0.000000e+00 : f32
    %3 = vector.broadcast %cst : f32 to vector<8x8x128xf32>
    %c0_i32 = arith.constant 0 : i32
    %4 = arith.addi %c0_i32, %1 : i32
    %c0_2 = arith.constant 0 : index
    %5 = arith.index_cast %4 : i32 to index
    %c0_3 = arith.constant 0 : index
    %c0_4 = arith.constant 0 : index
    %6 = vector.load %arg2[%c0_2, %5, %c0_3, %c0_4] : memref<1x36x9x128xf32, #tpu.memory_space<vmem>>, vector<1x8x8x128xf32>
    %7 = vector.shape_cast %6 : vector<1x8x8x128xf32> to vector<8x8x128xf32>
    %8 = vector.extract_strided_slice %2 {offsets = [0, 0, 0], sizes = [1, 1, 128], strides = [1, 1, 1]} : vector<9x1x128xf32> to vector<1x1x128xf32>
    %9 = vector.shape_cast %8 : vector<1x1x128xf32> to vector<1x128xf32>
    %10 = vector.shape_cast %9 : vector<1x128xf32> to vector<1x1x128xf32>
    %11 = vector.broadcast %10 : vector<1x1x128xf32> to vector<8x8x128xf32>
    %12 = arith.mulf %7, %11 : vector<8x8x128xf32>
    %13 = arith.addf %3, %12 : vector<8x8x128xf32>
    %c9_i32 = arith.constant 9 : i32
    %14 = arith.addi %c9_i32, %1 : i32
    %c0_5 = arith.constant 0 : index
    %15 = arith.index_cast %14 : i32 to index
    %c0_6 = arith.constant 0 : index
    %c0_7 = arith.constant 0 : index
    %16 = vector.load %arg2[%c0_5, %15, %c0_6, %c0_7] : memref<1x36x9x128xf32, #tpu.memory_space<vmem>>, vector<1x8x8x128xf32>
    %17 = vector.shape_cast %16 : vector<1x8x8x128xf32> to vector<8x8x128xf32>
    %18 = vector.extract_strided_slice %2 {offsets = [1, 0, 0], sizes = [1, 1, 128], strides = [1, 1, 1]} : vector<9x1x128xf32> to vector<1x1x128xf32>
    %19 = vector.shape_cast %18 : vector<1x1x128xf32> to vector<1x128xf32>
    %20 = vector.shape_cast %19 : vector<1x128xf32> to vector<1x1x128xf32>
    %21 = vector.broadcast %20 : vector<1x1x128xf32> to vector<8x8x128xf32>
    %22 = arith.mulf %17, %21 : vector<8x8x128xf32>
    %23 = arith.addf %13, %22 : vector<8x8x128xf32>
    %c0_i32_8 = arith.constant 0 : i32
    %24 = arith.addi %c0_i32_8, %1 : i32
    %c0_9 = arith.constant 0 : index
    %25 = arith.index_cast %24 : i32 to index
    %c1 = arith.constant 1 : index
    %c0_10 = arith.constant 0 : index
    %26 = vector.load %arg2[%c0_9, %25, %c1, %c0_10] : memref<1x36x9x128xf32, #tpu.memory_space<vmem>>, vector<1x8x8x128xf32>
    %27 = vector.shape_cast %26 : vector<1x8x8x128xf32> to vector<8x8x128xf32>
    %28 = vector.extract_strided_slice %2 {offsets = [2, 0, 0], sizes = [1, 1, 128], strides = [1, 1, 1]} : vector<9x1x128xf32> to vector<1x1x128xf32>
    %29 = vector.shape_cast %28 : vector<1x1x128xf32> to vector<1x128xf32>
    %30 = vector.shape_cast %29 : vector<1x128xf32> to vector<1x1x128xf32>
    %31 = vector.broadcast %30 : vector<1x1x128xf32> to vector<8x8x128xf32>
    %32 = arith.mulf %27, %31 : vector<8x8x128xf32>
    %33 = arith.addf %23, %32 : vector<8x8x128xf32>
    %c18_i32 = arith.constant 18 : i32
    %34 = arith.addi %c18_i32, %1 : i32
    %c0_11 = arith.constant 0 : index
    %35 = arith.index_cast %34 : i32 to index
    %c0_12 = arith.constant 0 : index
    %c0_13 = arith.constant 0 : index
    %36 = vector.load %arg2[%c0_11, %35, %c0_12, %c0_13] : memref<1x36x9x128xf32, #tpu.memory_space<vmem>>, vector<1x8x8x128xf32>
    %37 = vector.shape_cast %36 : vector<1x8x8x128xf32> to vector<8x8x128xf32>
    %38 = vector.extract_strided_slice %2 {offsets = [3, 0, 0], sizes = [1, 1, 128], strides = [1, 1, 1]} : vector<9x1x128xf32> to vector<1x1x128xf32>
    %39 = vector.shape_cast %38 : vector<1x1x128xf32> to vector<1x128xf32>
    %40 = vector.shape_cast %39 : vector<1x128xf32> to vector<1x1x128xf32>
    %41 = vector.broadcast %40 : vector<1x1x128xf32> to vector<8x8x128xf32>
    %42 = arith.mulf %37, %41 : vector<8x8x128xf32>
    %43 = arith.addf %33, %42 : vector<8x8x128xf32>
    %c27_i32 = arith.constant 27 : i32
    %44 = arith.addi %c27_i32, %1 : i32
    %c0_14 = arith.constant 0 : index
    %45 = arith.index_cast %44 : i32 to index
    %c0_15 = arith.constant 0 : index
    %c0_16 = arith.constant 0 : index
    %46 = vector.load %arg2[%c0_14, %45, %c0_15, %c0_16] : memref<1x36x9x128xf32, #tpu.memory_space<vmem>>, vector<1x8x8x128xf32>
    %47 = vector.shape_cast %46 : vector<1x8x8x128xf32> to vector<8x8x128xf32>
    %48 = vector.extract_strided_slice %2 {offsets = [4, 0, 0], sizes = [1, 1, 128], strides = [1, 1, 1]} : vector<9x1x128xf32> to vector<1x1x128xf32>
    %49 = vector.shape_cast %48 : vector<1x1x128xf32> to vector<1x128xf32>
    %50 = vector.shape_cast %49 : vector<1x128xf32> to vector<1x1x128xf32>
    %51 = vector.broadcast %50 : vector<1x1x128xf32> to vector<8x8x128xf32>
    %52 = arith.mulf %47, %51 : vector<8x8x128xf32>
    %53 = arith.addf %43, %52 : vector<8x8x128xf32>
    %c18_i32_17 = arith.constant 18 : i32
    %54 = arith.addi %c18_i32_17, %1 : i32
    %c0_18 = arith.constant 0 : index
    %55 = arith.index_cast %54 : i32 to index
    %c1_19 = arith.constant 1 : index
    %c0_20 = arith.constant 0 : index
    %56 = vector.load %arg2[%c0_18, %55, %c1_19, %c0_20] : memref<1x36x9x128xf32, #tpu.memory_space<vmem>>, vector<1x8x8x128xf32>
    %57 = vector.shape_cast %56 : vector<1x8x8x128xf32> to vector<8x8x128xf32>
    %58 = vector.extract_strided_slice %2 {offsets = [5, 0, 0], sizes = [1, 1, 128], strides = [1, 1, 1]} : vector<9x1x128xf32> to vector<1x1x128xf32>
    %59 = vector.shape_cast %58 : vector<1x1x128xf32> to vector<1x128xf32>
    %60 = vector.shape_cast %59 : vector<1x128xf32> to vector<1x1x128xf32>
    %61 = vector.broadcast %60 : vector<1x1x128xf32> to vector<8x8x128xf32>
    %62 = arith.mulf %57, %61 : vector<8x8x128xf32>
    %63 = arith.addf %53, %62 : vector<8x8x128xf32>
    %c1_i32 = arith.constant 1 : i32
    %64 = arith.addi %c1_i32, %1 : i32
    %c0_21 = arith.constant 0 : index
    %65 = arith.index_cast %64 : i32 to index
    %c0_22 = arith.constant 0 : index
    %c0_23 = arith.constant 0 : index
    %66 = vector.load %arg2[%c0_21, %65, %c0_22, %c0_23] : memref<1x36x9x128xf32, #tpu.memory_space<vmem>>, vector<1x8x8x128xf32>
    %67 = vector.shape_cast %66 : vector<1x8x8x128xf32> to vector<8x8x128xf32>
    %68 = vector.extract_strided_slice %2 {offsets = [6, 0, 0], sizes = [1, 1, 128], strides = [1, 1, 1]} : vector<9x1x128xf32> to vector<1x1x128xf32>
    %69 = vector.shape_cast %68 : vector<1x1x128xf32> to vector<1x128xf32>
    %70 = vector.shape_cast %69 : vector<1x128xf32> to vector<1x1x128xf32>
    %71 = vector.broadcast %70 : vector<1x1x128xf32> to vector<8x8x128xf32>
    %72 = arith.mulf %67, %71 : vector<8x8x128xf32>
    %73 = arith.addf %63, %72 : vector<8x8x128xf32>
    %c10_i32 = arith.constant 10 : i32
    %74 = arith.addi %c10_i32, %1 : i32
    %c0_24 = arith.constant 0 : index
    %75 = arith.index_cast %74 : i32 to index
    %c0_25 = arith.constant 0 : index
    %c0_26 = arith.constant 0 : index
    %76 = vector.load %arg2[%c0_24, %75, %c0_25, %c0_26] : memref<1x36x9x128xf32, #tpu.memory_space<vmem>>, vector<1x8x8x128xf32>
    %77 = vector.shape_cast %76 : vector<1x8x8x128xf32> to vector<8x8x128xf32>
    %78 = vector.extract_strided_slice %2 {offsets = [7, 0, 0], sizes = [1, 1, 128], strides = [1, 1, 1]} : vector<9x1x128xf32> to vector<1x1x128xf32>
    %79 = vector.shape_cast %78 : vector<1x1x128xf32> to vector<1x128xf32>
    %80 = vector.shape_cast %79 : vector<1x128xf32> to vector<1x1x128xf32>
    %81 = vector.broadcast %80 : vector<1x1x128xf32> to vector<8x8x128xf32>
    %82 = arith.mulf %77, %81 : vector<8x8x128xf32>
    %83 = arith.addf %73, %82 : vector<8x8x128xf32>
    %c1_i32_27 = arith.constant 1 : i32
    %84 = arith.addi %c1_i32_27, %1 : i32
    %c0_28 = arith.constant 0 : index
    %85 = arith.index_cast %84 : i32 to index
    %c1_29 = arith.constant 1 : index
    %c0_30 = arith.constant 0 : index
    %86 = vector.load %arg2[%c0_28, %85, %c1_29, %c0_30] : memref<1x36x9x128xf32, #tpu.memory_space<vmem>>, vector<1x8x8x128xf32>
    %87 = vector.shape_cast %86 : vector<1x8x8x128xf32> to vector<8x8x128xf32>
    %88 = vector.extract_strided_slice %2 {offsets = [8, 0, 0], sizes = [1, 1, 128], strides = [1, 1, 1]} : vector<9x1x128xf32> to vector<1x1x128xf32>
    %89 = vector.shape_cast %88 : vector<1x1x128xf32> to vector<1x128xf32>
    %90 = vector.shape_cast %89 : vector<1x128xf32> to vector<1x1x128xf32>
    %91 = vector.broadcast %90 : vector<1x1x128xf32> to vector<8x8x128xf32>
    %92 = arith.mulf %87, %91 : vector<8x8x128xf32>
    %93 = arith.addf %83, %92 : vector<8x8x128xf32>
    %94 = vector.shape_cast %93 : vector<8x8x128xf32> to vector<64x128xf32>
    %c0_31 = arith.constant 0 : index
    %c0_32 = arith.constant 0 : index
    %95 = vector.load %arg4[%c0_31, %c0_32] : memref<128x128xf32, #tpu.memory_space<vmem>>, vector<128x128xf32>
    %cst_33 = arith.constant dense<0.000000e+00> : vector<64x128xf32>
    %96 = tpu.matmul %94, %95, %cst_33 {dimension_numbers = #tpu.dot_dimension_numbers<[1], [0], [0], [1], [0, 0, 1, 1], [], []>} : vector<64x128xf32>, vector<128x128xf32>, vector<64x128xf32> -> vector<64x128xf32>
    %97 = vector.shape_cast %96 : vector<64x128xf32> to vector<8x8x128xf32>
    %c0_34 = arith.constant 0 : index
    %c0_35 = arith.constant 0 : index
    %c0_36 = arith.constant 0 : index
    %c0_37 = arith.constant 0 : index
    %98 = vector.load %arg5[%c0_34, %c0_35, %c0_36, %c0_37] : memref<1x8x8x128xf32, #tpu.memory_space<vmem>>, vector<1x8x8x128xf32>
    %99 = vector.shape_cast %98 : vector<1x8x8x128xf32> to vector<8x8x128xf32>
    %100 = vector.shape_cast %97 : vector<8x8x128xf32> to vector<1x8x8x128xf32>
    tpu.vector_store %arg5[%c0_34, %c0_35, %c0_36, %c0_37], %100 {strides = array<i32>} : memref<1x8x8x128xf32, #tpu.memory_space<vmem>>, vector<1x8x8x128xf32>,
    %c0_i32_38 = arith.constant 0 : i32
    %101 = arith.cmpi eq, %arg1, %c0_i32_38 : i32
    %102 = arith.extui %101 : i1 to i32
    %c0_i32_39 = arith.constant 0 : i32
    %103 = arith.cmpi ne, %102, %c0_i32_39 : i32
    scf.if %103 {
      %cst_54 = arith.constant 0.000000e+00 : f32
      %121 = vector.broadcast %cst_54 : f32 to vector<2x128xf32>
      %c0_55 = arith.constant 0 : index
      %c0_56 = arith.constant 0 : index
      %c0_57 = arith.constant 0 : index
      %122 = vector.load %arg6[%c0_55, %c0_56, %c0_57] : memref<1x2x128xf32, #tpu.memory_space<vmem>>, vector<1x2x128xf32>
      %123 = vector.shape_cast %122 : vector<1x2x128xf32> to vector<2x128xf32>
      %124 = vector.shape_cast %121 : vector<2x128xf32> to vector<1x2x128xf32>
      tpu.vector_store %arg6[%c0_55, %c0_56, %c0_57], %124 {strides = array<i32>} : memref<1x2x128xf32, #tpu.memory_space<vmem>>, vector<1x2x128xf32>,
    } else {
    }
    %c0_40 = arith.constant 0 : index
    %c0_41 = arith.constant 0 : index
    %c0_42 = arith.constant 0 : index
    %104 = vector.load %arg6[%c0_40, %c0_41, %c0_42] : memref<1x2x128xf32, #tpu.memory_space<vmem>>, vector<1x1x128xf32>
    %105 = vector.shape_cast %104 : vector<1x1x128xf32> to vector<1x128xf32>
    %cst_43 = arith.constant dense<0.000000e+00> : vector<128xf32>
    %106 = vector.multi_reduction <add>, %96, %cst_43 [0] : vector<64x128xf32> to vector<128xf32>
    %107 = vector.shape_cast %106 : vector<128xf32> to vector<1x128xf32>
    %108 = arith.addf %105, %107 : vector<1x128xf32>
    %c0_44 = arith.constant 0 : index
    %c0_45 = arith.constant 0 : index
    %c0_46 = arith.constant 0 : index
    %109 = vector.load %arg6[%c0_44, %c0_45, %c0_46] : memref<1x2x128xf32, #tpu.memory_space<vmem>>, vector<1x1x128xf32>
    %110 = vector.shape_cast %109 : vector<1x1x128xf32> to vector<1x128xf32>
    %111 = vector.shape_cast %108 : vector<1x128xf32> to vector<1x1x128xf32>
    tpu.vector_store %arg6[%c0_44, %c0_45, %c0_46], %111 {strides = array<i32>} : memref<1x2x128xf32, #tpu.memory_space<vmem>>, vector<1x1x128xf32>,
    %c0_47 = arith.constant 0 : index
    %c1_48 = arith.constant 1 : index
    %c0_49 = arith.constant 0 : index
    %112 = vector.load %arg6[%c0_47, %c1_48, %c0_49] : memref<1x2x128xf32, #tpu.memory_space<vmem>>, vector<1x1x128xf32>
    %113 = vector.shape_cast %112 : vector<1x1x128xf32> to vector<1x128xf32>
    %114 = arith.mulf %96, %96 : vector<64x128xf32>
    %cst_50 = arith.constant dense<0.000000e+00> : vector<128xf32>
    %115 = vector.multi_reduction <add>, %114, %cst_50 [0] : vector<64x128xf32> to vector<128xf32>
    %116 = vector.shape_cast %115 : vector<128xf32> to vector<1x128xf32>
    %117 = arith.addf %113, %116 : vector<1x128xf32>
    %c0_51 = arith.constant 0 : index
    %c1_52 = arith.constant 1 : index
    %c0_53 = arith.constant 0 : index
    %118 = vector.load %arg6[%c0_51, %c1_52, %c0_53] : memref<1x2x128xf32, #tpu.memory_space<vmem>>, vector<1x1x128xf32>
    %119 = vector.shape_cast %118 : vector<1x1x128xf32> to vector<1x128xf32>
    %120 = vector.shape_cast %117 : vector<1x128xf32> to vector<1x1x128xf32>
    tpu.vector_store %arg6[%c0_51, %c1_52, %c0_53], %120 {strides = array<i32>} : memref<1x2x128xf32, #tpu.memory_space<vmem>>, vector<1x1x128xf32>,
    return
  }
  func.func @transform_0(%arg0: i32, %arg1: i32) -> (i32, i32, i32, i32) {
    %c0_i32 = arith.constant 0 : i32
    %c0_i32_0 = arith.constant 0 : i32
    %c0_i32_1 = arith.constant 0 : i32
    %c0_i32_2 = arith.constant 0 : i32
    return %arg0, %c0_i32, %c0_i32_0, %c0_i32_1 : i32, i32, i32, i32
  }
  func.func @transform_1(%arg0: i32, %arg1: i32) -> (i32, i32, i32) {
    %c0_i32 = arith.constant 0 : i32
    %c0_i32_0 = arith.constant 0 : i32
    %c0_i32_1 = arith.constant 0 : i32
    %c0_i32_2 = arith.constant 0 : i32
    return %c0_i32, %c0_i32_0, %c0_i32_1 : i32, i32, i32
  }
  func.func @transform_2(%arg0: i32, %arg1: i32) -> (i32, i32) {
    %c0_i32 = arith.constant 0 : i32
    %c0_i32_0 = arith.constant 0 : i32
    %c0_i32_1 = arith.constant 0 : i32
    return %c0_i32, %c0_i32_0 : i32, i32
  }
  func.func @transform_3(%arg0: i32, %arg1: i32) -> (i32, i32, i32, i32) {
    %c0_i32 = arith.constant 0 : i32
    %c0_i32_0 = arith.constant 0 : i32
    %c0_i32_1 = arith.constant 0 : i32
    return %arg0, %arg1, %c0_i32, %c0_i32_0 : i32, i32, i32, i32
  }
  func.func @transform_4(%arg0: i32, %arg1: i32) -> (i32, i32, i32) {
    %c0_i32 = arith.constant 0 : i32
    %c0_i32_0 = arith.constant 0 : i32
    %c0_i32_1 = arith.constant 0 : i32
    return %arg0, %c0_i32, %c0_i32_0 : i32, i32, i32
  }
}

module attributes {stable_mosaic.version = 11 : i64} {
  func.func @_bn_add_act_kernel(%arg0: i32, %arg1: i32, %arg2: memref<1x8x8x128xf32, #tpu.memory_space<vmem>>, %arg3: memref<1x128xf32, #tpu.memory_space<vmem>>, %arg4: memref<1x128xf32, #tpu.memory_space<vmem>>, %arg5: memref<1x8x8x128xf32, #tpu.memory_space<vmem>>, %arg6: memref<1x128xf32, #tpu.memory_space<vmem>>, %arg7: memref<1x128xf32, #tpu.memory_space<vmem>>, %arg8: memref<1x8x8x128xf32, #tpu.memory_space<vmem>>) attributes {dimension_semantics = [#tpu.dimension_semantics<parallel>, #tpu.dimension_semantics<parallel>], iteration_bounds = array<i64: 2, 1>, scalar_prefetch = 0 : i64, scratch_operands = 0 : i64, tpu.core_type = #tpu.core_type<tc>, window_params = [{transform_indices = @transform_0, window_bounds = array<i64: 1, 8, 8, 128>}, {pipeline_mode = #tpu.pipeline_mode<synchronous>, transform_indices = @transform_1, window_bounds = array<i64: 1, 128>}, {pipeline_mode = #tpu.pipeline_mode<synchronous>, transform_indices = @transform_2, window_bounds = array<i64: 1, 128>}, {transform_indices = @transform_3, window_bounds = array<i64: 1, 8, 8, 128>}, {pipeline_mode = #tpu.pipeline_mode<synchronous>, transform_indices = @transform_4, window_bounds = array<i64: 1, 128>}, {pipeline_mode = #tpu.pipeline_mode<synchronous>, transform_indices = @transform_5, window_bounds = array<i64: 1, 128>}, {transform_indices = @transform_6, window_bounds = array<i64: 1, 8, 8, 128>}]} {
    %c0 = arith.constant 0 : index
    %c0_0 = arith.constant 0 : index
    %c0_1 = arith.constant 0 : index
    %c0_2 = arith.constant 0 : index
    %0 = vector.load %arg2[%c0, %c0_0, %c0_1, %c0_2] : memref<1x8x8x128xf32, #tpu.memory_space<vmem>>, vector<1x8x8x128xf32>
    %1 = vector.shape_cast %0 : vector<1x8x8x128xf32> to vector<8x8x128xf32>
    %c0_3 = arith.constant 0 : index
    %c0_4 = arith.constant 0 : index
    %2 = vector.load %arg3[%c0_3, %c0_4] : memref<1x128xf32, #tpu.memory_space<vmem>>, vector<1x128xf32>
    %3 = vector.shape_cast %2 : vector<1x128xf32> to vector<1x1x128xf32>
    %4 = vector.broadcast %3 : vector<1x1x128xf32> to vector<8x8x128xf32>
    %5 = arith.mulf %1, %4 : vector<8x8x128xf32>
    %c0_5 = arith.constant 0 : index
    %c0_6 = arith.constant 0 : index
    %6 = vector.load %arg4[%c0_5, %c0_6] : memref<1x128xf32, #tpu.memory_space<vmem>>, vector<1x128xf32>
    %7 = vector.shape_cast %6 : vector<1x128xf32> to vector<1x1x128xf32>
    %8 = vector.broadcast %7 : vector<1x1x128xf32> to vector<8x8x128xf32>
    %9 = arith.addf %5, %8 : vector<8x8x128xf32>
    %c0_7 = arith.constant 0 : index
    %c0_8 = arith.constant 0 : index
    %c0_9 = arith.constant 0 : index
    %c0_10 = arith.constant 0 : index
    %10 = vector.load %arg5[%c0_7, %c0_8, %c0_9, %c0_10] : memref<1x8x8x128xf32, #tpu.memory_space<vmem>>, vector<1x8x8x128xf32>
    %11 = vector.shape_cast %10 : vector<1x8x8x128xf32> to vector<8x8x128xf32>
    %c0_11 = arith.constant 0 : index
    %c0_12 = arith.constant 0 : index
    %12 = vector.load %arg6[%c0_11, %c0_12] : memref<1x128xf32, #tpu.memory_space<vmem>>, vector<1x128xf32>
    %13 = vector.shape_cast %12 : vector<1x128xf32> to vector<1x1x128xf32>
    %14 = vector.broadcast %13 : vector<1x1x128xf32> to vector<8x8x128xf32>
    %15 = arith.mulf %11, %14 : vector<8x8x128xf32>
    %c0_13 = arith.constant 0 : index
    %c0_14 = arith.constant 0 : index
    %16 = vector.load %arg7[%c0_13, %c0_14] : memref<1x128xf32, #tpu.memory_space<vmem>>, vector<1x128xf32>
    %17 = vector.shape_cast %16 : vector<1x128xf32> to vector<1x1x128xf32>
    %18 = vector.broadcast %17 : vector<1x1x128xf32> to vector<8x8x128xf32>
    %19 = arith.addf %15, %18 : vector<8x8x128xf32>
    %20 = arith.addf %9, %19 : vector<8x8x128xf32>
    %cst = arith.constant 0.000000e+00 : f32
    %21 = vector.broadcast %cst : f32 to vector<8x8x128xf32>
    %22 = arith.maximumf %20, %21 : vector<8x8x128xf32>
    %c0_15 = arith.constant 0 : index
    %c0_16 = arith.constant 0 : index
    %c0_17 = arith.constant 0 : index
    %c0_18 = arith.constant 0 : index
    %23 = vector.load %arg8[%c0_15, %c0_16, %c0_17, %c0_18] : memref<1x8x8x128xf32, #tpu.memory_space<vmem>>, vector<1x8x8x128xf32>
    %24 = vector.shape_cast %23 : vector<1x8x8x128xf32> to vector<8x8x128xf32>
    %25 = vector.shape_cast %22 : vector<8x8x128xf32> to vector<1x8x8x128xf32>
    tpu.vector_store %arg8[%c0_15, %c0_16, %c0_17, %c0_18], %25 {strides = array<i32>} : memref<1x8x8x128xf32, #tpu.memory_space<vmem>>, vector<1x8x8x128xf32>,
    return
  }
  func.func @transform_0(%arg0: i32, %arg1: i32) -> (i32, i32, i32, i32) {
    %c0_i32 = arith.constant 0 : i32
    %c0_i32_0 = arith.constant 0 : i32
    %c0_i32_1 = arith.constant 0 : i32
    return %arg0, %arg1, %c0_i32, %c0_i32_0 : i32, i32, i32, i32
  }
  func.func @transform_1(%arg0: i32, %arg1: i32) -> (i32, i32) {
    %c0_i32 = arith.constant 0 : i32
    %c0_i32_0 = arith.constant 0 : i32
    %c0_i32_1 = arith.constant 0 : i32
    return %c0_i32, %c0_i32_0 : i32, i32
  }
  func.func @transform_2(%arg0: i32, %arg1: i32) -> (i32, i32) {
    %c0_i32 = arith.constant 0 : i32
    %c0_i32_0 = arith.constant 0 : i32
    %c0_i32_1 = arith.constant 0 : i32
    return %c0_i32, %c0_i32_0 : i32, i32
  }
  func.func @transform_3(%arg0: i32, %arg1: i32) -> (i32, i32, i32, i32) {
    %c0_i32 = arith.constant 0 : i32
    %c0_i32_0 = arith.constant 0 : i32
    %c0_i32_1 = arith.constant 0 : i32
    return %arg0, %arg1, %c0_i32, %c0_i32_0 : i32, i32, i32, i32
  }
  func.func @transform_4(%arg0: i32, %arg1: i32) -> (i32, i32) {
    %c0_i32 = arith.constant 0 : i32
    %c0_i32_0 = arith.constant 0 : i32
    %c0_i32_1 = arith.constant 0 : i32
    return %c0_i32, %c0_i32_0 : i32, i32
  }
  func.func @transform_5(%arg0: i32, %arg1: i32) -> (i32, i32) {
    %c0_i32 = arith.constant 0 : i32
    %c0_i32_0 = arith.constant 0 : i32
    %c0_i32_1 = arith.constant 0 : i32
    return %c0_i32, %c0_i32_0 : i32, i32
  }
  func.func @transform_6(%arg0: i32, %arg1: i32) -> (i32, i32, i32, i32) {
    %c0_i32 = arith.constant 0 : i32
    %c0_i32_0 = arith.constant 0 : i32
    %c0_i32_1 = arith.constant 0 : i32
    return %arg0, %arg1, %c0_i32, %c0_i32_0 : i32, i32, i32, i32
  }
}

</mosaic_0001>

<bundles_post_ra>
// kernel: xception_block.8
= control target key start
LH: loop header
LB: loop body
LE: loop exit
PB: predicated region body
PF: predicated region fallthrough
CT: control target
= control target key end

     0   :  { %s525_s12 = smov 0   ;;  %s527_s13 = smov 0   ;;  %s654_s0 = inlined_call_operand.vmem [shape: f32[2,16,16,128], index: 0, kind: input, shape index: {}]   ;;  %s655_s1 = inlined_call_operand.vmem [shape: f32[1,128], index: 1, kind: input, shape index: {}]   ;;  %s656_s2 = inlined_call_operand.vmem [shape: f32[1,128], index: 2, kind: input, shape index: {}]   ;;  %s657_s3 = inlined_call_operand.vmem [shape: f32[2,16,16,128], index: 3, kind: output, shape index: {}]  }
   0x1   :  { %s529_s14 = smov 0   ;;  %s531_s15 = smov 0  }
   0x2   :  { %s533_s16 = smov 0  }
   0x3 LB: > { %s22_s17 = sadd.s32 1, %s495_s14  ;;  %s25_s18 = sadd.s32 1, %s499_s15  ;;  %s503_s16 = sphi %s533_s16, %s13_s16   ;;  %s499_s15 = sphi %s531_s15, %s661_s15   ;;  %s495_s14 = sphi %s529_s14, %s660_s14   ;;  %s491_s13 = sphi %s527_s13, %s659_s13   ;;  %s487_s12 = sphi %s525_s12, %s658_s12  }
   0x4   : > { %p23_p0 = scmp.ge.s32.totalorder %s22_s17, 2  ;;  %p412_p1 = scmp.ge.s32.totalorder %s503_s16, 1 }
   0x5   : > { %p159_p2 = scmp.lt.s32.totalorder %s503_s16, 5 }
   0x6   : > { %s663_s17 = smov (%p23_p0, %s22_s17), 0  ;;  %s665_s18 = smov (!%p23_p0, %s25_s18), %s499_s15 }
   0x7   : > { %p160_p3 = pnand %p412_p1, %p159_p2  ;;  %p27_p4 = scmp.ge.s32.totalorder %s665_s18, 2 }
   0x8   : > { %s413_s19 = sshll.u32 (!%p160_p3), %s487_s12, 3  ;;  %p194_p5 = scmp.lt.s32.totalorder (!%p160_p3), %s491_s13, 1  ;;  %v558_v0 = vld [vmem:[%s655_s1] ss:$0 sm:$0xff] (!%p160_p3) }
   0x9   : > { %s667_s18 = smov (%p27_p4, %s665_s18), 0  ;;  %163 = sbr.rel (%p160_p3) target bundleno = 39 (0x27), region = 32 }
   0xa   : > { %p196_p6 = scmp.lt.s32.totalorder (!%p160_p3), %s413_s19, 15  ;;  %v568_v1 = vld [vmem:[%s656_s2] ss:$0 sm:$0xff] (!%p160_p3) }
  0x10   : > { %s669_s13 = smov (!%p194_p5, %s491_s13), 1  ;;  %s671_s19 = smov (!%p196_p6, %s413_s19), 15 }
  0x11   : > { %s415_s20 = sshll.u32 %s669_s13, 5  ;;  %s414_s21 = sshll.u32 %s671_s19, 1 }
  0x12   : > { %s200_s22 = sadd.s32 %s415_s20, %s414_s21 }
  0x13   : > { %s416_s23 = sshll.u32 %s200_s22, 3 }
  0x14   : > { %s563_s28 = scalar_lea.vmem %s654_s0, %s416_s23  ;;  %s591_s6 = scalar_lea.vmem %s657_s3, %s416_s23 }
  0x15   : > { %v215_v2 = vld [vmem:[%s563_s28] sm:$0xff]  ;;  %v216_v3 = vld [vmem:[%s563_s28 + $0x8] sm:$0xff]  ;;  %v217_v4 = vld [vmem:[%s563_s28 + $0x10] sm:$0xff] }
  0x16   : > { %v238_v5 = vmul.f32 %v558_v0, %v215_v2  ;;  %v239_v6 = vmul.f32 %v558_v0, %v216_v3  ;;  %v240_v7 = vmul.f32 %v558_v0, %v217_v4  ;;  %v218_v8 = vld [vmem:[%s563_s28 + $0x18] sm:$0xff]  ;;  %v219_v9 = vld [vmem:[%s563_s28 + $0x20] sm:$0xff]  ;;  %v220_v10 = vld [vmem:[%s563_s28 + $0x28] sm:$0xff] }
  0x17   : > { %v241_v11 = vmul.f32 %v558_v0, %v218_v8  ;;  %v242_v12 = vmul.f32 %v558_v0, %v219_v9  ;;  %v243_v13 = vmul.f32 %v558_v0, %v220_v10  ;;  %v221_v14 = vld [vmem:[%s563_s28 + $0x30] sm:$0xff]  ;;  %v222_v15 = vld [vmem:[%s563_s28 + $0x38] sm:$0xff]  ;;  %v223_v24 = vld [vmem:[%s563_s28 + $0x40] sm:$0xff] }
  0x18   : > { %v261_v16 = vadd.f32 %v568_v1, %v238_v5  ;;  %v262_v17 = vadd.f32 %v568_v1, %v239_v6  ;;  %v263_v18 = vadd.f32 %v568_v1, %v240_v7  ;;  %v244_v19 = vmul.f32 %v558_v0, %v221_v14  ;;  %v224_v25 = vld [vmem:[%s563_s28 + $0x48] sm:$0xff]  ;;  %v225_v26 = vld [vmem:[%s563_s28 + $0x50] sm:$0xff]  ;;  %v226_v31 = vld [vmem:[%s563_s28 + $0x58] sm:$0xff] }
  0x19   : > { %v264_v20 = vadd.f32 %v568_v1, %v241_v11  ;;  %v265_v21 = vadd.f32 %v568_v1, %v242_v12  ;;  %v266_v22 = vadd.f32 %v568_v1, %v243_v13  ;;  %v245_v23 = vmul.f32 %v558_v0, %v222_v15  ;;  %v227_v32 = vld [vmem:[%s563_s28 + $0x60] sm:$0xff]  ;;  %v228_v33 = vld [vmem:[%s563_s28 + $0x68] sm:$0xff]  ;;  %v229_v38 = vld [vmem:[%s563_s28 + $0x70] sm:$0xff] }
  0x1a   : > { %v277_v27 = vmax.f32 %v261_v16, 0.0  ;;  %v278_v28 = vmax.f32 %v262_v17, 0.0  ;;  %v279_v29 = vmax.f32 %v263_v18, 0.0  ;;  %v267_v30 = vadd.f32 %v568_v1, %v244_v19  ;;  %v230_v43 = vld [vmem:[%s563_s28 + $0x78] sm:$0xff] }
  0x1b   : > { %v280_v34 = vmax.f32 %v264_v20, 0.0  ;;  %v281_v35 = vmax.f32 %v265_v21, 0.0  ;;  %v282_v36 = vmax.f32 %v266_v22, 0.0  ;;  %v268_v37 = vadd.f32 %v568_v1, %v245_v23 }
  0x1c   : > { %293 = vst [vmem:[%s591_s6] sm:$0xff] %v277_v27  ;;  %294 = vst [vmem:[%s591_s6 + $0x8] sm:$0xff] %v278_v28  ;;  %v283_v39 = vmax.f32 %v267_v30, 0.0  ;;  %v246_v40 = vmul.f32 %v558_v0, %v223_v24  ;;  %v247_v41 = vmul.f32 %v558_v0, %v224_v25  ;;  %v248_v42 = vmul.f32 %v558_v0, %v225_v26 }
  0x1d   : > { %295 = vst [vmem:[%s591_s6 + $0x10] sm:$0xff] %v279_v29  ;;  %296 = vst [vmem:[%s591_s6 + $0x18] sm:$0xff] %v280_v34  ;;  %v284_v44 = vmax.f32 %v268_v37, 0.0  ;;  %v249_v45 = vmul.f32 %v558_v0, %v226_v31  ;;  %v250_v46 = vmul.f32 %v558_v0, %v227_v32  ;;  %v251_v47 = vmul.f32 %v558_v0, %v228_v33 }
  0x1e   : > { %297 = vst [vmem:[%s591_s6 + $0x20] sm:$0xff] %v281_v35  ;;  %298 = vst [vmem:[%s591_s6 + $0x28] sm:$0xff] %v282_v36  ;;  %v269_v48 = vadd.f32 %v568_v1, %v246_v40  ;;  %v270_v49 = vadd.f32 %v568_v1, %v247_v41  ;;  %v271_v50 = vadd.f32 %v568_v1, %v248_v42 }
  0x1f   : > { %299 = vst [vmem:[%s591_s6 + $0x30] sm:$0xff] %v283_v39  ;;  %v252_v51 = vmul.f32 %v558_v0, %v229_v38  ;;  %300 = vst [vmem:[%s591_s6 + $0x38] sm:$0xff] %v284_v44  ;;  %v272_v52 = vadd.f32 %v568_v1, %v249_v45  ;;  %v273_v53 = vadd.f32 %v568_v1, %v250_v46 }
  0x20   : > { %v274_v54 = vadd.f32 %v568_v1, %v251_v47  ;;  %v253_v55 = vmul.f32 %v558_v0, %v230_v43  ;;  %v285_v56 = vmax.f32 %v269_v48, 0.0  ;;  %v286_v57 = vmax.f32 %v270_v49, 0.0 }
  0x21   : > { %v287_v58 = vmax.f32 %v271_v50, 0.0  ;;  %v275_v59 = vadd.f32 %v568_v1, %v252_v51  ;;  %v288_v60 = vmax.f32 %v272_v52, 0.0  ;;  %v289_v61 = vmax.f32 %v273_v53, 0.0 }
  0x22   : > { %v290_v62 = vmax.f32 %v274_v54, 0.0  ;;  %v276_v63 = vadd.f32 %v568_v1, %v253_v55  ;;  %301 = vst [vmem:[%s591_s6 + $0x40] sm:$0xff] %v285_v56  ;;  %302 = vst [vmem:[%s591_s6 + $0x48] sm:$0xff] %v286_v57 }
  0x23   : > { %303 = vst [vmem:[%s591_s6 + $0x50] sm:$0xff] %v287_v58  ;;  %v291_v2 = vmax.f32 %v275_v59, 0.0  ;;  %304 = vst [vmem:[%s591_s6 + $0x58] sm:$0xff] %v288_v60 }
  0x24   : > { %305 = vst [vmem:[%s591_s6 + $0x60] sm:$0xff] %v289_v61  ;;  %306 = vst [vmem:[%s591_s6 + $0x68] sm:$0xff] %v290_v62  ;;  %v292_v0 = vmax.f32 %v276_v63, 0.0 }
  0x25   : > { %307 = vst [vmem:[%s591_s6 + $0x70] sm:$0xff] %v291_v2 }
  0x26   : > { %308 = vst [vmem:[%s591_s6 + $0x78] sm:$0xff] %v292_v0 }
  0x27 PF: > { %s13_s16 = sadd.s32 1, %s503_s16   ;;  %s658_s12 = smov %s495_s14 }
  0x28   : > { %p10_p7 = scmp.ge.s32.totalorder %s13_s16, 6   ;;  %s659_s13 = smov %s499_s15 }
  0x29   : > { %s660_s14 = smov %s663_s17  ;;  %s661_s15 = smov %s667_s18 }
  0x2a   :  { %12 = sbr.rel (!%p10_p7) target bundleno = 3 (0x3), region = 62 }

// kernel: xception_block.12
= control target key start
LH: loop header
LB: loop body
LE: loop exit
PB: predicated region body
PF: predicated region fallthrough
CT: control target
= control target key end

     0   :  { %s760_s15 = smov 0   ;;  %s762_s16 = smov 0   ;;  %s872_s0 = inlined_call_operand.vmem [shape: f32[2,8,8,128], index: 0, kind: input, shape index: {}]   ;;  %s873_s1 = inlined_call_operand.vmem [shape: f32[1,1,128], index: 1, kind: input, shape index: {}]   ;;  %s874_s2 = inlined_call_operand.vmem [shape: f32[128,128], index: 2, kind: input, shape index: {}]   ;;  %s875_s3 = inlined_call_operand.vmem [shape: f32[2,8,8,128], index: 3, kind: output, shape index: {0}]   ;;  %s876_s4 = inlined_call_operand.vmem [shape: f32[2,2,128], index: 4, kind: output, shape index: {1}]  }
   0x1   :  { %s764_s17 = smov 0  }
   0x2 LB: > { %s27_s18 = sadd.s32 1, %s728_s16  ;;  %p558_p0 = scmp.ge.s32.totalorder %s732_s17, 1  ;;  %s732_s17 = sphi %s764_s17, %s15_s17   ;;  %s728_s16 = sphi %s762_s16, %s878_s16   ;;  %s724_s15 = sphi %s760_s15, %s877_s15  }
   0x3   : > { %p29_p1 = scmp.ge.s32.totalorder %s27_s18, 2  ;;  %p179_p2 = scmp.lt.s32.totalorder %s732_s17, 3 }
   0x5   : > { %s880_s18 = smov (%p29_p1, %s27_s18), 0  ;;  %p180_p3 = pnand %p558_p0, %p179_p2 }
   0x6   : > { %v266_v0 = vld [vmem:[%s874_s2] sm:$0xff] (!%p180_p3)  ;;  %v267_v1 = vld [vmem:[%s874_s2 + $0x8] sm:$0xff] (!%p180_p3)  ;;  %v268_v2 = vld [vmem:[%s874_s2 + $0x10] sm:$0xff] (!%p180_p3)  ;;  %p213_p4 = scmp.lt.s32.totalorder (!%p180_p3), %s724_s15, 1  ;;  %v734_v41 = vmov (!%p180_p3), 0.0  }
   0x7   : > { %183 = sbr.rel (%p180_p3) target bundleno = 287 (0x11f), region = 32  ;;  %v637_v3 = vpack.c.bf16 (!%p180_p3), %v267_v1, %v266_v0  ;;  %v269_v4 = vld [vmem:[%s874_s2 + $0x18] sm:$0xff] (!%p180_p3)  ;;  %v270_v6 = vld [vmem:[%s874_s2 + $0x20] sm:$0xff] (!%p180_p3)  ;;  %v271_v7 = vld [vmem:[%s874_s2 + $0x28] sm:$0xff] (!%p180_p3) }
   0x8   : > { %v641_v5 = vpack.c.bf16 (!%p180_p3), %v269_v4, %v268_v2  ;;  %v645_v8 = vpack.c.bf16 (!%p180_p3), %v271_v7, %v270_v6  ;;  %v564_v9 = vld [vmem:[%s873_s1] ss:$0 sm:$0xff] (!%p180_p3)  ;;  %v272_v10 = vld [vmem:[%s874_s2 + $0x30] sm:$0xff] (!%p180_p3)  ;;  %v273_v11 = vld [vmem:[%s874_s2 + $0x38] sm:$0xff] (!%p180_p3) }
   0x9   : > { %638 = vmatprep.subr.bf16.mxu0 (!%p180_p3), %v637_v3  ;;  %669 = vmatprep.subr.bf16.mxu1 (!%p180_p3), %v637_v3  ;;  %v649_v16 = vpack.c.bf16 (!%p180_p3), %v273_v11, %v272_v10  ;;  %v274_v17 = vld [vmem:[%s874_s2 + $0x40] sm:$0xff] (!%p180_p3)  ;;  %v275_v18 = vld [vmem:[%s874_s2 + $0x48] sm:$0xff] (!%p180_p3)  ;;  %v276_v20 = vld [vmem:[%s874_s2 + $0x50] sm:$0xff] (!%p180_p3) }
   0xa   : > { %640 = vmatpush3.bf16.msra.mxu0 (!%p180_p3), %v637_v3  ;;  %677 = vmatpush3.bf16.msra.mxu1 (!%p180_p3), %v637_v3  ;;  %v653_v19 = vpack.c.bf16 (!%p180_p3), %v275_v18, %v274_v17  ;;  %v277_v21 = vld [vmem:[%s874_s2 + $0x58] sm:$0xff] (!%p180_p3)  ;;  %v278_v23 = vld [vmem:[%s874_s2 + $0x60] sm:$0xff] (!%p180_p3)  ;;  %v279_v24 = vld [vmem:[%s874_s2 + $0x68] sm:$0xff] (!%p180_p3) }
   0xb   : > { %642 = vmatprep.subr.bf16.mxu0 (!%p180_p3), %v641_v5  ;;  %670 = vmatprep.subr.bf16.mxu1 (!%p180_p3), %v641_v5  ;;  %v657_v22 = vpack.c.bf16 (!%p180_p3), %v277_v21, %v276_v20  ;;  %v661_v25 = vpack.c.bf16 (!%p180_p3), %v279_v24, %v278_v23  ;;  %v280_v26 = vld [vmem:[%s874_s2 + $0x70] sm:$0xff] (!%p180_p3)  ;;  %v281_v27 = vld [vmem:[%s874_s2 + $0x78] sm:$0xff] (!%p180_p3) }
   0xc   : > { %v665_v28 = vpack.c.bf16 (!%p180_p3), %v281_v27, %v280_v26 }
   0xe   : > { %s882_s15 = smov (!%p213_p4, %s724_s15), 1  ;;  %644 = vmatpush3.bf16.msra.mxu0 %v641_v5  ;;  %678 = vmatpush3.bf16.msra.mxu1 %v641_v5 }
   0xf   : > { %s567_s5 = sshll.u32 %s882_s15, 6  ;;  %646 = vmatprep.subr.bf16.mxu0 %v645_v8  ;;  %671 = vmatprep.subr.bf16.mxu1 %v645_v8  ;;  %s563_s11 = sshll.u32 %s882_s15, 1 }
  0x10   : > { %s804_s8 = scalar_lea.vmem %s872_s0, %s567_s5  ;;  %s851_s14 = scalar_lea.vmem %s876_s4, %s563_s11 }
  0x11   : > { %v236_v12 = vld [vmem:[%s804_s8] sm:$0xff]  ;;  %v237_v29 = vld [vmem:[%s804_s8 + $0x8] sm:$0xff]  ;;  %v238_v31 = vld [vmem:[%s804_s8 + $0x10] sm:$0xff]  ;;  %399 = vst [vmem:[%s851_s14] sm:$0x3] %v734_v41  ;;  %s226_s20 = scalar_lea.vmem %s875_s3, %s567_s5 }
  0x12   : > { %v250_v13 = vmul.f32 %v564_v9, %v236_v12  ;;  %v240_v14 = vld [vmem:[%s804_s8 + $0x20] sm:$0xff]  ;;  %648 = vmatpush3.bf16.msra.mxu0 %v645_v8  ;;  %679 = vmatpush3.bf16.msra.mxu1 %v645_v8  ;;  %v241_v30 = vld [vmem:[%s804_s8 + $0x28] sm:$0xff]  ;;  %v242_v32 = vld [vmem:[%s804_s8 + $0x30] sm:$0xff]  ;;  %v251_v33 = vmul.f32 %v564_v9, %v237_v29  ;;  %v252_v35 = vmul.f32 %v564_v9, %v238_v31 }
  0x13   : > { %v254_v15 = vmul.f32 %v564_v9, %v240_v14  ;;  %650 = vmatprep.subr.bf16.mxu0 %v649_v16  ;;  %672 = vmatprep.subr.bf16.mxu1 %v649_v16  ;;  %v255_v34 = vmul.f32 %v564_v9, %v241_v30  ;;  %v239_v36 = vld [vmem:[%s804_s8 + $0x18] sm:$0xff]  ;;  %v256_v37 = vmul.f32 %v564_v9, %v242_v32 }
  0x14   : > { %625 = vmatprep.mubr.f32.mxu0 %v250_v13  ;;  %v243_v38 = vld [vmem:[%s804_s8 + $0x38] sm:$0xff]  ;;  %v253_v39 = vmul.f32 %v564_v9, %v239_v36 }
  0x15   : > { %631 = vmatprep.mubr.f32.mxu1 %v254_v15  ;;  %v257_v40 = vmul.f32 %v564_v9, %v243_v38 }
  0x16   : > { %652 = vmatpush3.bf16.msra.mxu0 %v649_v16  ;;  %680 = vmatpush3.bf16.msra.mxu1 %v649_v16 }
  0x17   : > { %654 = vmatprep.subr.bf16.mxu0 %v653_v19  ;;  %673 = vmatprep.subr.bf16.mxu1 %v653_v19 }
  0x18   : > { %v400_v17 = vld [vmem:[%s851_s14] sm:$0x1]  ;;  %v416_v20 = vld [vmem:[%s851_s14 + $0x1] sm:$0x1] }
  0x1a   : > { %656 = vmatpush3.bf16.msra.mxu0 %v653_v19  ;;  %681 = vmatpush3.bf16.msra.mxu1 %v653_v19 }
  0x1b   : > { %658 = vmatprep.subr.bf16.mxu0 %v657_v22  ;;  %674 = vmatprep.subr.bf16.mxu1 %v657_v22 }
  0x1e   : > { %660 = vmatpush3.bf16.msra.mxu0 %v657_v22  ;;  %682 = vmatpush3.bf16.msra.mxu1 %v657_v22 }
  0x1f   : > { %662 = vmatprep.subr.bf16.mxu0 %v661_v25  ;;  %675 = vmatprep.subr.bf16.mxu1 %v661_v25 }
  0x22   : > { %664 = vmatpush3.bf16.msra.mxu0 %v661_v25  ;;  %683 = vmatpush3.bf16.msra.mxu1 %v661_v25 }
  0x23   : > { %666 = vmatprep.subr.bf16.mxu0 %v665_v28  ;;  %676 = vmatprep.subr.bf16.mxu1 %v665_v28 }
  0x26   : > { %668 = vmatpush3.bf16.msra.mxu0 %v665_v28  ;;  %684 = vmatpush3.bf16.msra.mxu1 %v665_v28 }
  0x29   : > { %626 = vmatmul.mubr.f32.vlgmr.msra.gmra.mrb[0].mxu0 %v251_v33  ;;  %632 = vmatmul.mubr.f32.vlgmr.msra.gmra.mrb[0].mxu1 %v255_v34 }
  0x2a   : > { %628 = vmatprep.mubr.f32.mxu0 %v252_v35  ;;  %634 = vmatprep.mubr.f32.mxu1 %v256_v37 }
  0x2d   : > { %629 = vmatmul.mubr.f32.gmra.mrb[2].mxu0 %v253_v39  ;;  %635 = vmatmul.mubr.f32.gmra.mrb[2].mxu1 %v257_v40 }
  0xfc   : > { %v627_v42 = vpop.f32.mrb[0].mxu0  ;;  %v633_v43 = vpop.f32.mrb[0].mxu1 }
  0xfd   : > { %388 = vst [vmem:[%s226_s20 + $0x8] sm:$0xff] %v627_v42  ;;  %v418_v44 = vmul.f32 %v627_v42, %v627_v42  ;;  %v348_v45 = vpop.f32.mrb[1].mxu0  ;;  %392 = vst [vmem:[%s226_s20 + $0x28] sm:$0xff] %v633_v43  ;;  %v368_v46 = vpop.f32.mrb[1].mxu1  ;;  %v422_v62 = vmul.f32 %v633_v43, %v633_v43 }
  0xfe   : > { %387 = vst [vmem:[%s226_s20] sm:$0xff] %v348_v45  ;;  %v401_v47 = vadd.f32 %v627_v42, %v348_v45  ;;  %v417_v48 = vmul.f32 %v348_v45, %v348_v45  ;;  %391 = vst [vmem:[%s226_s20 + $0x20] sm:$0xff] %v368_v46  ;;  %v421_v59 = vmul.f32 %v368_v46, %v368_v46 }
 0x100   : > { %v425_v49 = vadd.f32 %v418_v44, %v417_v48  ;;  %v630_v50 = vpop.f32.mrb[2].mxu0  ;;  %v636_v51 = vpop.f32.mrb[2].mxu1 }
 0x101   : > { %390 = vst [vmem:[%s226_s20 + $0x18] sm:$0xff] %v630_v50  ;;  %v358_v52 = vpop.f32.mrb[3].mxu0  ;;  %394 = vst [vmem:[%s226_s20 + $0x38] sm:$0xff] %v636_v51  ;;  %v378_v53 = vpop.f32.mrb[3].mxu1  ;;  %v420_v56 = vmul.f32 %v630_v50, %v630_v50  ;;  %v424_v4 = vmul.f32 %v636_v51, %v636_v51 }
 0x102   : > { %389 = vst [vmem:[%s226_s20 + $0x10] sm:$0xff] %v358_v52  ;;  %v402_v54 = vadd.f32 %v401_v47, %v358_v52  ;;  %v419_v55 = vmul.f32 %v358_v52, %v358_v52  ;;  %393 = vst [vmem:[%s226_s20 + $0x30] sm:$0xff] %v378_v53  ;;  %v423_v1 = vmul.f32 %v378_v53, %v378_v53 }
 0x104   : > { %v403_v57 = vadd.f32 %v630_v50, %v402_v54  ;;  %v426_v58 = vadd.f32 %v425_v49, %v419_v55 }
 0x106   : > { %v427_v60 = vadd.f32 %v426_v58, %v420_v56  ;;  %v404_v61 = vadd.f32 %v403_v57, %v368_v46 }
 0x108   : > { %v428_v63 = vadd.f32 %v427_v60, %v421_v59  ;;  %v405_v0 = vadd.f32 %v633_v43, %v404_v61 }
 0x10a   : > { %v406_v2 = vadd.f32 %v405_v0, %v378_v53  ;;  %v429_v3 = vadd.f32 %v428_v63, %v422_v62 }
 0x10c   : > { %v407_v5 = vadd.f32 %v636_v51, %v406_v2  ;;  %v430_v6 = vadd.f32 %v429_v3, %v423_v1 }
 0x10e   : > { %v408_v7 = vrot.slane %v407_v5, 4  ;;  %v431_v8 = vadd.f32 %v430_v6, %v424_v4 }
 0x110   : > { %v409_v9 = vadd.f32 %v408_v7, %v407_v5  ;;  %v432_v10 = vrot.slane %v431_v8, 4 }
 0x112   : > { %v410_v11 = vrot.slane %v409_v9, 2  ;;  %v433_v12 = vadd.f32 %v432_v10, %v431_v8 }
 0x114   : > { %v411_v13 = vadd.f32 %v410_v11, %v409_v9  ;;  %v434_v14 = vrot.slane %v433_v12, 2 }
 0x116   : > { %v412_v15 = vrot.slane %v411_v13, 1  ;;  %v435_v16 = vadd.f32 %v434_v14, %v433_v12 }
 0x118   : > { %v413_v18 = vadd.f32 %v412_v15, %v411_v13  ;;  %v436_v19 = vrot.slane %v435_v16, 1 }
 0x11a   : > { %v414_v21 = vadd.f32 %v413_v18, %v400_v17  ;;  %v437_v22 = vadd.f32 %v436_v19, %v435_v16 }
 0x11c   : > { %415 = vst [vmem:[%s851_s14] sm:$0x1] %v414_v21  ;;  %v438_v23 = vadd.f32 %v437_v22, %v416_v20 }
 0x11e   : > { %439 = vst [vmem:[%s851_s14 + $0x1] sm:$0x1] %v438_v23 }
 0x11f PF: > { %s15_s17 = sadd.s32 1, %s732_s17   ;;  %s877_s15 = smov %s728_s16 }
 0x120   : > { %p12_p5 = scmp.ge.s32.totalorder %s15_s17, 4   ;;  %s878_s16 = smov %s880_s18 }
 0x122   :  { %14 = sbr.rel (!%p12_p5) target bundleno = 2 (0x2), region = 79 }

// kernel: xception_block.7
= control target key start
LH: loop header
LB: loop body
LE: loop exit
PB: predicated region body
PF: predicated region fallthrough
CT: control target
= control target key end

     0   :  { %s1484_s15 = smov 0   ;;  %s1486_s16 = smov 0   ;;  %s2107_s0 = inlined_call_operand.vmem [shape: f32[2,18,18,128], index: 0, kind: input, shape index: {}]   ;;  %s2108_s1 = inlined_call_operand.vmem [shape: f32[9,1,128], index: 1, kind: input, shape index: {}]   ;;  %s2109_s2 = inlined_call_operand.vmem [shape: f32[128,128], index: 2, kind: input, shape index: {}]   ;;  %s2110_s3 = inlined_call_operand.vmem [shape: f32[2,16,16,128], index: 3, kind: output, shape index: {0}]   ;;  %s2111_s4 = inlined_call_operand.vmem [shape: f32[2,2,128], index: 4, kind: output, shape index: {1}]  }
   0x1   :  { %s1488_s17 = smov 0   ;;  %s1490_s18 = smov 0  }
   0x2   :  { %s1492_s19 = smov 0  }
   0x3 LB: > { %s24_s20 = sadd.s32 1, %s1448_s17  ;;  %s27_s21 = sadd.s32 1, %s1452_s18  ;;  %s1456_s19 = sphi %s1492_s19, %s15_s19   ;;  %s1452_s18 = sphi %s1490_s18, %s2115_s18   ;;  %s1448_s17 = sphi %s1488_s17, %s2114_s17   ;;  %s1444_s16 = sphi %s1486_s16, %s2113_s16   ;;  %s1440_s15 = sphi %s1484_s15, %s2112_s15  }
   0x4   : > { %p25_p0 = scmp.ge.s32.totalorder %s24_s20, 2  ;;  %p1119_p1 = scmp.ge.s32.totalorder %s1456_s19, 1 }
   0x5   : > { %p179_p2 = scmp.lt.s32.totalorder %s1456_s19, 5 }
   0x6   : > { %s2117_s20 = smov (%p25_p0, %s24_s20), 0  ;;  %s2119_s21 = smov (!%p25_p0, %s27_s21), %s1452_s18 }
   0x7   : > { %p180_p3 = pnand %p1119_p1, %p179_p2  ;;  %p29_p4 = scmp.ge.s32.totalorder %s2119_s21, 2 }
   0x8   : > { %v738_v0 = vld [vmem:[%s2109_s2] sm:$0xff] (!%p180_p3)  ;;  %v739_v1 = vld [vmem:[%s2109_s2 + $0x8] sm:$0xff] (!%p180_p3)  ;;  %v740_v2 = vld [vmem:[%s2109_s2 + $0x10] sm:$0xff] (!%p180_p3)  ;;  %p214_p5 = scmp.lt.s32.totalorder (!%p180_p3), %s1444_s16, 1  ;;  %s1127_s8 = smul.u32 (!%p180_p3), 192, %s1440_s15 }
   0x9   : > { %s2121_s21 = smov (%p29_p4, %s2119_s21), 0  ;;  %183 = sbr.rel (%p180_p3) target bundleno = 363 (0x16b), region = 32 }
   0xa   : > { %v1328_v3 = vpack.c.bf16 (!%p180_p3), %v739_v1, %v738_v0  ;;  %v741_v4 = vld [vmem:[%s2109_s2 + $0x18] sm:$0xff] (!%p180_p3)  ;;  %v742_v6 = vld [vmem:[%s2109_s2 + $0x20] sm:$0xff] (!%p180_p3)  ;;  %v743_v7 = vld [vmem:[%s2109_s2 + $0x28] sm:$0xff] (!%p180_p3)  ;;  %s1121_s29 = sshll.u32 (!%p180_p3), %s1440_s15, 3  ;;  %p1237_p7 = scmp.ne.s32.totalorder (!%p180_p3), %s1440_s15, 0 }
   0xb   : > { %v1332_v5 = vpack.c.bf16 (!%p180_p3), %v741_v4, %v740_v2  ;;  %v744_v8 = vld [vmem:[%s2109_s2 + $0x30] sm:$0xff] (!%p180_p3)  ;;  %v745_v9 = vld [vmem:[%s2109_s2 + $0x38] sm:$0xff] (!%p180_p3)  ;;  %v1336_v10 = vpack.c.bf16 (!%p180_p3), %v743_v7, %v742_v6  ;;  %v746_v11 = vld [vmem:[%s2109_s2 + $0x40] sm:$0xff] (!%p180_p3)  ;;  %p222_p6 = scmp.lt.s32.totalorder (!%p180_p3), %s1121_s29, 15 }
   0xc   : > { %1329 = vmatprep.subr.bf16.mxu0 (!%p180_p3), %v1328_v3  ;;  %1360 = vmatprep.subr.bf16.mxu1 (!%p180_p3), %v1328_v3  ;;  %v747_v12 = vld [vmem:[%s2109_s2 + $0x48] sm:$0xff] (!%p180_p3)  ;;  %v748_v13 = vld [vmem:[%s2109_s2 + $0x50] sm:$0xff] (!%p180_p3)  ;;  %v749_v14 = vld [vmem:[%s2109_s2 + $0x58] sm:$0xff] (!%p180_p3)  ;;  %v1340_v26 = vpack.c.bf16 (!%p180_p3), %v745_v9, %v744_v8 }
   0xd   : > { %1331 = vmatpush3.bf16.msra.mxu0 (!%p180_p3), %v1328_v3  ;;  %1368 = vmatpush3.bf16.msra.mxu1 (!%p180_p3), %v1328_v3  ;;  %v750_v15 = vld [vmem:[%s2109_s2 + $0x60] sm:$0xff] (!%p180_p3)  ;;  %v751_v16 = vld [vmem:[%s2109_s2 + $0x68] sm:$0xff] (!%p180_p3)  ;;  %v752_v17 = vld [vmem:[%s2109_s2 + $0x70] sm:$0xff] (!%p180_p3)  ;;  %v1615_v32 = vpack.c.bf16 (!%p180_p3), %v747_v12, %v746_v11  ;;  %v1617_v33 = vpack.c.bf16 (!%p180_p3), %v749_v14, %v748_v13 }
   0xe   : > { %1333 = vmatprep.subr.bf16.mxu0 (!%p180_p3), %v1332_v5  ;;  %1361 = vmatprep.subr.bf16.mxu1 (!%p180_p3), %v1332_v5  ;;  %v1577_v18 = vld [vmem:[%s2108_s1] ss:$0 sm:$0xff] (!%p180_p3)  ;;  %v1582_v19 = vld [vmem:[%s2108_s1 + $0x1] ss:$0 sm:$0xff] (!%p180_p3)  ;;  %v753_v20 = vld [vmem:[%s2109_s2 + $0x78] sm:$0xff] (!%p180_p3)  ;;  %v1619_v34 = vpack.c.bf16 (!%p180_p3), %v751_v16, %v750_v15 }
   0xf   : > { %v1590_v21 = vld [vmem:[%s2108_s1 + $0x2] ss:$0 sm:$0xff] (!%p180_p3)  ;;  %v1595_v22 = vld [vmem:[%s2108_s1 + $0x3] ss:$0 sm:$0xff] (!%p180_p3)  ;;  %v1602_v23 = vld [vmem:[%s2108_s1 + $0x4] ss:$0 sm:$0xff] (!%p180_p3)  ;;  %v1635_v39 = vpack.c.bf16 (!%p180_p3), %v753_v20, %v752_v17 }
  0x10   : > { %s2123_s16 = smov (!%p214_p5, %s1444_s16), 1  ;;  %v1609_v27 = vld [vmem:[%s2108_s1 + $0x5] ss:$0 sm:$0xff]  ;;  %v1624_v35 = vld [vmem:[%s2108_s1 + $0x6] ss:$0 sm:$0xff]  ;;  %s2125_s29 = smov (!%p222_p6, %s1121_s29), 15 }
  0x11   : > { %s1376_s13 = smul.u32 432, %s2123_s16  ;;  %s1125_s14 = sshll.u32 %s2123_s16, 1  ;;  %1335 = vmatpush3.bf16.msra.mxu0 %v1332_v5  ;;  %1369 = vmatpush3.bf16.msra.mxu1 %v1332_v5  ;;  %v1629_v36 = vld [vmem:[%s2108_s1 + $0x7] ss:$0 sm:$0xff]  ;;  %v1640_v40 = vld [vmem:[%s2108_s1 + $0x8] ss:$0 sm:$0xff] }
  0x12   : > { %s1566_s11 = scalar_lea.vmem %s2111_s4, %s1125_s14  ;;  %1337 = vmatprep.subr.bf16.mxu0 %v1336_v10  ;;  %1362 = vmatprep.subr.bf16.mxu1 %v1336_v10  ;;  %s1122_s14 = sshll.u32 %s2125_s29, 1 }
  0x13   : > { %s218_s25 = scalar_lea.vmem %s2107_s0, %s1376_s13  ;;  %s1123_s30 = sshll.u32 %s2123_s16, 5 }
  0x14   : > { %s1597_s9 = scalar_lea.vmem %s218_s25, %s1127_s8  ;;  %s226_s5 = sadd.s32 %s1123_s30, %s1122_s14 }
  0x15   : > { %v246_v24 = vld [vmem:[%s1597_s9] sm:$0xff]  ;;  %v1133_v31 = vld [vmem:[%s1597_s9 + $0x18] sm:$0xff]  ;;  %1339 = vmatpush3.bf16.msra.mxu0 %v1336_v10  ;;  %1370 = vmatpush3.bf16.msra.mxu1 %v1336_v10  ;;  %v1670_v54 = vld [vmem:[%s1597_s9 + $0x30] sm:$0xff]  ;;  %s1124_s6 = sshll.u32 %s226_s5, 3 }
  0x16   : > { %v300_v25 = vld [vmem:[%s1597_s9 + $0x1] sm:$0xff]  ;;  %v268_v28 = vmul.f32 %v1577_v18, %v246_v24  ;;  %v1633_v38 = vld [vmem:[%s1597_s9 + $0x19] sm:$0xff]  ;;  %v433_v42 = vmul.f32 %v1595_v22, %v1133_v31  ;;  %v1665_v51 = vmul.f32 %v1133_v31, %v1577_v18  ;;  %1341 = vmatprep.subr.bf16.mxu0 %v1340_v26  ;;  %1363 = vmatprep.subr.bf16.mxu1 %v1340_v26  ;;  %v1673_v55 = vld [vmem:[%s1597_s9 + $0x31] sm:$0xff] }
  0x17   : > { %v322_v29 = vmul.f32 %v1582_v19, %v300_v25  ;;  %v354_v30 = vld [vmem:[%s1597_s9 + $0x2] sm:$0xff]  ;;  %v487_v43 = vmul.f32 %v1602_v23, %v1633_v38  ;;  %v1652_v46 = vld [vmem:[%s1597_s9 + $0x1a] sm:$0xff]  ;;  %v1676_v56 = vld [vmem:[%s1597_s9 + $0x32] sm:$0xff]  ;;  %v598_v58 = vmul.f32 %v1624_v35, %v1670_v54  ;;  %v652_v59 = vmul.f32 %v1629_v36, %v1673_v55 }
  0x18   : > { %v376_v37 = vmul.f32 %v1590_v21, %v354_v30  ;;  %v1646_v44 = vld [vmem:[%s1597_s9 + $0x60] sm:$0xff]  ;;  %v1662_v50 = vld [vmem:[%s1597_s9 + $0x78] sm:$0xff]  ;;  %v541_v53 = vmul.f32 %v1609_v27, %v1652_v46  ;;  %v247_v63 = vld [vmem:[%s1597_s9 + $0x8] sm:$0xff]  ;;  %v706_v2 = vmul.f32 %v1640_v40, %v1676_v56 }
  0x19   : > { %v338_v41 = vadd.f32 %v322_v29, %v268_v28  ;;  %v1649_v45 = vld [vmem:[%s1597_s9 + $0x61] sm:$0xff]  ;;  %v276_v47 = vmul.f32 %v1577_v18, %v1646_v44  ;;  %v441_v61 = vmul.f32 %v1595_v22, %v1662_v50  ;;  %v1687_v62 = vld [vmem:[%s1597_s9 + $0x79] sm:$0xff]  ;;  %v301_v0 = vld [vmem:[%s1597_s9 + $0x9] sm:$0xff]  ;;  %v269_v4 = vmul.f32 %v1577_v18, %v247_v63  ;;  %1343 = vmatpush3.bf16.msra.mxu0 %v1340_v26 }
  0x1a   : > { %v330_v48 = vmul.f32 %v1582_v19, %v1649_v45  ;;  %v1659_v49 = vld [vmem:[%s1597_s9 + $0x62] sm:$0xff]  ;;  %v495_v3 = vmul.f32 %v1602_v23, %v1687_v62  ;;  %v355_v5 = vld [vmem:[%s1597_s9 + $0xa] sm:$0xff]  ;;  %1371 = vmatpush3.bf16.msra.mxu1 %v1340_v26  ;;  %v1701_v8 = vld [vmem:[%s1597_s9 + $0x7a] sm:$0xff]  ;;  %v323_v10 = vmul.f32 %v1582_v19, %v301_v0  ;;  %1345 = vmatprep.subr.bf16.mxu0 %v1615_v32 }
  0x1b   : > { %v392_v52 = vadd.f32 %v376_v37, %v338_v41  ;;  %v384_v57 = vmul.f32 %v1590_v21, %v1659_v49  ;;  %v1698_v6 = vld [vmem:[%s1597_s9 + $0x20] sm:$0xff]  ;;  %v1704_v9 = vld [vmem:[%s1597_s9 + $0x90] sm:$0xff]  ;;  %v377_v11 = vmul.f32 %v1590_v21, %v355_v5  ;;  %1364 = vmatprep.subr.bf16.mxu1 %v1615_v32  ;;  %v549_v13 = vmul.f32 %v1609_v27, %v1701_v8  ;;  %v1718_v16 = vld [vmem:[%s1597_s9 + $0x68] sm:$0xff] }
  0x1c   : > { %v346_v60 = vadd.f32 %v330_v48, %v276_v47  ;;  %v606_v14 = vmul.f32 %v1624_v35, %v1704_v9  ;;  %v1715_v15 = vld [vmem:[%s1597_s9 + $0x91] sm:$0xff]  ;;  %v1721_v17 = vld [vmem:[%s1597_s9 + $0x69] sm:$0xff]  ;;  %v339_v26 = vadd.f32 %v323_v10, %v269_v4  ;;  %v434_v28 = vmul.f32 %v1595_v22, %v1698_v6  ;;  %v1731_v29 = vld [vmem:[%s1597_s9 + $0x21] sm:$0xff] }
  0x1d   : > { %v449_v1 = vadd.f32 %v433_v42, %v392_v52  ;;  %v660_v24 = vmul.f32 %v1629_v36, %v1715_v15  ;;  %v1726_v25 = vld [vmem:[%s1597_s9 + $0x92] sm:$0xff]  ;;  %v1734_v30 = vld [vmem:[%s1597_s9 + $0x6a] sm:$0xff]  ;;  %v488_v41 = vmul.f32 %v1602_v23, %v1731_v29  ;;  %v277_v42 = vmul.f32 %v1577_v18, %v1718_v16  ;;  %1347 = vmatpush3.bf16.msra.mxu0 %v1615_v32  ;;  %v1748_v52 = vld [vmem:[%s1597_s9 + $0x22] sm:$0xff] }
  0x1e   : > { %v400_v7 = vadd.f32 %v384_v57, %v346_v60  ;;  %v714_v37 = vmul.f32 %v1640_v40, %v1726_v25  ;;  %1372 = vmatpush3.bf16.msra.mxu1 %v1615_v32  ;;  %v393_v48 = vadd.f32 %v377_v11, %v339_v26  ;;  %1349 = vmatprep.subr.bf16.mxu0 %v1617_v33  ;;  %v1759_v0 = vld [vmem:[%s1597_s9 + $0x38] sm:$0xff]  ;;  %v1767_v5 = vld [vmem:[%s1597_s9 + $0x81] sm:$0xff] }
  0x1f   : > { %v503_v12 = vadd.f32 %v487_v43, %v449_v1  ;;  %v1743_v43 = vld [vmem:[%s1597_s9 + $0x80] sm:$0xff]  ;;  %1365 = vmatprep.subr.bf16.mxu1 %v1617_v33  ;;  %v542_v60 = vmul.f32 %v1609_v27, %v1748_v52  ;;  %v496_v11 = vmul.f32 %v1602_v23, %v1767_v5 }
  0x20   : > { %v457_v20 = vadd.f32 %v441_v61, %v400_v7  ;;  %v385_v61 = vmul.f32 %v1590_v21, %v1734_v30  ;;  %v450_v63 = vadd.f32 %v434_v28, %v393_v48  ;;  %v1762_v1 = vld [vmem:[%s1597_s9 + $0x39] sm:$0xff]  ;;  %v442_v4 = vmul.f32 %v1595_v22, %v1743_v43  ;;  %v1778_v26 = vld [vmem:[%s1597_s9 + $0x82] sm:$0xff] }
  0x21   : > { %v557_v31 = vadd.f32 %v541_v53, %v503_v12  ;;  %v331_v53 = vmul.f32 %v1582_v19, %v1721_v17  ;;  %v599_v7 = vmul.f32 %v1624_v35, %v1759_v0  ;;  %v653_v10 = vmul.f32 %v1629_v36, %v1762_v1  ;;  %1351 = vmatpush3.bf16.msra.mxu0 %v1617_v33  ;;  %v1787_v48 = vld [vmem:[%s1597_s9 + $0x3a] sm:$0xff] }
  0x22   : > { %v511_v47 = vadd.f32 %v495_v3, %v457_v20  ;;  %1373 = vmatpush3.bf16.msra.mxu1 %v1617_v33  ;;  %1353 = vmatprep.subr.bf16.mxu0 %v1619_v34  ;;  %v550_v28 = vmul.f32 %v1609_v27, %v1778_v26 }
  0x23   : > { %v614_v57 = vadd.f32 %v598_v58, %v557_v31  ;;  %v347_v3 = vadd.f32 %v331_v53, %v277_v42  ;;  %1366 = vmatprep.subr.bf16.mxu1 %v1619_v34  ;;  %v324_v31 = vmul.f32 %v1633_v38, %v1582_v19 }
  0x24   : > { %v565_v32 = vadd.f32 %v549_v13, %v511_v47  ;;  %v504_v13 = vadd.f32 %v488_v41, %v450_v63  ;;  %v378_v41 = vmul.f32 %v1652_v46, %v1590_v21 }
  0x25   : > { %v668_v58 = vadd.f32 %v652_v59, %v614_v57  ;;  %v401_v20 = vadd.f32 %v385_v61, %v347_v3  ;;  %v340_v38 = vadd.f32 %v324_v31, %v1665_v51  ;;  %1355 = vmatpush3.bf16.msra.mxu0 %v1619_v34  ;;  %v1806_v61 = vld [vmem:[%s1597_s9 + $0x99] sm:$0xff]  ;;  %v489_v51 = vmul.f32 %v1673_v55, %v1602_v23 }
  0x26   : > { %v622_v12 = vadd.f32 %v606_v14, %v565_v32  ;;  %v558_v47 = vadd.f32 %v542_v60, %v504_v13  ;;  %v1790_v14 = vld [vmem:[%s1597_s9 + $0x98] sm:$0xff]  ;;  %1374 = vmatpush3.bf16.msra.mxu1 %v1619_v34  ;;  %1357 = vmatprep.subr.bf16.mxu0 %v1635_v39  ;;  %v661_v34 = vmul.f32 %v1629_v36, %v1806_v61 }
  0x27   : > { %v722_v59 = vadd.f32 %v706_v2, %v668_v58  ;;  %v458_v33 = vadd.f32 %v442_v4, %v401_v20  ;;  %v707_v2 = vmul.f32 %v1640_v40, %v1787_v48  ;;  %v607_v53 = vmul.f32 %v1624_v35, %v1790_v14  ;;  %1367 = vmatprep.subr.bf16.mxu1 %v1635_v39  ;;  %v1815_v4 = vld [vmem:[%s1597_s9 + $0x9a] sm:$0xff] }
  0x28   : > { %v676_v42 = vadd.f32 %v660_v24, %v622_v12  ;;  %v435_v24 = vmul.f32 %v1670_v54, %v1595_v22  ;;  %v615_v60 = vadd.f32 %v599_v7, %v558_v47  ;;  %v394_v32 = vadd.f32 %v378_v41, %v340_v38 }
  0x29   : > { %1304 = vmatprep.mubr.f32.mxu0 %v722_v59  ;;  %v512_v46 = vadd.f32 %v496_v11, %v458_v33  ;;  %v543_v7 = vmul.f32 %v1676_v56, %v1609_v27  ;;  %v332_v11 = vmul.f32 %v1687_v62, %v1582_v19  ;;  %1359 = vmatpush3.bf16.msra.mxu0 %v1635_v39  ;;  %v1828_v59 = vld [vmem:[%s1597_s9 + $0x48] sm:$0xff] }
  0x2a   : > { %v730_v57 = vadd.f32 %v714_v37, %v676_v42  ;;  %v669_v63 = vadd.f32 %v653_v10, %v615_v60  ;;  %v278_v37 = vmul.f32 %v1662_v50, %v1577_v18  ;;  %v451_v58 = vadd.f32 %v435_v24, %v394_v32  ;;  %1375 = vmatpush3.bf16.msra.mxu1 %v1635_v39  ;;  %v1833_v42 = vld [vmem:[%s1597_s9 + $0x49] sm:$0xff] }
  0x2b   : > { %v566_v3 = vadd.f32 %v550_v28, %v512_v46  ;;  %v386_v10 = vmul.f32 %v1701_v8, %v1590_v21  ;;  %v715_v20 = vmul.f32 %v1640_v40, %v1815_v4  ;;  %v600_v31 = vmul.f32 %v1624_v35, %v1828_v59  ;;  %v1844_v24 = vld [vmem:[%s1597_s9 + $0x4a] sm:$0xff] }
  0x2c   : > { %1316 = vmatprep.mubr.f32.mxu1 %v730_v57  ;;  %v723_v12 = vadd.f32 %v707_v2, %v669_v63  ;;  %v505_v28 = vadd.f32 %v489_v51, %v451_v58  ;;  %v348_v47 = vadd.f32 %v332_v11, %v278_v37  ;;  %v443_v33 = vmul.f32 %v1704_v9, %v1595_v22 }
  0x2d   : > { %v623_v13 = vadd.f32 %v607_v53, %v566_v3  ;;  %v654_v41 = vmul.f32 %v1629_v36, %v1833_v42  ;;  %v497_v2 = vmul.f32 %v1715_v15, %v1602_v23  ;;  %v271_v53 = vmul.f32 %v1698_v6, %v1577_v18 }
  0x2e   : > { %1305 = vmatmul.mubr.f32.vlgmr.msra.gmra.mrb[0].mxu0 %v723_v12  ;;  %v559_v38 = vadd.f32 %v543_v7, %v505_v28  ;;  %v402_v57 = vadd.f32 %v386_v10, %v348_v47  ;;  %v325_v60 = vmul.f32 %v1731_v29, %v1582_v19  ;;  %v379_v46 = vmul.f32 %v1748_v52, %v1590_v21 }
  0x2f   : > { %v677_v39 = vadd.f32 %v661_v34, %v623_v13  ;;  %v708_v51 = vmul.f32 %v1640_v40, %v1844_v24  ;;  %v551_v6 = vmul.f32 %v1726_v25, %v1609_v27  ;;  %v1855_v34 = vld [vmem:[%s1597_s9 + $0xa8] sm:$0xff]  ;;  %v436_v29 = vmul.f32 %v1759_v0, %v1595_v22 }
  0x30   : > { %v616_v63 = vadd.f32 %v600_v31, %v559_v38  ;;  %v459_v3 = vadd.f32 %v443_v33, %v402_v57  ;;  %v341_v37 = vadd.f32 %v325_v60, %v271_v53  ;;  %v608_v52 = vmul.f32 %v1624_v35, %v1855_v34  ;;  %v1868_v13 = vld [vmem:[%s1597_s9 + $0xa9] sm:$0xff] }
  0x31   : > { %v731_v32 = vadd.f32 %v715_v20, %v677_v39  ;;  %v490_v58 = vmul.f32 %v1762_v1, %v1602_v23  ;;  %v279_v7 = vmul.f32 %v1743_v43, %v1577_v18  ;;  %v333_v11 = vmul.f32 %v1767_v5, %v1582_v19  ;;  %v1871_v20 = vld [vmem:[%s1597_s9 + $0xaa] sm:$0xff] }
  0x32   : > { %v670_v10 = vadd.f32 %v654_v41, %v616_v63  ;;  %v513_v12 = vadd.f32 %v497_v2, %v459_v3  ;;  %v395_v28 = vadd.f32 %v379_v46, %v341_v37  ;;  %v387_v31 = vmul.f32 %v1778_v26, %v1590_v21  ;;  %v1884_v60 = vld [vmem:[%s1597_s9 + $0x50] sm:$0xff] }
  0x33   : > { %1317 = vmatmul.mubr.f32.vlgmr.msra.gmra.mrb[0].mxu1 %v731_v32  ;;  %v662_v47 = vmul.f32 %v1629_v36, %v1868_v13  ;;  %v716_v33 = vmul.f32 %v1640_v40, %v1871_v20  ;;  %v349_v39 = vadd.f32 %v333_v11, %v279_v7  ;;  %v444_v41 = vmul.f32 %v1790_v14, %v1595_v22  ;;  %v1893_v37 = vld [vmem:[%s1597_s9 + $0x51] sm:$0xff] }
  0x34   : > { %v724_v2 = vadd.f32 %v708_v51, %v670_v10  ;;  %v567_v53 = vadd.f32 %v551_v6, %v513_v12  ;;  %v452_v38 = vadd.f32 %v436_v29, %v395_v28  ;;  %v544_v57 = vmul.f32 %v1787_v48, %v1609_v27  ;;  %v1896_v29 = vld [vmem:[%s1597_s9 + $0x52] sm:$0xff] }
  0x35   : > { %v601_v46 = vmul.f32 %v1624_v35, %v1884_v60  ;;  %v403_v32 = vadd.f32 %v387_v31, %v349_v39  ;;  %v498_v63 = vmul.f32 %v1806_v61, %v1602_v23  ;;  %v272_v3 = vmul.f32 %v1670_v54, %v1577_v18  ;;  %v1909_v31 = vld [vmem:[%s1597_s9 + $0xb0] sm:$0xff] }
  0x36   : > { %1307 = vmatprep.mubr.f32.mxu0 %v724_v2  ;;  %v624_v51 = vadd.f32 %v608_v52, %v567_v53  ;;  %v506_v6 = vadd.f32 %v490_v58, %v452_v38  ;;  %v326_v7 = vmul.f32 %v1673_v55, %v1582_v19  ;;  %v380_v11 = vmul.f32 %v1676_v56, %v1590_v21 }
  0x37   : > { %v655_v10 = vmul.f32 %v1629_v36, %v1893_v37  ;;  %v709_v54 = vmul.f32 %v1640_v40, %v1896_v29  ;;  %v460_v12 = vadd.f32 %v444_v41, %v403_v32  ;;  %v552_v52 = vmul.f32 %v1815_v4, %v1609_v27 }
  0x38   : > { %v678_v58 = vadd.f32 %v662_v47, %v624_v51  ;;  %v560_v28 = vadd.f32 %v544_v57, %v506_v6  ;;  %v342_v39 = vadd.f32 %v326_v7, %v272_v3  ;;  %v437_v55 = vmul.f32 %v1828_v59, %v1595_v22  ;;  %v1920_v57 = vld [vmem:[%s1597_s9 + $0xb1] sm:$0xff] }
  0x39   : > { %v514_v56 = vadd.f32 %v498_v63, %v460_v12  ;;  %v609_v2 = vmul.f32 %v1624_v35, %v1909_v31  ;;  %v491_v53 = vmul.f32 %v1833_v42, %v1602_v23  ;;  %v280_v41 = vmul.f32 %v1704_v9, %v1577_v18 }
  0x3a   : > { %v732_v38 = vadd.f32 %v716_v33, %v678_v58  ;;  %v617_v47 = vadd.f32 %v601_v46, %v560_v28  ;;  %v396_v32 = vadd.f32 %v380_v11, %v342_v39  ;;  %v334_v3 = vmul.f32 %v1715_v15, %v1582_v19  ;;  %v1931_v33 = vld [vmem:[%s1597_s9 + $0xb2] sm:$0xff] }
  0x3b   : > { %v568_v51 = vadd.f32 %v552_v52, %v514_v56  ;;  %v663_v63 = vmul.f32 %v1629_v36, %v1920_v57  ;;  %v545_v6 = vmul.f32 %v1844_v24, %v1609_v27  ;;  %v388_v7 = vmul.f32 %v1726_v25, %v1590_v21 }
  0x3c   : > { %1319 = vmatprep.mubr.f32.mxu1 %v732_v38  ;;  %v671_v9 = vadd.f32 %v655_v10, %v617_v47  ;;  %v453_v46 = vadd.f32 %v437_v55, %v396_v32  ;;  %v350_v12 = vadd.f32 %v334_v3, %v280_v41  ;;  %v445_v11 = vmul.f32 %v1855_v34, %v1595_v22  ;;  %v1198_v32 = vld [vmem:[%s1597_s9 + $0xc0] sm:$0xff] }
  0x3d   : > { %v625_v15 = vadd.f32 %v609_v2, %v568_v51  ;;  %v717_v52 = vmul.f32 %v1640_v40, %v1931_v33  ;;  %v602_v58 = vmul.f32 %v1624_v35, %v1646_v44  ;;  %v499_v25 = vmul.f32 %v1868_v13, %v1602_v23 }
  0x3e   : > { %v725_v28 = vadd.f32 %v709_v54, %v671_v9  ;;  %v507_v10 = vadd.f32 %v491_v53, %v453_v46  ;;  %v404_v39 = vadd.f32 %v388_v7, %v350_v12  ;;  %v273_v55 = vmul.f32 %v1759_v0, %v1577_v18  ;;  %v1962_v12 = vld [vmem:[%s1597_s9 + $0xc2] sm:$0xff] }
  0x3f   : > { %v679_v56 = vadd.f32 %v663_v63, %v625_v15  ;;  %v656_v2 = vmul.f32 %v1629_v36, %v1649_v45  ;;  %v327_v41 = vmul.f32 %v1762_v1, %v1582_v19  ;;  %v381_v38 = vmul.f32 %v1787_v48, %v1590_v21  ;;  %v1215_v63 = vld [vmem:[%s1597_s9 + $0xc1] sm:$0xff] }
  0x40   : > { %1308 = vmatmul.mubr.f32.gmra.mrb[2].mxu0 %v725_v28  ;;  %v561_v47 = vadd.f32 %v545_v6, %v507_v10  ;;  %v710_v54 = vmul.f32 %v1640_v40, %v1659_v49  ;;  %v461_v53 = vadd.f32 %v445_v11, %v404_v39  ;;  %v553_v0 = vmul.f32 %v1871_v20, %v1609_v27 }
  0x41   : > { %v733_v3 = vadd.f32 %v717_v52, %v679_v56  ;;  %v610_v51 = vmul.f32 %v1624_v35, %v1198_v32  ;;  %v343_v7 = vadd.f32 %v327_v41, %v273_v55  ;;  %v438_v1 = vmul.f32 %v1884_v60, %v1595_v22 }
  0x42   : > { %v618_v48 = vadd.f32 %v602_v58, %v561_v47  ;;  %v515_v9 = vadd.f32 %v499_v25, %v461_v53  ;;  %v664_v6 = vmul.f32 %v1629_v36, %v1215_v63  ;;  %v281_v46 = vmul.f32 %v1790_v14, %v1577_v18 }
  0x43   : > { %1320 = vmatmul.mubr.f32.gmra.mrb[2].mxu1 %v733_v3  ;;  %v397_v11 = vadd.f32 %v381_v38, %v343_v7  ;;  %v492_v15 = vmul.f32 %v1893_v37, %v1602_v23  ;;  %v335_v52 = vmul.f32 %v1806_v61, %v1582_v19  ;;  %v389_v28 = vmul.f32 %v1815_v4, %v1590_v21 }
  0x44   : > { %v672_v58 = vadd.f32 %v656_v2, %v618_v48  ;;  %v569_v25 = vadd.f32 %v553_v0, %v515_v9  ;;  %v718_v10 = vmul.f32 %v1640_v40, %v1962_v12  ;;  %v546_v14 = vmul.f32 %v1896_v29, %v1609_v27  ;;  %v1199_v9 = vld [vmem:[%s1597_s9 + $0xc8] sm:$0xff] }
  0x45   : > { %v454_v39 = vadd.f32 %v438_v1, %v397_v11  ;;  %v603_v55 = vmul.f32 %v1624_v35, %v1718_v16  ;;  %v351_v56 = vadd.f32 %v335_v52, %v281_v46  ;;  %v446_v41 = vmul.f32 %v1909_v31, %v1595_v22 }
  0x46   : > { %v726_v61 = vadd.f32 %v710_v54, %v672_v58  ;;  %v626_v38 = vadd.f32 %v610_v51, %v569_v25  ;;  %v500_v4 = vmul.f32 %v1920_v57, %v1602_v23  ;;  %v274_v2 = vmul.f32 %v1828_v59, %v1577_v18  ;;  %v2001_v58 = vld [vmem:[%s1597_s9 + $0xc9] sm:$0xff] }
  0x47   : > { %v508_v47 = vadd.f32 %v492_v15, %v454_v39  ;;  %v405_v53 = vadd.f32 %v389_v28, %v351_v56  ;;  %v328_v0 = vmul.f32 %v1833_v42, %v1582_v19  ;;  %v382_v3 = vmul.f32 %v1844_v24, %v1590_v21  ;;  %v1233_v56 = vld [vmem:[%s1597_s9 + $0xca] sm:$0xff] }
  0x48   : > { %1310 = vmatprep.mubr.f32.mxu0 %v726_v61  ;;  %v680_v7 = vadd.f32 %v664_v6, %v626_v38  ;;  %v657_v54 = vmul.f32 %v1629_v36, %v1721_v17  ;;  %v711_v51 = vmul.f32 %v1640_v40, %v1734_v30  ;;  %v554_v59 = vmul.f32 %v1931_v33, %v1609_v27 }
  0x49   : > { %v562_v1 = vadd.f32 %v546_v14, %v508_v47  ;;  %v462_v48 = vadd.f32 %v446_v41, %v405_v53  ;;  %v344_v46 = vadd.f32 %v328_v0, %v274_v2  ;;  %v439_v42 = vmul.f32 %v1595_v22, %v1646_v44  ;;  %v1217_v0 = vld [vmem:[%s1597_s9 + $0xd9] sm:$0xff] }
  0x4a   : > { %v734_v24 = vadd.f32 %v718_v10, %v680_v7  ;;  %v611_v6 = vmul.f32 %v1624_v35, %v1199_v9  ;;  %v493_v11 = vmul.f32 %v1602_v23, %v1649_v45  ;;  %v282_v15 = vmul.f32 %v1855_v34, %v1577_v18 }
  0x4b   : > { %v619_v52 = vadd.f32 %v603_v55, %v562_v1  ;;  %v516_v28 = vadd.f32 %v500_v4, %v462_v48  ;;  %v398_v25 = vadd.f32 %v382_v3, %v344_v46  ;;  %v336_v14 = vmul.f32 %v1868_v13, %v1582_v19 }
  0x4c   : > { %1322 = vmatprep.mubr.f32.mxu1 %v734_v24  ;;  %v665_v44 = vmul.f32 %v1629_v36, %v2001_v58  ;;  %v547_v10 = vmul.f32 %v1609_v27, %v1659_v49  ;;  %v390_v45 = vmul.f32 %v1871_v20, %v1590_v21  ;;  %v447_v34 = vmul.f32 %v1198_v32, %v1595_v22  ;;  %v1200_v32 = vld [vmem:[%s1597_s9 + $0xd8] sm:$0xff]  ;;  %v1201_v24 = vld [vmem:[%s1597_s9 + $0xe0] sm:$0xff] }
  0x4d   : > { %v673_v39 = vadd.f32 %v657_v54, %v619_v52  ;;  %v570_v55 = vadd.f32 %v554_v59, %v516_v28  ;;  %v455_v41 = vadd.f32 %v439_v42, %v398_v25  ;;  %v352_v61 = vadd.f32 %v336_v14, %v282_v15 }
  0x4e   : > { %v719_v13 = vmul.f32 %v1640_v40, %v1233_v56  ;;  %v604_v38 = vmul.f32 %v1624_v35, %v1662_v50  ;;  %v501_v4 = vmul.f32 %v1215_v63, %v1602_v23  ;;  %v275_v49 = vmul.f32 %v1884_v60, %v1577_v18 }
  0x4f   : > { %v727_v2 = vadd.f32 %v711_v51, %v673_v39  ;;  %v627_v20 = vadd.f32 %v611_v6, %v570_v55  ;;  %v509_v47 = vadd.f32 %v493_v11, %v455_v41  ;;  %v406_v53 = vadd.f32 %v390_v45, %v352_v61  ;;  %v1218_v6 = vld [vmem:[%s1597_s9 + $0xe1] sm:$0xff] }
  0x50   : > { %v658_v3 = vmul.f32 %v1629_v36, %v1687_v62  ;;  %v712_v7 = vmul.f32 %v1640_v40, %v1701_v8  ;;  %v329_v50 = vmul.f32 %v1893_v37, %v1582_v19  ;;  %v383_v60 = vmul.f32 %v1896_v29, %v1590_v21  ;;  %v1234_v11 = vld [vmem:[%s1597_s9 + $0xda] sm:$0xff] }
  0x51   : > { %1311 = vmatmul.mubr.f32.gmra.mrb[4].mxu0 %v727_v2  ;;  %v681_v63 = vadd.f32 %v665_v44, %v627_v20  ;;  %v563_v54 = vadd.f32 %v547_v10, %v509_v47  ;;  %v463_v51 = vadd.f32 %v447_v34, %v406_v53  ;;  %v555_v59 = vmul.f32 %v1962_v12, %v1609_v27 }
  0x52   : > { %v612_v62 = vmul.f32 %v1624_v35, %v1200_v32  ;;  %v666_v8 = vmul.f32 %v1629_v36, %v1217_v0  ;;  %v345_v1 = vadd.f32 %v329_v50, %v275_v49  ;;  %v440_v37 = vmul.f32 %v1595_v22, %v1718_v16  ;;  %v1235_v16 = vld [vmem:[%s1597_s9 + $0xe2] sm:$0xff]  ;;  %s2068_s9 = scalar_lea.vmem %s2110_s3, %s1124_s6 }
  0x53   : > { %v735_v48 = vadd.f32 %v719_v13, %v681_v63  ;;  %v620_v46 = vadd.f32 %v604_v38, %v563_v54  ;;  %v517_v29 = vadd.f32 %v501_v4, %v463_v51  ;;  %v283_v42 = vmul.f32 %v1909_v31, %v1577_v18 }
  0x54   : > { %v399_v15 = vadd.f32 %v383_v60, %v345_v1  ;;  %v494_v12 = vmul.f32 %v1602_v23, %v1721_v17  ;;  %v337_v52 = vmul.f32 %v1920_v57, %v1582_v19  ;;  %v391_v28 = vmul.f32 %v1931_v33, %v1590_v21 }
  0x55   : > { %1323 = vmatmul.mubr.f32.gmra.mrb[4].mxu1 %v735_v48  ;;  %v674_v25 = vadd.f32 %v658_v3, %v620_v46  ;;  %v571_v14 = vadd.f32 %v555_v59, %v517_v29  ;;  %v548_v18 = vmul.f32 %v1609_v27, %v1734_v30  ;;  %v448_v31 = vmul.f32 %v1199_v9, %v1595_v22 }
  0x56   : > { %v456_v44 = vadd.f32 %v440_v37, %v399_v15  ;;  %v353_v10 = vadd.f32 %v337_v52, %v283_v42  ;;  %v613_v45 = vmul.f32 %v1624_v35, %v1201_v24  ;;  %v667_v17 = vmul.f32 %v1629_v36, %v1218_v6 }
  0x57   : > { %v728_v34 = vadd.f32 %v712_v7, %v674_v25  ;;  %v628_v19 = vadd.f32 %v612_v62, %v571_v14  ;;  %v720_v57 = vmul.f32 %v1640_v40, %v1234_v11  ;;  %v721_v21 = vmul.f32 %v1640_v40, %v1235_v16 }
  0x58   : > { %v510_v33 = vadd.f32 %v494_v12, %v456_v44  ;;  %v605_v39 = vmul.f32 %v1624_v35, %v1743_v43  ;;  %v407_v55 = vadd.f32 %v391_v28, %v353_v10  ;;  %v502_v22 = vmul.f32 %v2001_v58, %v1602_v23 }
  0x59   : > { %1313 = vmatprep.mubr.f32.mxu0 %v728_v34  ;;  %v682_v30 = vadd.f32 %v666_v8, %v628_v19  ;;  %v659_v41 = vmul.f32 %v1629_v36, %v1767_v5  ;;  %v556_v13 = vmul.f32 %v1233_v56, %v1609_v27  ;;  %v713_v35 = vmul.f32 %v1640_v40, %v1778_v26 }
  0x5a   : > { %v564_v9 = vadd.f32 %v548_v18, %v510_v33  ;;  %v464_v61 = vadd.f32 %v448_v31, %v407_v55  ;;  %v1458_v59 = vmov (!%p1237_p7), 0.0  }
  0x5b   : > { %v736_v38 = vadd.f32 %v720_v57, %v682_v30  ;;  %919 = vst [vmem:[%s1566_s11] sm:$0x3] (!%p1237_p7), %v1458_v59 }
  0x5c   : > { %v621_v4 = vadd.f32 %v605_v39, %v564_v9  ;;  %v518_v43 = vadd.f32 %v502_v22, %v464_v61 }
  0x5d   : > { %1325 = vmatprep.mubr.f32.mxu1 %v736_v38 }
  0x5e   : > { %v675_v49 = vadd.f32 %v659_v41, %v621_v4  ;;  %v572_v23 = vadd.f32 %v556_v13, %v518_v43 }
  0x60   : > { %v729_v58 = vadd.f32 %v713_v35, %v675_v49  ;;  %v629_v2 = vadd.f32 %v613_v45, %v572_v23 }
  0x62   : > { %1314 = vmatmul.mubr.f32.gmra.mrb[6].mxu0 %v729_v58  ;;  %v683_v20 = vadd.f32 %v667_v17, %v629_v2 }
  0x64   : > { %v737_v47 = vadd.f32 %v721_v21, %v683_v20 }
  0x66   : > { %1326 = vmatmul.mubr.f32.gmra.mrb[6].mxu1 %v737_v47 }
 0x101   : > { %v1306_v27 = vpop.f32.mrb[0].mxu0 }
 0x102   : > { %900 = vst [vmem:[%s2068_s9 + $0x8] sm:$0xff] %v1306_v27  ;;  %v820_v36 = vpop.f32.mrb[1].mxu0 }
 0x103   : > { %899 = vst [vmem:[%s2068_s9] sm:$0xff] %v820_v36 }
 0x106   : > { %v1318_v40 = vpop.f32.mrb[0].mxu1 }
 0x107   : > { %908 = vst [vmem:[%s2068_s9 + $0x48] sm:$0xff] %v1318_v40  ;;  %v860_v5 = vpop.f32.mrb[1].mxu1 }
 0x108   : > { %907 = vst [vmem:[%s2068_s9 + $0x40] sm:$0xff] %v860_v5 }
 0x113   : > { %v1309_v26 = vpop.f32.mrb[2].mxu0 }
 0x114   : > { %902 = vst [vmem:[%s2068_s9 + $0x18] sm:$0xff] %v1309_v26  ;;  %v830_v56 = vpop.f32.mrb[3].mxu0 }
 0x115   : > { %901 = vst [vmem:[%s2068_s9 + $0x10] sm:$0xff] %v830_v56 }
 0x116   : > { %v1321_v53 = vpop.f32.mrb[2].mxu1 }
 0x117   : > { %910 = vst [vmem:[%s2068_s9 + $0x58] sm:$0xff] %v1321_v53  ;;  %v870_v32 = vpop.f32.mrb[3].mxu1 }
 0x118   : > { %909 = vst [vmem:[%s2068_s9 + $0x50] sm:$0xff] %v870_v32 }
 0x124   : > { %v1312_v0 = vpop.f32.mrb[4].mxu0 }
 0x125   : > { %904 = vst [vmem:[%s2068_s9 + $0x28] sm:$0xff] %v1312_v0  ;;  %v840_v3 = vpop.f32.mrb[5].mxu0 }
 0x126   : > { %903 = vst [vmem:[%s2068_s9 + $0x20] sm:$0xff] %v840_v3 }
 0x128   : > { %v1324_v7 = vpop.f32.mrb[4].mxu1 }
 0x129   : > { %912 = vst [vmem:[%s2068_s9 + $0x68] sm:$0xff] %v1324_v7  ;;  %v880_v50 = vpop.f32.mrb[5].mxu1 }
 0x12a   : > { %911 = vst [vmem:[%s2068_s9 + $0x60] sm:$0xff] %v880_v50 }
 0x135   : > { %v1315_v60 = vpop.f32.mrb[6].mxu0  ;;  %918 = sbr.rel (%p1237_p7) target bundleno = 316 (0x13c), region = 36 }
 0x136   : > { %906 = vst [vmem:[%s2068_s9 + $0x38] sm:$0xff] %v1315_v60  ;;  %v850_v63 = vpop.f32.mrb[7].mxu0 }
 0x137   : > { %905 = vst [vmem:[%s2068_s9 + $0x30] sm:$0xff] %v850_v63 }
 0x139   : > { %v1327_v54 = vpop.f32.mrb[6].mxu1 }
 0x13a   : > { %914 = vst [vmem:[%s2068_s9 + $0x78] sm:$0xff] %v1327_v54  ;;  %v890_v51 = vpop.f32.mrb[7].mxu1 }
 0x13b   : > { %913 = vst [vmem:[%s2068_s9 + $0x70] sm:$0xff] %v890_v51 }
 0x13c PF: > { %v921_v62 = vadd.f32 %v1306_v27, %v820_v36  ;;  %v945_v8 = vmul.f32 %v820_v36, %v820_v36  ;;  %v946_v1 = vmul.f32 %v1306_v27, %v1306_v27  ;;  %v947_v48 = vmul.f32 %v830_v56, %v830_v56 }
 0x13d   : > { %v948_v29 = vmul.f32 %v1309_v26, %v1309_v26  ;;  %v949_v6 = vmul.f32 %v840_v3, %v840_v3  ;;  %v950_v12 = vmul.f32 %v1312_v0, %v1312_v0  ;;  %v951_v16 = vmul.f32 %v850_v63, %v850_v63 }
 0x13e   : > { %v922_v37 = vadd.f32 %v921_v62, %v830_v56  ;;  %v961_v42 = vadd.f32 %v946_v1, %v945_v8  ;;  %v952_v18 = vmul.f32 %v1315_v60, %v1315_v60  ;;  %v953_v10 = vmul.f32 %v860_v5, %v860_v5 }
 0x13f   : > { %v954_v34 = vmul.f32 %v1318_v40, %v1318_v40  ;;  %v955_v21 = vmul.f32 %v870_v32, %v870_v32  ;;  %v956_v55 = vmul.f32 %v1321_v53, %v1321_v53  ;;  %v957_v9 = vmul.f32 %v880_v50, %v880_v50 }
 0x140   : > { %v923_v46 = vadd.f32 %v1309_v26, %v922_v37  ;;  %v962_v11 = vadd.f32 %v961_v42, %v947_v48  ;;  %v958_v13 = vmul.f32 %v1324_v7, %v1324_v7  ;;  %v959_v35 = vmul.f32 %v890_v51, %v890_v51 }
 0x141   : > { %v960_v23 = vmul.f32 %v1327_v54, %v1327_v54 }
 0x142   : > { %v924_v24 = vadd.f32 %v923_v46, %v840_v3  ;;  %v963_v52 = vadd.f32 %v962_v11, %v948_v29 }
 0x144   : > { %v925_v15 = vadd.f32 %v1312_v0, %v924_v24  ;;  %v964_v25 = vadd.f32 %v963_v52, %v949_v6 }
 0x146   : > { %v926_v28 = vadd.f32 %v925_v15, %v850_v63  ;;  %v965_v31 = vadd.f32 %v964_v25, %v950_v12 }
 0x148   : > { %v927_v14 = vadd.f32 %v1315_v60, %v926_v28  ;;  %v966_v45 = vadd.f32 %v965_v31, %v951_v16  ;;  %v944_v60 = vld [vmem:[%s1566_s11 + $0x1] sm:$0x1] }
 0x14a   : > { %v928_v44 = vadd.f32 %v927_v14, %v860_v5  ;;  %v967_v19 = vadd.f32 %v966_v45, %v952_v18 }
 0x14c   : > { %v929_v17 = vadd.f32 %v1318_v40, %v928_v44  ;;  %v968_v33 = vadd.f32 %v967_v19, %v953_v10 }
 0x14e   : > { %v930_v57 = vadd.f32 %v929_v17, %v870_v32  ;;  %v969_v22 = vadd.f32 %v968_v33, %v954_v34  ;;  %v920_v32 = vld [vmem:[%s1566_s11] sm:$0x1] }
 0x150   : > { %v931_v39 = vadd.f32 %v1321_v53, %v930_v57  ;;  %v970_v41 = vadd.f32 %v969_v22, %v955_v21 }
 0x152   : > { %v932_v30 = vadd.f32 %v931_v39, %v880_v50  ;;  %v971_v38 = vadd.f32 %v970_v41, %v956_v55 }
 0x154   : > { %v933_v61 = vadd.f32 %v1324_v7, %v932_v30  ;;  %v972_v43 = vadd.f32 %v971_v38, %v957_v9 }
 0x156   : > { %v934_v4 = vadd.f32 %v933_v61, %v890_v51  ;;  %v973_v58 = vadd.f32 %v972_v43, %v958_v13 }
 0x158   : > { %v935_v49 = vadd.f32 %v1327_v54, %v934_v4  ;;  %v974_v20 = vadd.f32 %v973_v58, %v959_v35 }
 0x15a   : > { %v936_v2 = vrot.slane %v935_v49, 4  ;;  %v975_v27 = vadd.f32 %v974_v20, %v960_v23 }
 0x15c   : > { %v937_v47 = vadd.f32 %v936_v2, %v935_v49  ;;  %v976_v40 = vrot.slane %v975_v27, 4 }
 0x15e   : > { %v938_v36 = vrot.slane %v937_v47, 2  ;;  %v977_v26 = vadd.f32 %v976_v40, %v975_v27 }
 0x160   : > { %v939_v5 = vadd.f32 %v938_v36, %v937_v47  ;;  %v978_v53 = vrot.slane %v977_v26, 2 }
 0x162   : > { %v940_v56 = vrot.slane %v939_v5, 1  ;;  %v979_v3 = vadd.f32 %v978_v53, %v977_v26 }
 0x164   : > { %v941_v0 = vadd.f32 %v940_v56, %v939_v5  ;;  %v980_v50 = vrot.slane %v979_v3, 1 }
 0x166   : > { %v942_v7 = vadd.f32 %v941_v0, %v920_v32  ;;  %v981_v63 = vadd.f32 %v980_v50, %v979_v3 }
 0x168   : > { %943 = vst [vmem:[%s1566_s11] sm:$0x1] %v942_v7  ;;  %v982_v54 = vadd.f32 %v981_v63, %v944_v60 }
 0x16a   : > { %983 = vst [vmem:[%s1566_s11 + $0x1] sm:$0x1] %v982_v54 }
 0x16b PF: > { %s15_s19 = sadd.s32 1, %s1456_s19   ;;  %s2112_s15 = smov %s1448_s17 }
 0x16c   : > { %p12_p8 = scmp.ge.s32.totalorder %s15_s19, 6   ;;  %s2113_s16 = smov %s1452_s18 }
 0x16d   : > { %s2114_s17 = smov %s2117_s20  ;;  %s2115_s18 = smov %s2121_s21 }
 0x16e   :  { %14 = sbr.rel (!%p12_p8) target bundleno = 3 (0x3), region = 81 }

// kernel: xception_block.13
= control target key start
LH: loop header
LB: loop body
LE: loop exit
PB: predicated region body
PF: predicated region fallthrough
CT: control target
= control target key end

     0   :  { %s635_s21 = smov 0   ;;  %s637_s22 = smov 0   ;;  %s738_s0 = inlined_call_operand.vmem [shape: f32[2,8,8,128], index: 0, kind: input, shape index: {}]   ;;  %s739_s1 = inlined_call_operand.vmem [shape: f32[1,128], index: 1, kind: input, shape index: {}]   ;;  %s740_s2 = inlined_call_operand.vmem [shape: f32[1,128], index: 2, kind: input, shape index: {}]   ;;  %s741_s3 = inlined_call_operand.vmem [shape: f32[2,8,8,128], index: 3, kind: input, shape index: {}]   ;;  %s742_s4 = inlined_call_operand.vmem [shape: f32[1,128], index: 4, kind: input, shape index: {}]   ;;  %s743_s5 = inlined_call_operand.vmem [shape: f32[1,128], index: 5, kind: input, shape index: {}]   ;;  %s744_s6 = inlined_call_operand.vmem [shape: f32[2,8,8,128], index: 6, kind: output, shape index: {}]  }
   0x1   :  { %s639_s23 = smov 0  }
   0x2 LB: > { %s28_s24 = sadd.s32 1, %s594_s22  ;;  %p536_p0 = scmp.ge.s32.totalorder %s598_s23, 1  ;;  %s598_s23 = sphi %s639_s23, %s16_s23   ;;  %s594_s22 = sphi %s637_s22, %s746_s22   ;;  %s590_s21 = sphi %s635_s21, %s745_s21  }
   0x3   : > { %p30_p1 = scmp.ge.s32.totalorder %s28_s24, 2  ;;  %p250_p2 = scmp.lt.s32.totalorder %s598_s23, 3 }
   0x5   : > { %s748_s24 = smov (%p30_p1, %s28_s24), 0  ;;  %p251_p3 = pnand %p536_p0, %p250_p2 }
   0x6   : > { %p298_p4 = scmp.lt.s32.totalorder (!%p251_p3), %s590_s21, 1  ;;  %v543_v0 = vld [vmem:[%s739_s1] ss:$0 sm:$0xff] (!%p251_p3) }
   0x7   : > { %254 = sbr.rel (%p251_p3) target bundleno = 36 (0x24), region = 44  ;;  %v545_v1 = vld [vmem:[%s742_s4] ss:$0 sm:$0xff] (!%p251_p3) }
   0x8   : > { %v676_v2 = vld [vmem:[%s740_s2] ss:$0 sm:$0xff] (!%p251_p3) }
   0x9   : > { %v681_v3 = vld [vmem:[%s743_s5] ss:$0 sm:$0xff] (!%p251_p3) }
   0xe   : > { %s750_s21 = smov (!%p298_p4, %s590_s21), 1 }
   0xf   : > { %s653_s25 = sshll.u32 %s750_s21, 6 }
  0x10   : > { %s665_s8 = scalar_lea.vmem %s738_s0, %s653_s25  ;;  %s671_s11 = scalar_lea.vmem %s741_s3, %s653_s25 }
  0x11   : > { %v327_v4 = vld [vmem:[%s665_s8] sm:$0xff]  ;;  %v328_v6 = vld [vmem:[%s665_s8 + $0x8] sm:$0xff]  ;;  %v329_v11 = vld [vmem:[%s665_s8 + $0x10] sm:$0xff]  ;;  %s706_s18 = scalar_lea.vmem %s744_s6, %s653_s25 }
  0x12   : > { %v365_v5 = vld [vmem:[%s671_s11] sm:$0xff]  ;;  %v342_v7 = vmul.f32 %v543_v0, %v327_v4  ;;  %v343_v9 = vmul.f32 %v543_v0, %v328_v6  ;;  %v366_v10 = vld [vmem:[%s671_s11 + $0x8] sm:$0xff]  ;;  %v367_v12 = vld [vmem:[%s671_s11 + $0x10] sm:$0xff]  ;;  %v344_v14 = vmul.f32 %v543_v0, %v329_v11 }
  0x13   : > { %v380_v8 = vmul.f32 %v545_v1, %v365_v5  ;;  %v381_v13 = vmul.f32 %v545_v1, %v366_v10  ;;  %v382_v15 = vmul.f32 %v545_v1, %v367_v12  ;;  %v330_v16 = vld [vmem:[%s665_s8 + $0x18] sm:$0xff]  ;;  %v331_v18 = vld [vmem:[%s665_s8 + $0x20] sm:$0xff]  ;;  %v332_v24 = vld [vmem:[%s665_s8 + $0x28] sm:$0xff] }
  0x14   : > { %v368_v17 = vld [vmem:[%s671_s11 + $0x18] sm:$0xff]  ;;  %v357_v19 = vadd.f32 %v676_v2, %v342_v7  ;;  %v358_v21 = vadd.f32 %v676_v2, %v343_v9  ;;  %v345_v22 = vmul.f32 %v543_v0, %v330_v16  ;;  %v369_v23 = vld [vmem:[%s671_s11 + $0x20] sm:$0xff]  ;;  %v359_v26 = vadd.f32 %v676_v2, %v344_v14  ;;  %v370_v29 = vld [vmem:[%s671_s11 + $0x28] sm:$0xff] }
  0x15   : > { %v395_v20 = vadd.f32 %v681_v3, %v380_v8  ;;  %v396_v25 = vadd.f32 %v681_v3, %v381_v13  ;;  %v397_v27 = vadd.f32 %v681_v3, %v382_v15  ;;  %v383_v28 = vmul.f32 %v545_v1, %v368_v17  ;;  %v333_v38 = vld [vmem:[%s665_s8 + $0x30] sm:$0xff]  ;;  %v334_v44 = vld [vmem:[%s665_s8 + $0x38] sm:$0xff] }
  0x16   : > { %v360_v31 = vadd.f32 %v676_v2, %v345_v22  ;;  %v346_v32 = vmul.f32 %v543_v0, %v331_v18  ;;  %v384_v33 = vmul.f32 %v545_v1, %v369_v23  ;;  %v347_v37 = vmul.f32 %v543_v0, %v332_v24  ;;  %v371_v39 = vld [vmem:[%s671_s11 + $0x30] sm:$0xff]  ;;  %v372_v45 = vld [vmem:[%s671_s11 + $0x38] sm:$0xff] }
  0x17   : > { %v403_v30 = vadd.f32 %v395_v20, %v357_v19  ;;  %v404_v34 = vadd.f32 %v396_v25, %v358_v21  ;;  %v405_v35 = vadd.f32 %v397_v27, %v359_v26  ;;  %v398_v36 = vadd.f32 %v681_v3, %v383_v28 }
  0x18   : > { %v361_v41 = vadd.f32 %v676_v2, %v346_v32  ;;  %v399_v42 = vadd.f32 %v681_v3, %v384_v33  ;;  %v385_v43 = vmul.f32 %v545_v1, %v370_v29  ;;  %v362_v49 = vadd.f32 %v676_v2, %v347_v37 }
  0x19   : > { %v411_v40 = vmax.f32 %v403_v30, 0.0  ;;  %v412_v46 = vmax.f32 %v404_v34, 0.0  ;;  %v413_v47 = vmax.f32 %v405_v35, 0.0  ;;  %v406_v48 = vadd.f32 %v398_v36, %v360_v31 }
  0x1a   : > { %v407_v50 = vadd.f32 %v399_v42, %v361_v41  ;;  %v400_v51 = vadd.f32 %v681_v3, %v385_v43  ;;  %v348_v52 = vmul.f32 %v543_v0, %v333_v38  ;;  %v386_v53 = vmul.f32 %v545_v1, %v371_v39 }
  0x1b   : > { %419 = vst [vmem:[%s706_s18] sm:$0xff] %v411_v40  ;;  %420 = vst [vmem:[%s706_s18 + $0x8] sm:$0xff] %v412_v46  ;;  %v414_v54 = vmax.f32 %v406_v48, 0.0  ;;  %v349_v55 = vmul.f32 %v543_v0, %v334_v44  ;;  %v387_v56 = vmul.f32 %v545_v1, %v372_v45 }
  0x1c   : > { %421 = vst [vmem:[%s706_s18 + $0x10] sm:$0xff] %v413_v47  ;;  %v415_v57 = vmax.f32 %v407_v50, 0.0  ;;  %v408_v58 = vadd.f32 %v400_v51, %v362_v49  ;;  %v363_v59 = vadd.f32 %v676_v2, %v348_v52  ;;  %v401_v60 = vadd.f32 %v681_v3, %v386_v53 }
  0x1d   : > { %422 = vst [vmem:[%s706_s18 + $0x18] sm:$0xff] %v414_v54  ;;  %v364_v61 = vadd.f32 %v676_v2, %v349_v55  ;;  %v402_v62 = vadd.f32 %v681_v3, %v387_v56 }
  0x1e   : > { %423 = vst [vmem:[%s706_s18 + $0x20] sm:$0xff] %v415_v57  ;;  %v416_v63 = vmax.f32 %v408_v58, 0.0  ;;  %v409_v4 = vadd.f32 %v401_v60, %v363_v59 }
  0x1f   : > { %v410_v5 = vadd.f32 %v402_v62, %v364_v61 }
  0x20   : > { %424 = vst [vmem:[%s706_s18 + $0x28] sm:$0xff] %v416_v63  ;;  %v417_v0 = vmax.f32 %v409_v4, 0.0 }
  0x21   : > { %v418_v6 = vmax.f32 %v410_v5, 0.0 }
  0x22   : > { %425 = vst [vmem:[%s706_s18 + $0x30] sm:$0xff] %v417_v0 }
  0x23   : > { %426 = vst [vmem:[%s706_s18 + $0x38] sm:$0xff] %v418_v6 }
  0x24 PF: > { %s16_s23 = sadd.s32 1, %s598_s23   ;;  %s745_s21 = smov %s594_s22 }
  0x25   : > { %p13_p5 = scmp.ge.s32.totalorder %s16_s23, 4   ;;  %s746_s22 = smov %s748_s24 }
  0x27   :  { %15 = sbr.rel (!%p13_p5) target bundleno = 2 (0x2), region = 77 }

// kernel: xception_block.11
= control target key start
LH: loop header
LB: loop body
LE: loop exit
PB: predicated region body
PF: predicated region fallthrough
CT: control target
= control target key end

     0   :  { %s1106_s15 = smov 0   ;;  %s1108_s16 = smov 0   ;;  %s1404_s0 = inlined_call_operand.vmem [shape: f32[2,36,9,128], index: 0, kind: input, shape index: {}]   ;;  %s1405_s1 = inlined_call_operand.vmem [shape: f32[9,1,128], index: 1, kind: input, shape index: {}]   ;;  %s1406_s2 = inlined_call_operand.vmem [shape: f32[128,128], index: 2, kind: input, shape index: {}]   ;;  %s1407_s3 = inlined_call_operand.vmem [shape: f32[2,8,8,128], index: 3, kind: output, shape index: {0}]   ;;  %s1408_s4 = inlined_call_operand.vmem [shape: f32[2,2,128], index: 4, kind: output, shape index: {1}]  }
   0x1   :  { %s1110_s17 = smov 0  }
   0x2 LB: > { %s27_s18 = sadd.s32 1, %s1074_s16  ;;  %p841_p0 = scmp.ge.s32.totalorder %s1078_s17, 1  ;;  %s1078_s17 = sphi %s1110_s17, %s15_s17   ;;  %s1074_s16 = sphi %s1108_s16, %s1410_s16   ;;  %s1070_s15 = sphi %s1106_s15, %s1409_s15  }
   0x3   : > { %p29_p1 = scmp.ge.s32.totalorder %s27_s18, 2  ;;  %p179_p2 = scmp.lt.s32.totalorder %s1078_s17, 3 }
   0x5   : > { %s1412_s18 = smov (%p29_p1, %s27_s18), 0  ;;  %p180_p3 = pnand %p841_p0, %p179_p2 }
   0x6   : > { %v529_v0 = vld [vmem:[%s1406_s2] sm:$0xff] (!%p180_p3)  ;;  %v530_v1 = vld [vmem:[%s1406_s2 + $0x8] sm:$0xff] (!%p180_p3)  ;;  %v531_v2 = vld [vmem:[%s1406_s2 + $0x10] sm:$0xff] (!%p180_p3)  ;;  %p213_p4 = scmp.lt.s32.totalorder (!%p180_p3), %s1070_s15, 1 }
   0x7   : > { %183 = sbr.rel (%p180_p3) target bundleno = 298 (0x12a), region = 32  ;;  %v982_v3 = vpack.c.bf16 (!%p180_p3), %v530_v1, %v529_v0  ;;  %v532_v4 = vld [vmem:[%s1406_s2 + $0x18] sm:$0xff] (!%p180_p3)  ;;  %v533_v6 = vld [vmem:[%s1406_s2 + $0x20] sm:$0xff] (!%p180_p3)  ;;  %v534_v7 = vld [vmem:[%s1406_s2 + $0x28] sm:$0xff] (!%p180_p3) }
   0x8   : > { %v986_v5 = vpack.c.bf16 (!%p180_p3), %v532_v4, %v531_v2  ;;  %v990_v8 = vpack.c.bf16 (!%p180_p3), %v534_v7, %v533_v6  ;;  %v535_v9 = vld [vmem:[%s1406_s2 + $0x30] sm:$0xff] (!%p180_p3)  ;;  %v536_v10 = vld [vmem:[%s1406_s2 + $0x38] sm:$0xff] (!%p180_p3)  ;;  %v537_v11 = vld [vmem:[%s1406_s2 + $0x40] sm:$0xff] (!%p180_p3) }
   0x9   : > { %983 = vmatprep.subr.bf16.mxu0 (!%p180_p3), %v982_v3  ;;  %1014 = vmatprep.subr.bf16.mxu1 (!%p180_p3), %v982_v3  ;;  %v538_v12 = vld [vmem:[%s1406_s2 + $0x48] sm:$0xff] (!%p180_p3)  ;;  %v539_v13 = vld [vmem:[%s1406_s2 + $0x50] sm:$0xff] (!%p180_p3)  ;;  %v540_v14 = vld [vmem:[%s1406_s2 + $0x58] sm:$0xff] (!%p180_p3)  ;;  %v994_v24 = vpack.c.bf16 (!%p180_p3), %v536_v10, %v535_v9 }
   0xa   : > { %985 = vmatpush3.bf16.msra.mxu0 (!%p180_p3), %v982_v3  ;;  %1022 = vmatpush3.bf16.msra.mxu1 (!%p180_p3), %v982_v3  ;;  %v1171_v15 = vld [vmem:[%s1405_s1] ss:$0 sm:$0xff] (!%p180_p3)  ;;  %v1176_v16 = vld [vmem:[%s1405_s1 + $0x1] ss:$0 sm:$0xff] (!%p180_p3)  ;;  %v542_v18 = vld [vmem:[%s1406_s2 + $0x68] sm:$0xff] (!%p180_p3)  ;;  %v998_v36 = vpack.c.bf16 (!%p180_p3), %v538_v12, %v537_v11  ;;  %v1220_v37 = vpack.c.bf16 (!%p180_p3), %v540_v14, %v539_v13 }
   0xb   : > { %987 = vmatprep.subr.bf16.mxu0 (!%p180_p3), %v986_v5  ;;  %1015 = vmatprep.subr.bf16.mxu1 (!%p180_p3), %v986_v5  ;;  %v541_v17 = vld [vmem:[%s1406_s2 + $0x60] sm:$0xff] (!%p180_p3)  ;;  %v543_v25 = vld [vmem:[%s1406_s2 + $0x70] sm:$0xff] (!%p180_p3)  ;;  %v544_v26 = vld [vmem:[%s1406_s2 + $0x78] sm:$0xff] (!%p180_p3) }
   0xc   : > { %v1187_v19 = vld [vmem:[%s1405_s1 + $0x2] ss:$0 sm:$0xff] (!%p180_p3)  ;;  %v1192_v20 = vld [vmem:[%s1405_s1 + $0x3] ss:$0 sm:$0xff] (!%p180_p3)  ;;  %v1197_v21 = vld [vmem:[%s1405_s1 + $0x4] ss:$0 sm:$0xff] (!%p180_p3)  ;;  %v1226_v43 = vpack.c.bf16 (!%p180_p3), %v542_v18, %v541_v17  ;;  %v1243_v54 = vpack.c.bf16 (!%p180_p3), %v544_v26, %v543_v25 }
   0xd   : > { %v1210_v27 = vld [vmem:[%s1405_s1 + $0x5] ss:$0 sm:$0xff] (!%p180_p3)  ;;  %v1231_v44 = vld [vmem:[%s1405_s1 + $0x6] ss:$0 sm:$0xff] (!%p180_p3)  ;;  %v1248_v55 = vld [vmem:[%s1405_s1 + $0x7] ss:$0 sm:$0xff] (!%p180_p3) }
   0xe   : > { %s1414_s15 = smov (!%p213_p4, %s1070_s15), 1  ;;  %989 = vmatpush3.bf16.msra.mxu0 %v986_v5  ;;  %1023 = vmatpush3.bf16.msra.mxu1 %v986_v5  ;;  %v1253_v56 = vld [vmem:[%s1405_s1 + $0x8] ss:$0 sm:$0xff] }
   0xf   : > { %s1030_s5 = smul.u32 576, %s1414_s15  ;;  %991 = vmatprep.subr.bf16.mxu0 %v990_v8  ;;  %1016 = vmatprep.subr.bf16.mxu1 %v990_v8  ;;  %s845_s30 = sshll.u32 %s1414_s15, 1 }
  0x11   : > { %s1166_s24 = scalar_lea.vmem %s1404_s0, %s1030_s5  ;;  %s1374_s5 = scalar_lea.vmem %s1408_s4, %s845_s30 }
  0x12   : > { %v244_v22 = vld [vmem:[%s1166_s24] sm:$0xff]  ;;  %v847_v23 = vld [vmem:[%s1166_s24 + $0x90] sm:$0xff]  ;;  %993 = vmatpush3.bf16.msra.mxu0 %v990_v8  ;;  %1024 = vmatpush3.bf16.msra.mxu1 %v990_v8 }
  0x13   : > { %v258_v28 = vmul.f32 %v1171_v15, %v244_v22  ;;  %v291_v29 = vmul.f32 %v1176_v16, %v847_v23  ;;  %v307_v30 = vld [vmem:[%s1166_s24 + $0x1] sm:$0xff]  ;;  %v866_v33 = vld [vmem:[%s1166_s24 + $0x1b0] sm:$0xff]  ;;  %995 = vmatprep.subr.bf16.mxu0 %v994_v24  ;;  %1017 = vmatprep.subr.bf16.mxu1 %v994_v24 }
  0x14   : > { %v857_v31 = vld [vmem:[%s1166_s24 + $0x120] sm:$0xff]  ;;  %v321_v32 = vmul.f32 %v1187_v19, %v307_v30  ;;  %v884_v34 = vld [vmem:[%s1166_s24 + $0x10] sm:$0xff]  ;;  %v387_v50 = vmul.f32 %v1197_v21, %v866_v33 }
  0x15   : > { %v893_v35 = vld [vmem:[%s1166_s24 + $0xa0] sm:$0xff]  ;;  %v299_v38 = vadd.f32 %v291_v29, %v258_v28  ;;  %v354_v39 = vmul.f32 %v1192_v20, %v857_v31  ;;  %v902_v41 = vld [vmem:[%s1166_s24 + $0x11] sm:$0xff]  ;;  %v259_v45 = vmul.f32 %v884_v34, %v1171_v15  ;;  %v450_v61 = vmul.f32 %v1231_v44, %v884_v34 }
  0x16   : > { %v875_v40 = vld [vmem:[%s1166_s24 + $0x121] sm:$0xff]  ;;  %v858_v42 = vld [vmem:[%s1166_s24 + $0x130] sm:$0xff]  ;;  %v292_v46 = vmul.f32 %v893_v35, %v1176_v16  ;;  %v322_v51 = vmul.f32 %v902_v41, %v1187_v19  ;;  %997 = vmatpush3.bf16.msra.mxu0 %v994_v24  ;;  %1025 = vmatpush3.bf16.msra.mxu1 %v994_v24  ;;  %v483_v8 = vmul.f32 %v1248_v55, %v893_v35 }
  0x17   : > { %v867_v47 = vld [vmem:[%s1166_s24 + $0x1c0] sm:$0xff]  ;;  %v329_v49 = vadd.f32 %v321_v32, %v299_v38  ;;  %v894_v52 = vld [vmem:[%s1166_s24 + $0xb0] sm:$0xff]  ;;  %v417_v57 = vmul.f32 %v1210_v27, %v875_v40  ;;  %v355_v59 = vmul.f32 %v1192_v20, %v858_v42  ;;  %999 = vmatprep.subr.bf16.mxu0 %v998_v36  ;;  %1018 = vmatprep.subr.bf16.mxu1 %v998_v36 }
  0x18   : > { %v885_v48 = vld [vmem:[%s1166_s24 + $0x20] sm:$0xff]  ;;  %v300_v58 = vadd.f32 %v292_v46, %v259_v45  ;;  %v388_v62 = vmul.f32 %v1197_v21, %v867_v47  ;;  %v876_v63 = vld [vmem:[%s1166_s24 + $0x131] sm:$0xff]  ;;  %v293_v3 = vmul.f32 %v894_v52, %v1176_v16  ;;  %v513_v9 = vmul.f32 %v1253_v56, %v902_v41 }
  0x19   : > { %v1241_v53 = vld [vmem:[%s1166_s24 + $0x21] sm:$0xff]  ;;  %v362_v60 = vadd.f32 %v354_v39, %v329_v49  ;;  %v260_v0 = vmul.f32 %v885_v48, %v1171_v15  ;;  %v868_v5 = vld [vmem:[%s1166_s24 + $0x1d0] sm:$0xff]  ;;  %v418_v12 = vmul.f32 %v1210_v27, %v876_v63  ;;  %v451_v23 = vmul.f32 %v1231_v44, %v885_v48 }
  0x1a   : > { %v859_v1 = vld [vmem:[%s1166_s24 + $0x140] sm:$0xff]  ;;  %v330_v2 = vadd.f32 %v322_v51, %v300_v58  ;;  %v323_v4 = vmul.f32 %v1241_v53, %v1187_v19  ;;  %v886_v6 = vld [vmem:[%s1166_s24 + $0x30] sm:$0xff]  ;;  %v389_v24 = vmul.f32 %v1197_v21, %v868_v5  ;;  %1001 = vmatpush3.bf16.msra.mxu0 %v998_v36  ;;  %1026 = vmatpush3.bf16.msra.mxu1 %v998_v36 }
  0x1b   : > { %v395_v7 = vadd.f32 %v387_v50, %v362_v60  ;;  %v895_v10 = vld [vmem:[%s1166_s24 + $0xc0] sm:$0xff]  ;;  %v301_v13 = vadd.f32 %v293_v3, %v260_v0  ;;  %v356_v14 = vmul.f32 %v1192_v20, %v859_v1  ;;  %v904_v18 = vld [vmem:[%s1166_s24 + $0x31] sm:$0xff]  ;;  %v261_v25 = vmul.f32 %v886_v6, %v1171_v15  ;;  %1003 = vmatprep.subr.bf16.mxu0 %v1220_v37 }
  0x1c   : > { %v363_v11 = vadd.f32 %v355_v59, %v330_v2  ;;  %v877_v17 = vld [vmem:[%s1166_s24 + $0x141] sm:$0xff]  ;;  %v860_v26 = vld [vmem:[%s1166_s24 + $0x150] sm:$0xff]  ;;  %v294_v30 = vmul.f32 %v895_v10, %v1176_v16  ;;  %1019 = vmatprep.subr.bf16.mxu1 %v1220_v37  ;;  %v324_v34 = vmul.f32 %v904_v18, %v1187_v19  ;;  %v484_v42 = vmul.f32 %v1248_v55, %v894_v52 }
  0x1d   : > { %v425_v22 = vadd.f32 %v417_v57, %v395_v7  ;;  %v331_v29 = vadd.f32 %v323_v4, %v301_v13  ;;  %v869_v31 = vld [vmem:[%s1166_s24 + $0x1e0] sm:$0xff]  ;;  %v419_v33 = vmul.f32 %v1210_v27, %v877_v17  ;;  %v357_v39 = vmul.f32 %v1192_v20, %v860_v26  ;;  %v878_v47 = vld [vmem:[%s1166_s24 + $0x151] sm:$0xff] }
  0x1e   : > { %v396_v28 = vadd.f32 %v388_v62, %v363_v11  ;;  %v302_v36 = vadd.f32 %v294_v30, %v261_v25  ;;  %v887_v40 = vld [vmem:[%s1166_s24 + $0x40] sm:$0xff]  ;;  %v452_v45 = vmul.f32 %v1231_v44, %v886_v6  ;;  %v390_v46 = vmul.f32 %v1197_v21, %v869_v31  ;;  %v896_v48 = vld [vmem:[%s1166_s24 + $0xd0] sm:$0xff]  ;;  %1005 = vmatpush3.bf16.msra.mxu0 %v1220_v37 }
  0x1f   : > { %v458_v32 = vadd.f32 %v450_v61, %v425_v22  ;;  %v364_v38 = vadd.f32 %v356_v14, %v331_v29  ;;  %1027 = vmatpush3.bf16.msra.mxu1 %v1220_v37  ;;  %v905_v57 = vld [vmem:[%s1166_s24 + $0x41] sm:$0xff]  ;;  %1007 = vmatprep.subr.bf16.mxu0 %v1226_v43  ;;  %v485_v58 = vmul.f32 %v1248_v55, %v895_v10  ;;  %v870_v4 = vld [vmem:[%s1166_s24 + $0x1f0] sm:$0xff] }
  0x20   : > { %v426_v35 = vadd.f32 %v418_v12, %v396_v28  ;;  %v332_v51 = vadd.f32 %v324_v34, %v302_v36  ;;  %1020 = vmatprep.subr.bf16.mxu1 %v1226_v43  ;;  %v262_v59 = vmul.f32 %v887_v40, %v1171_v15  ;;  %v420_v37 = vmul.f32 %v1210_v27, %v878_v47  ;;  %v861_v63 = vld [vmem:[%s1166_s24 + $0x160] sm:$0xff]  ;;  %v888_v5 = vld [vmem:[%s1166_s24 + $0x50] sm:$0xff] }
  0x21   : > { %v491_v41 = vadd.f32 %v483_v8, %v458_v32  ;;  %v397_v50 = vadd.f32 %v389_v24, %v364_v38  ;;  %v295_v62 = vmul.f32 %v896_v48, %v1176_v16  ;;  %v514_v1 = vmul.f32 %v1253_v56, %v1241_v53  ;;  %v906_v10 = vld [vmem:[%s1166_s24 + $0x51] sm:$0xff]  ;;  %v879_v17 = vld [vmem:[%s1166_s24 + $0x161] sm:$0xff] }
  0x22   : > { %v459_v49 = vadd.f32 %v451_v23, %v426_v35  ;;  %v365_v61 = vadd.f32 %v357_v39, %v332_v51  ;;  %v515_v2 = vmul.f32 %v1253_v56, %v904_v18  ;;  %v325_v3 = vmul.f32 %v905_v57, %v1187_v19  ;;  %1009 = vmatpush3.bf16.msra.mxu0 %v1226_v43  ;;  %v862_v22 = vld [vmem:[%s1166_s24 + $0x170] sm:$0xff]  ;;  %v871_v28 = vld [vmem:[%s1166_s24 + $0x200] sm:$0xff] }
  0x23   : > { %v521_v52 = vadd.f32 %v513_v9, %v491_v41  ;;  %v427_v60 = vadd.f32 %v419_v33, %v397_v50  ;;  %1028 = vmatpush3.bf16.msra.mxu1 %v1226_v43  ;;  %v453_v8 = vmul.f32 %v1231_v44, %v887_v40  ;;  %v897_v9 = vld [vmem:[%s1166_s24 + $0xe0] sm:$0xff]  ;;  %1011 = vmatprep.subr.bf16.mxu0 %v1243_v54  ;;  %v898_v33 = vld [vmem:[%s1166_s24 + $0xf0] sm:$0xff] }
  0x24   : > { %v492_v0 = vadd.f32 %v484_v42, %v459_v49  ;;  %v398_v7 = vadd.f32 %v390_v46, %v365_v61  ;;  %1021 = vmatprep.subr.bf16.mxu1 %v1243_v54  ;;  %v486_v53 = vmul.f32 %v1248_v55, %v896_v48  ;;  %v303_v11 = vadd.f32 %v295_v62, %v262_v59  ;;  %v889_v29 = vld [vmem:[%s1166_s24 + $0x60] sm:$0xff]  ;;  %v880_v40 = vld [vmem:[%s1166_s24 + $0x171] sm:$0xff] }
  0x25   : > { %970 = vmatprep.mubr.f32.mxu0 %v521_v52  ;;  %v460_v6 = vadd.f32 %v452_v45, %v427_v60  ;;  %v358_v12 = vmul.f32 %v1192_v20, %v861_v63  ;;  %v391_v14 = vmul.f32 %v1197_v21, %v870_v4  ;;  %v263_v18 = vmul.f32 %v888_v5, %v1171_v15  ;;  %v907_v34 = vld [vmem:[%s1166_s24 + $0x61] sm:$0xff]  ;;  %v872_v51 = vld [vmem:[%s1166_s24 + $0x210] sm:$0xff] }
  0x26   : > { %v428_v43 = vadd.f32 %v420_v37, %v398_v7  ;;  %v522_v23 = vadd.f32 %v514_v1, %v492_v0  ;;  %v333_v24 = vadd.f32 %v325_v3, %v303_v11  ;;  %v296_v25 = vmul.f32 %v897_v9, %v1176_v16  ;;  %1013 = vmatpush3.bf16.msra.mxu0 %v1243_v54  ;;  %v863_v46 = vld [vmem:[%s1166_s24 + $0x180] sm:$0xff]  ;;  %v908_v37 = vld [vmem:[%s1166_s24 + $0x71] sm:$0xff] }
  0x27   : > { %v493_v13 = vadd.f32 %v485_v58, %v460_v6  ;;  %v326_v26 = vmul.f32 %v906_v10, %v1187_v19  ;;  %1029 = vmatpush3.bf16.msra.mxu1 %v1243_v54  ;;  %v516_v32 = vmul.f32 %v1253_v56, %v905_v57  ;;  %v421_v38 = vmul.f32 %v1210_v27, %v879_v17  ;;  %v890_v57 = vld [vmem:[%s1166_s24 + $0x70] sm:$0xff]  ;;  %v899_v52 = vld [vmem:[%s1166_s24 + $0x100] sm:$0xff] }
  0x28   : > { %v461_v31 = vadd.f32 %v453_v8, %v428_v43  ;;  %v366_v35 = vadd.f32 %v358_v12, %v333_v24  ;;  %v304_v36 = vadd.f32 %v296_v25, %v263_v18  ;;  %v359_v39 = vmul.f32 %v1192_v20, %v862_v22  ;;  %v873_v11 = vld [vmem:[%s1166_s24 + $0x220] sm:$0xff] }
  0x29   : > { %v523_v30 = vadd.f32 %v515_v2, %v493_v13  ;;  %v454_v42 = vmul.f32 %v1231_v44, %v888_v5  ;;  %v392_v54 = vmul.f32 %v1197_v21, %v871_v28  ;;  %v264_v45 = vmul.f32 %v889_v29, %v1171_v15  ;;  %971 = vmatmul.mubr.f32.vlgmr.msra.gmra.mrb[0].mxu0 %v522_v23  ;;  %v864_v2 = vld [vmem:[%s1166_s24 + $0x190] sm:$0xff]  ;;  %v881_v5 = vld [vmem:[%s1166_s24 + $0x181] sm:$0xff] }
  0x2a   : > { %v494_v41 = vadd.f32 %v486_v53, %v461_v31  ;;  %v399_v47 = vadd.f32 %v391_v14, %v366_v35  ;;  %v334_v48 = vadd.f32 %v326_v26, %v304_v36  ;;  %v297_v49 = vmul.f32 %v898_v33, %v1176_v16  ;;  %v900_v35 = vld [vmem:[%s1166_s24 + $0x110] sm:$0xff] }
  0x2b   : > { %v327_v50 = vmul.f32 %v907_v34, %v1187_v19  ;;  %973 = vmatprep.mubr.f32.mxu0 %v523_v30  ;;  %v487_v59 = vmul.f32 %v1248_v55, %v897_v9  ;;  %v517_v60 = vmul.f32 %v1253_v56, %v906_v10  ;;  %v422_v61 = vmul.f32 %v1210_v27, %v880_v40  ;;  %v909_v40 = vld [vmem:[%s1166_s24 + $0x81] sm:$0xff] }
  0x2c   : > { %v524_v58 = vadd.f32 %v516_v32, %v494_v41  ;;  %v429_v62 = vadd.f32 %v421_v38, %v399_v47  ;;  %v367_v63 = vadd.f32 %v359_v39, %v334_v48  ;;  %v305_v0 = vadd.f32 %v297_v49, %v264_v45 }
  0x2d   : > { %v360_v1 = vmul.f32 %v1192_v20, %v863_v46  ;;  %v455_v3 = vmul.f32 %v1231_v44, %v889_v29  ;;  %v393_v4 = vmul.f32 %v1197_v21, %v872_v51  ;;  %v265_v6 = vmul.f32 %v890_v57, %v1171_v15  ;;  %v891_v29 = vld [vmem:[%s1166_s24 + $0x80] sm:$0xff] }
  0x2e   : > { %v298_v7 = vmul.f32 %v899_v52, %v1176_v16  ;;  %974 = vmatmul.mubr.f32.gmra.mrb[2].mxu0 %v524_v58  ;;  %v462_v8 = vadd.f32 %v454_v42, %v429_v62  ;;  %v400_v9 = vadd.f32 %v392_v54, %v367_v63  ;;  %v335_v10 = vadd.f32 %v327_v50, %v305_v0  ;;  %v882_v16 = vld [vmem:[%s1166_s24 + $0x191] sm:$0xff]  ;;  %s913_s24 = sshll.u32 %s1414_s15, 6 }
  0x2f   : > { %v328_v53 = vmul.f32 %v908_v37, %v1187_v19  ;;  %v488_v12 = vmul.f32 %v1248_v55, %v898_v33  ;;  %v361_v43 = vmul.f32 %v1192_v20, %v864_v2  ;;  %v423_v15 = vmul.f32 %v1210_v27, %v881_v5  ;;  %s1381_s10 = scalar_lea.vmem %s1407_s3, %s913_s24 }
  0x30   : > { %v306_v13 = vadd.f32 %v298_v7, %v265_v6  ;;  %v495_v14 = vadd.f32 %v487_v59, %v462_v8  ;;  %v430_v17 = vadd.f32 %v422_v61, %v400_v9  ;;  %v368_v18 = vadd.f32 %v360_v1, %v335_v10 }
  0x31   : > { %v518_v22 = vmul.f32 %v1253_v56, %v907_v34  ;;  %v394_v24 = vmul.f32 %v1197_v21, %v873_v11  ;;  %v456_v28 = vmul.f32 %v1231_v44, %v890_v57  ;;  %v424_v30 = vmul.f32 %v1210_v27, %v882_v16 }
  0x32   : > { %v336_v23 = vadd.f32 %v328_v53, %v306_v13  ;;  %v525_v19 = vadd.f32 %v517_v60, %v495_v14  ;;  %v463_v25 = vadd.f32 %v455_v3, %v430_v17  ;;  %v401_v26 = vadd.f32 %v393_v4, %v368_v18 }
  0x33   : > { %v489_v33 = vmul.f32 %v1248_v55, %v899_v52  ;;  %v457_v38 = vmul.f32 %v1231_v44, %v891_v29  ;;  %v519_v39 = vmul.f32 %v1253_v56, %v908_v37  ;;  %v490_v42 = vmul.f32 %v1248_v55, %v900_v35 }
  0x34   : > { %v369_v20 = vadd.f32 %v361_v43, %v336_v23  ;;  %976 = vmatprep.mubr.f32.mxu1 %v525_v19  ;;  %v496_v31 = vadd.f32 %v488_v12, %v463_v25  ;;  %v431_v32 = vadd.f32 %v423_v15, %v401_v26  ;;  %v520_v45 = vmul.f32 %v1253_v56, %v909_v40 }
  0x35   : > { %v1080_v44 = vmov 0.0  }
  0x36   : > { %v402_v34 = vadd.f32 %v394_v24, %v369_v20  ;;  %v526_v21 = vadd.f32 %v518_v22, %v496_v31  ;;  %v464_v36 = vadd.f32 %v456_v28, %v431_v32  ;;  %662 = vst [vmem:[%s1374_s5] sm:$0x3] %v1080_v44 }
  0x38   : > { %v432_v41 = vadd.f32 %v424_v30, %v402_v34  ;;  %977 = vmatmul.mubr.f32.vlgmr.msra.gmra.mrb[0].mxu1 %v526_v21  ;;  %v497_v27 = vadd.f32 %v489_v33, %v464_v36 }
  0x3a   : > { %v465_v54 = vadd.f32 %v457_v38, %v432_v41  ;;  %v527_v46 = vadd.f32 %v519_v39, %v497_v27 }
  0x3c   : > { %v498_v47 = vadd.f32 %v490_v42, %v465_v54  ;;  %979 = vmatprep.mubr.f32.mxu1 %v527_v46 }
  0x3d   : > { %v663_v25 = vld [vmem:[%s1374_s5] sm:$0x1]  ;;  %v679_v29 = vld [vmem:[%s1374_s5 + $0x1] sm:$0x1] }
  0x3e   : > { %v528_v48 = vadd.f32 %v520_v45, %v498_v47 }
  0x40   : > { %980 = vmatmul.mubr.f32.gmra.mrb[2].mxu1 %v528_v48 }
  0xfc   : > { %v972_v55 = vpop.f32.mrb[0].mxu0 }
  0xfd   : > { %651 = vst [vmem:[%s1381_s10 + $0x8] sm:$0xff] %v972_v55  ;;  %v681_v56 = vmul.f32 %v972_v55, %v972_v55  ;;  %v611_v49 = vpop.f32.mrb[1].mxu0 }
  0xfe   : > { %650 = vst [vmem:[%s1381_s10] sm:$0xff] %v611_v49  ;;  %v664_v50 = vadd.f32 %v972_v55, %v611_v49  ;;  %v680_v51 = vmul.f32 %v611_v49, %v611_v49 }
 0x100   : > { %v688_v57 = vadd.f32 %v681_v56, %v680_v51 }
 0x101   : > { %v975_v52 = vpop.f32.mrb[2].mxu0 }
 0x102   : > { %653 = vst [vmem:[%s1381_s10 + $0x18] sm:$0xff] %v975_v52  ;;  %v621_v58 = vpop.f32.mrb[3].mxu0  ;;  %v683_v61 = vmul.f32 %v975_v52, %v975_v52 }
 0x103   : > { %652 = vst [vmem:[%s1381_s10 + $0x10] sm:$0xff] %v621_v58  ;;  %v665_v59 = vadd.f32 %v664_v50, %v621_v58  ;;  %v682_v60 = vmul.f32 %v621_v58, %v621_v58 }
 0x105   : > { %v666_v37 = vadd.f32 %v975_v52, %v665_v59  ;;  %v689_v62 = vadd.f32 %v688_v57, %v682_v60 }
 0x107   : > { %v690_v63 = vadd.f32 %v689_v62, %v683_v61 }
 0x10b   : > { %v978_v0 = vpop.f32.mrb[0].mxu1 }
 0x10c   : > { %655 = vst [vmem:[%s1381_s10 + $0x28] sm:$0xff] %v978_v0  ;;  %v631_v1 = vpop.f32.mrb[1].mxu1  ;;  %v685_v4 = vmul.f32 %v978_v0, %v978_v0 }
 0x10d   : > { %654 = vst [vmem:[%s1381_s10 + $0x20] sm:$0xff] %v631_v1  ;;  %v667_v2 = vadd.f32 %v666_v37, %v631_v1  ;;  %v684_v3 = vmul.f32 %v631_v1, %v631_v1 }
 0x10f   : > { %v691_v5 = vadd.f32 %v690_v63, %v684_v3  ;;  %v668_v6 = vadd.f32 %v978_v0, %v667_v2 }
 0x111   : > { %v692_v7 = vadd.f32 %v691_v5, %v685_v4 }
 0x113   : > { %v981_v8 = vpop.f32.mrb[2].mxu1 }
 0x114   : > { %657 = vst [vmem:[%s1381_s10 + $0x38] sm:$0xff] %v981_v8  ;;  %v641_v9 = vpop.f32.mrb[3].mxu1  ;;  %v687_v11 = vmul.f32 %v981_v8, %v981_v8 }
 0x115   : > { %656 = vst [vmem:[%s1381_s10 + $0x30] sm:$0xff] %v641_v9  ;;  %v669_v10 = vadd.f32 %v668_v6, %v641_v9  ;;  %v686_v53 = vmul.f32 %v641_v9, %v641_v9 }
 0x117   : > { %v670_v12 = vadd.f32 %v981_v8, %v669_v10  ;;  %v693_v13 = vadd.f32 %v692_v7, %v686_v53 }
 0x119   : > { %v671_v43 = vrot.slane %v670_v12, 4  ;;  %v694_v14 = vadd.f32 %v693_v13, %v687_v11 }
 0x11b   : > { %v672_v17 = vadd.f32 %v671_v43, %v670_v12  ;;  %v695_v18 = vrot.slane %v694_v14, 4 }
 0x11d   : > { %v673_v15 = vrot.slane %v672_v17, 2  ;;  %v696_v16 = vadd.f32 %v695_v18, %v694_v14 }
 0x11f   : > { %v674_v22 = vadd.f32 %v673_v15, %v672_v17  ;;  %v697_v23 = vrot.slane %v696_v16, 2 }
 0x121   : > { %v675_v24 = vrot.slane %v674_v22, 1  ;;  %v698_v19 = vadd.f32 %v697_v23, %v696_v16 }
 0x123   : > { %v676_v26 = vadd.f32 %v675_v24, %v674_v22  ;;  %v699_v28 = vrot.slane %v698_v19, 1 }
 0x125   : > { %v677_v20 = vadd.f32 %v676_v26, %v663_v25  ;;  %v700_v30 = vadd.f32 %v699_v28, %v698_v19 }
 0x127   : > { %678 = vst [vmem:[%s1374_s5] sm:$0x1] %v677_v20  ;;  %v701_v31 = vadd.f32 %v700_v30, %v679_v29 }
 0x129   : > { %702 = vst [vmem:[%s1374_s5 + $0x1] sm:$0x1] %v701_v31 }
 0x12a PF: > { %s15_s17 = sadd.s32 1, %s1078_s17   ;;  %s1409_s15 = smov %s1074_s16 }
 0x12b   : > { %p12_p5 = scmp.ge.s32.totalorder %s15_s17, 4   ;;  %s1410_s16 = smov %s1412_s18 }
 0x12d   :  { %14 = sbr.rel (!%p12_p5) target bundleno = 2 (0x2), region = 84 }

</bundles_post_ra>
